<compile_context>
chip_gen: v5e
topology: v5e:2x2
jax: 0.10.0
libtpu: 0.0.40
codegen_flags: <defaults>
</compile_context>

<pallas_src>
import functools

import jax
import jax.numpy as jnp
import numpy as np
from jax import lax
from jax.experimental import pallas as pl
from jax.experimental.pallas import tpu as pltpu


def _round_up(x, m):
    return ((x + m - 1) // m) * m


# ----------------------------------------------------------------------------
# Fused kernel: conv1 -> conv2 -> residual -> SE -> add -> ReLU  (per sample)
# ----------------------------------------------------------------------------
def _basic_block_kernel(
        mask_ref, x_ref, w1_ref, b1_ref, w2_ref, b2_ref, rw_ref, rb_ref,
        sw1_ref, sb1_ref, sw2_ref, sb2_ref,            # inputs
        o_ref,                                          # output
        pad_ref, patch_ref,                             # VMEM scratch (shared)
        *, D, H, W, CP, PAD):
    S = D * H * W
    HW = H * W
    f32 = jnp.float32

    def build_patch():
        # 27 shifted, boundary-masked copies of the flat (CP, S) activation,
        # stacked along K.  All reads/writes are lane-dense (S = 512 lanes)
        # and every store starts at a sublane offset that is a multiple of 8.
        tap = 0
        for dd in (-1, 0, 1):
            for dh in (-1, 0, 1):
                for dw in (-1, 0, 1):
                    off = dd * HW + dh * W + dw
                    sh = pad_ref[:, PAD + off:PAD + off + S]     # (CP, S)
                    if dh == 0 and dw == 0:
                        val = sh     # D boundary handled by the zero halo
                    else:
                        m = (dh + 1) * 3 + (dw + 1)
                        val = sh * mask_ref[m:m + 1, :]          # (1,S) bcast
                    patch_ref[tap * CP:(tap + 1) * CP, :] = val
                    tap += 1

    x = x_ref[0]                                                 # (CP, S)

    # ---- residual branch: 1x1x1 conv + folded BN (from x directly) -------
    ident = jnp.dot(rw_ref[...], x, preferred_element_type=f32) + rb_ref[...]

    # ---- zero the halo pads once; they stay zero for both convs ----------
    pad_ref[:, :PAD] = jnp.zeros((CP, PAD), f32)
    pad_ref[:, PAD + S:] = jnp.zeros((CP, PAD), f32)

    # ---- conv1: 3x3x3 + folded BN + ReLU (single matmul, K = 27*CP) ------
    pad_ref[:, PAD:PAD + S] = x
    build_patch()
    y = jnp.dot(w1_ref[...], patch_ref[...],
                preferred_element_type=f32) + b1_ref[...]
    y = jnp.maximum(y, 0.0)                                      # (CP, S)

    # ---- conv2: 3x3x3 + folded BN (no activation) ------------------------
    pad_ref[:, PAD:PAD + S] = y
    build_patch()
    y = jnp.dot(w2_ref[...], patch_ref[...],
                preferred_element_type=f32) + b2_ref[...]        # (CP, S)

    # ---- SE: global avg pool -> FC -> ReLU -> FC -> sigmoid (tiny) -------
    pooled = jnp.mean(y, axis=1, keepdims=True)                  # (CP, 1)
    h = jnp.sum(pooled * sw1_ref[...], axis=0, keepdims=True) + sb1_ref[...]
    h = jnp.maximum(h, 0.0)                                      # (1, Ch)
    s = jnp.sum(sw2_ref[...] * h, axis=1, keepdims=True) + sb2_ref[...]
    s = jax.nn.sigmoid(s)                                        # (CP, 1)

    # ---- scale, add residual, final ReLU ----------------------------------
    o_ref[0] = jnp.maximum(y * s + ident, 0.0).astype(o_ref.dtype)


# ----------------------------------------------------------------------------
# Wrapper: one pallas_call over grid=(N,), everything else stays in VMEM
# ----------------------------------------------------------------------------
def basic_block_forward(x_ncdhw, kp):
    N, Cin, D, H, W = x_ncdhw.shape
    S = D * H * W
    CP = kp["w1m"].shape[0]
    Cout = kp["cout"]
    Ch = kp["se_w1"].shape[1]
    PAD = _round_up(H * W + W + 1, 128)          # covers max |tap offset|

    x = x_ncdhw.reshape(N, Cin, S)               # free: NCDHW -> (N, C, S)
    if Cin != CP:                                # one-time tiny channel pad
        x = jnp.pad(x, ((0, 0), (0, CP - Cin), (0, 0)))

    kern = functools.partial(_basic_block_kernel, D=D, H=H, W=W,
                             CP=CP, PAD=PAD)
    out = pl.pallas_call(
        kern,
        out_shape=jax.ShapeDtypeStruct((N, CP, S), x.dtype),
        grid=(N,),
        in_specs=[
            pl.BlockSpec((9, S), lambda n: (0, 0)),             # H/W masks
            pl.BlockSpec((1, CP, S), lambda n: (n, 0, 0)),      # x
            pl.BlockSpec((CP, 27 * CP), lambda n: (0, 0)),      # conv1 W (folded)
            pl.BlockSpec((CP, 1), lambda n: (0, 0)),            # conv1 bias
            pl.BlockSpec((CP, 27 * CP), lambda n: (0, 0)),      # conv2 W (folded)
            pl.BlockSpec((CP, 1), lambda n: (0, 0)),            # conv2 bias
            pl.BlockSpec((CP, CP), lambda n: (0, 0)),           # residual W
            pl.BlockSpec((CP, 1), lambda n: (0, 0)),            # residual bias
            pl.BlockSpec((CP, Ch), lambda n: (0, 0)),           # SE fc1 W
            pl.BlockSpec((1, Ch), lambda n: (0, 0)),            # SE fc1 b
            pl.BlockSpec((CP, Ch), lambda n: (0, 0)),           # SE fc2 W^T
            pl.BlockSpec((CP, 1), lambda n: (0, 0)),            # SE fc2 b
        ],
        out_specs=pl.BlockSpec((1, CP, S), lambda n: (n, 0, 0)),
        scratch_shapes=[
            pltpu.VMEM((CP, S + 2 * PAD), jnp.float32),         # padded act (shared)
            pltpu.VMEM((27 * CP, S), jnp.float32),              # im2col patch (shared)
        ],
        compiler_params=pltpu.CompilerParams(
            dimension_semantics=("parallel",)),
    )(kp["masks"], x, kp["w1m"], kp["b1"], kp["w2m"], kp["b2"],
      kp["resw"], kp["resb"], kp["se_w1"], kp["se_b1"],
      kp["se_w2t"], kp["se_b2"])

    if Cout != CP:
        out = out[:, :Cout]
    return out.reshape(N, Cout, D, H, W)         # free: (N, C, S) -> NCDHW


# ----------------------------------------------------------------------------
# One-time parameter preparation (outside the hot path; plain XLA ops)
# ----------------------------------------------------------------------------
def make_hw_masks(D, H, W):
    """(9, D*H*W) f32 validity masks indexed by (dh+1)*3 + (dw+1)."""
    S = D * H * W
    s = np.arange(S)
    w_idx = s % W
    h_idx = (s // W) % H
    masks = np.zeros((9, S), np.float32)
    for i, dh in enumerate((-1, 0, 1)):
        for j, dw in enumerate((-1, 0, 1)):
            ok = np.ones(S, dtype=bool)
            if dh == -1:
                ok &= h_idx >= 1
            if dh == +1:
                ok &= h_idx <= H - 2
            if dw == -1:
                ok &= w_idx >= 1
            if dw == +1:
                ok &= w_idx <= W - 2
            masks[i * 3 + j] = ok.astype(np.float32)
    return jnp.asarray(masks)


def prepare_kernel_params(p, D, H, W):
    """Fold eval-mode BN into conv weights, pad channels to multiples of 8
    (sublane alignment) and rearrange for channel-major (Cout, K)."""
    Cin, Cout = p["res_w"].shape
    Ch = p["se_w1"].shape[1]
    CP = max(_round_up(Cin, 8), _round_up(Cout, 8))
    f32 = jnp.float32

    def fold_conv(w, scale, bias):
        # w: (3,3,3,cin,cout); scale/bias: (1,cout)
        cin, cout = w.shape[3], w.shape[4]
        wf = (w * scale[0]).reshape(27, cin, cout)          # fold BN scale
        wk = jnp.zeros((27, CP, CP), f32).at[:, :cin, :cout].set(wf)
        wm = wk.reshape(27 * CP, CP).T                      # (CP, 27*CP)
        b = jnp.zeros((CP, 1), f32).at[:cout, 0].set(bias[0])
        return wm, b

    kp = {"cout": Cout}
    kp["w1m"], kp["b1"] = fold_conv(p["w1"], p["bn1_scale"], p["bn1_bias"])
    kp["w2m"], kp["b2"] = fold_conv(p["w2"], p["bn2_scale"], p["bn2_bias"])

    rw = (p["res_w"] * p["res_scale"][0]).T                 # (Cout, Cin)
    kp["resw"] = jnp.zeros((CP, CP), f32).at[:Cout, :Cin].set(rw)
    kp["resb"] = jnp.zeros((CP, 1), f32).at[:Cout, 0].set(p["res_bias"][0])

    kp["se_w1"] = jnp.zeros((CP, Ch), f32).at[:Cout].set(p["se_w1"])
    kp["se_b1"] = p["se_b1"]                                # (1, Ch)
    kp["se_w2t"] = jnp.zeros((CP, Ch), f32).at[:Cout].set(p["se_w2"].T)
    kp["se_b2"] = jnp.zeros((CP, 1), f32).at[:Cout, 0].set(p["se_b2"][0])
    kp["masks"] = make_hw_masks(D, H, W)
    return kp


# ----------------------------------------------------------------------------
# Pure-JAX reference (NDHWC) for correctness check
# ----------------------------------------------------------------------------
def _ref_conv_bn(x, w, scale, bias, relu):
    y = lax.conv_general_dilated(
        x, w, (1, 1, 1), "SAME",
        dimension_numbers=("NDHWC", "DHWIO", "NDHWC"))
    y = y * scale[0] + bias[0]
    if relu:
        y = jnp.maximum(y, 0.0)
    return y


def ref_forward(x_ndhwc, p):
    Cin, Cout = p["res_w"].shape
    ident = _ref_conv_bn(x_ndhwc, p["res_w"].reshape(1, 1, 1, Cin, Cout),
                         p["res_scale"], p["res_bias"], relu=False)
    y = _ref_conv_bn(x_ndhwc, p["w1"], p["bn1_scale"], p["bn1_bias"], relu=True)
    y = _ref_conv_bn(y, p["w2"], p["bn2_scale"], p["bn2_bias"], relu=False)
    pooled = jnp.mean(y, axis=(1, 2, 3))                    # (N, C)
    h = jnp.maximum(pooled @ p["se_w1"] + p["se_b1"][0], 0.0)
    s = jax.nn.sigmoid(h @ p["se_w2"] + p["se_b2"][0])
    out = jnp.maximum(y * s[:, None, None, None, :] + ident, 0.0)
    return out


# ----------------------------------------------------------------------------
# Deterministic parameter construction
# ----------------------------------------------------------------------------
def fold_bn(gamma, beta, mean, var, eps=1e-5):
    scale = gamma / jnp.sqrt(var + eps)
    bias = beta - mean * scale
    return scale[None, :], bias[None, :]


def make_params(key, cin, cout, se_hidden):
    ks = jax.random.split(key, 16)
    f32 = jnp.float32

    def bn_params(k, c):
        k1, k2, k3, k4 = jax.random.split(k, 4)
        gamma = 1.0 + 0.1 * jax.random.normal(k1, (c,), f32)
        beta = 0.1 * jax.random.normal(k2, (c,), f32)
        mean = 0.1 * jax.random.normal(k3, (c,), f32)
        var = jax.random.uniform(k4, (c,), f32, 0.5, 1.5)
        return fold_bn(gamma, beta, mean, var)

    p = {}
    p["w1"] = 0.1 * jax.random.normal(ks[0], (3, 3, 3, cin, cout), f32)
    p["bn1_scale"], p["bn1_bias"] = bn_params(ks[1], cout)
    p["w2"] = 0.1 * jax.random.normal(ks[2], (3, 3, 3, cout, cout), f32)
    p["bn2_scale"], p["bn2_bias"] = bn_params(ks[3], cout)
    p["res_w"] = 0.1 * jax.random.normal(ks[4], (cin, cout), f32)
    p["res_scale"], p["res_bias"] = bn_params(ks[5], cout)
    p["se_w1"] = 0.1 * jax.random.normal(ks[6], (cout, se_hidden), f32)
    p["se_b1"] = 0.1 * jax.random.normal(ks[7], (1, se_hidden), f32)
    p["se_w2"] = 0.1 * jax.random.normal(ks[8], (se_hidden, cout), f32)
    p["se_b2"] = 0.1 * jax.random.normal(ks[9], (1, cout), f32)
    return p


if __name__ == "__main__":
    key = jax.random.PRNGKey(0)
    kx, kp = jax.random.split(key)

    N, Cin, Cout, D, H, W = 2, 4, 8, 8, 8, 8
    se_hidden = max(Cout // 4, 1)

    # PyTorch-native NCDHW input.
    x_ncdhw = jax.random.normal(kx, (N, Cin, D, H, W), jnp.float32)

    params = make_params(kp, Cin, Cout, se_hidden)
    kparams = prepare_kernel_params(params, D, H, W)

    out = basic_block_forward(x_ncdhw, kparams)      # (N, Cout, D, H, W)
    out = jax.block_until_ready(out)

    x_ndhwc = jnp.transpose(x_ncdhw, (0, 2, 3, 4, 1))
    ref = jax.block_until_ready(ref_forward(x_ndhwc, params))
    ref_ncdhw = jnp.transpose(ref, (0, 4, 1, 2, 3))

    assert out.shape == (N, Cout, D, H, W), out.shape
    if not np.allclose(np.asarray(out), np.asarray(ref_ncdhw),
                       rtol=2e-2, atol=2e-3):
        raise AssertionError("Pallas output does not match JAX reference")

    print("KERNEL_OK")
</pallas_src>

<mosaic_0001>
module attributes {stable_mosaic.version = 11 : i64} {
  func.func @_basic_block_kernel(%arg0: i32, %arg1: memref<9x512xf32, #tpu.memory_space<vmem>>, %arg2: memref<1x8x512xf32, #tpu.memory_space<vmem>>, %arg3: memref<8x216xf32, #tpu.memory_space<vmem>>, %arg4: memref<8x1xf32, #tpu.memory_space<vmem>>, %arg5: memref<8x216xf32, #tpu.memory_space<vmem>>, %arg6: memref<8x1xf32, #tpu.memory_space<vmem>>, %arg7: memref<8x8xf32, #tpu.memory_space<vmem>>, %arg8: memref<8x1xf32, #tpu.memory_space<vmem>>, %arg9: memref<8x2xf32, #tpu.memory_space<vmem>>, %arg10: memref<1x2xf32, #tpu.memory_space<vmem>>, %arg11: memref<8x2xf32, #tpu.memory_space<vmem>>, %arg12: memref<8x1xf32, #tpu.memory_space<vmem>>, %arg13: memref<1x8x512xf32, #tpu.memory_space<vmem>>, %arg14: memref<8x768xf32, #tpu.memory_space<vmem>>, %arg15: memref<216x512xf32, #tpu.memory_space<vmem>>) attributes {dimension_semantics = [#tpu.dimension_semantics<parallel>], iteration_bounds = array<i64: 2>, scalar_prefetch = 0 : i64, scratch_operands = 2 : i64, tpu.core_type = #tpu.core_type<tc>, window_params = [{pipeline_mode = #tpu.pipeline_mode<synchronous>, transform_indices = @transform_0, window_bounds = array<i64: 9, 512>}, {transform_indices = @transform_1, window_bounds = array<i64: 1, 8, 512>}, {pipeline_mode = #tpu.pipeline_mode<synchronous>, transform_indices = @transform_2, window_bounds = array<i64: 8, 216>}, {pipeline_mode = #tpu.pipeline_mode<synchronous>, transform_indices = @transform_3, window_bounds = array<i64: 8, 1>}, {pipeline_mode = #tpu.pipeline_mode<synchronous>, transform_indices = @transform_4, window_bounds = array<i64: 8, 216>}, {pipeline_mode = #tpu.pipeline_mode<synchronous>, transform_indices = @transform_5, window_bounds = array<i64: 8, 1>}, {pipeline_mode = #tpu.pipeline_mode<synchronous>, transform_indices = @transform_6, window_bounds = array<i64: 8, 8>}, {pipeline_mode = #tpu.pipeline_mode<synchronous>, transform_indices = @transform_7, window_bounds = array<i64: 8, 1>}, {pipeline_mode = #tpu.pipeline_mode<synchronous>, transform_indices = @transform_8, window_bounds = array<i64: 8, 2>}, {pipeline_mode = #tpu.pipeline_mode<synchronous>, transform_indices = @transform_9, window_bounds = array<i64: 1, 2>}, {pipeline_mode = #tpu.pipeline_mode<synchronous>, transform_indices = @transform_10, window_bounds = array<i64: 8, 2>}, {pipeline_mode = #tpu.pipeline_mode<synchronous>, transform_indices = @transform_11, window_bounds = array<i64: 8, 1>}, {transform_indices = @transform_12, window_bounds = array<i64: 1, 8, 512>}]} {
    %c0 = arith.constant 0 : index
    %c0_0 = arith.constant 0 : index
    %c0_1 = arith.constant 0 : index
    %0 = vector.load %arg2[%c0, %c0_0, %c0_1] : memref<1x8x512xf32, #tpu.memory_space<vmem>>, vector<1x8x512xf32>
    %1 = vector.shape_cast %0 : vector<1x8x512xf32> to vector<8x512xf32>
    %c0_2 = arith.constant 0 : index
    %c0_3 = arith.constant 0 : index
    %2 = vector.load %arg7[%c0_2, %c0_3] : memref<8x8xf32, #tpu.memory_space<vmem>>, vector<8x8xf32>
    %cst = arith.constant dense<0.000000e+00> : vector<8x512xf32>
    %3 = tpu.matmul %2, %1, %cst {dimension_numbers = #tpu.dot_dimension_numbers<[1], [0], [0], [1], [0, 0, 1, 1], [], []>} : vector<8x8xf32>, vector<8x512xf32>, vector<8x512xf32> -> vector<8x512xf32>
    %c0_4 = arith.constant 0 : index
    %c0_5 = arith.constant 0 : index
    %4 = vector.load %arg8[%c0_4, %c0_5] : memref<8x1xf32, #tpu.memory_space<vmem>>, vector<8x1xf32>
    %5 = vector.broadcast %4 : vector<8x1xf32> to vector<8x512xf32>
    %6 = arith.addf %3, %5 : vector<8x512xf32>
    %cst_6 = arith.constant 0.000000e+00 : f32
    %7 = vector.broadcast %cst_6 : f32 to vector<8x128xf32>
    %c0_7 = arith.constant 0 : index
    %c0_8 = arith.constant 0 : index
    %8 = vector.load %arg14[%c0_7, %c0_8] : memref<8x768xf32, #tpu.memory_space<vmem>>, vector<8x128xf32>
    tpu.vector_store %arg14[%c0_7, %c0_8], %7 {strides = array<i32>} : memref<8x768xf32, #tpu.memory_space<vmem>>, vector<8x128xf32>,
    %cst_9 = arith.constant 0.000000e+00 : f32
    %9 = vector.broadcast %cst_9 : f32 to vector<8x128xf32>
    %c0_10 = arith.constant 0 : index
    %c640 = arith.constant 640 : index
    %10 = vector.load %arg14[%c0_10, %c640] : memref<8x768xf32, #tpu.memory_space<vmem>>, vector<8x128xf32>
    tpu.vector_store %arg14[%c0_10, %c640], %9 {strides = array<i32>} : memref<8x768xf32, #tpu.memory_space<vmem>>, vector<8x128xf32>,
    %c0_11 = arith.constant 0 : index
    %c128 = arith.constant 128 : index
    %11 = vector.load %arg14[%c0_11, %c128] : memref<8x768xf32, #tpu.memory_space<vmem>>, vector<8x512xf32>
    tpu.vector_store %arg14[%c0_11, %c128], %1 {strides = array<i32>} : memref<8x768xf32, #tpu.memory_space<vmem>>, vector<8x512xf32>,
    %c0_12 = arith.constant 0 : index
    %c55 = arith.constant 55 : index
    %12 = vector.load %arg14[%c0_12, %c55] : memref<8x768xf32, #tpu.memory_space<vmem>>, vector<8x512xf32>
    %c0_13 = arith.constant 0 : index
    %c0_14 = arith.constant 0 : index
    %13 = vector.load %arg1[%c0_13, %c0_14] : memref<9x512xf32, #tpu.memory_space<vmem>>, vector<1x512xf32>
    %14 = vector.broadcast %13 : vector<1x512xf32> to vector<8x512xf32>
    %15 = arith.mulf %12, %14 : vector<8x512xf32>
    %c0_15 = arith.constant 0 : index
    %c0_16 = arith.constant 0 : index
    %16 = vector.load %arg15[%c0_15, %c0_16] : memref<216x512xf32, #tpu.memory_space<vmem>>, vector<8x512xf32>
    tpu.vector_store %arg15[%c0_15, %c0_16], %15 {strides = array<i32>} : memref<216x512xf32, #tpu.memory_space<vmem>>, vector<8x512xf32>,
    %c0_17 = arith.constant 0 : index
    %c56 = arith.constant 56 : index
    %17 = vector.load %arg14[%c0_17, %c56] : memref<8x768xf32, #tpu.memory_space<vmem>>, vector<8x512xf32>
    %c1 = arith.constant 1 : index
    %c0_18 = arith.constant 0 : index
    %18 = vector.load %arg1[%c1, %c0_18] : memref<9x512xf32, #tpu.memory_space<vmem>>, vector<1x512xf32>
    %19 = vector.broadcast %18 : vector<1x512xf32> to vector<8x512xf32>
    %20 = arith.mulf %17, %19 : vector<8x512xf32>
    %c8 = arith.constant 8 : index
    %c0_19 = arith.constant 0 : index
    %21 = vector.load %arg15[%c8, %c0_19] : memref<216x512xf32, #tpu.memory_space<vmem>>, vector<8x512xf32>
    tpu.vector_store %arg15[%c8, %c0_19], %20 {strides = array<i32>} : memref<216x512xf32, #tpu.memory_space<vmem>>, vector<8x512xf32>,
    %c0_20 = arith.constant 0 : index
    %c57 = arith.constant 57 : index
    %22 = vector.load %arg14[%c0_20, %c57] : memref<8x768xf32, #tpu.memory_space<vmem>>, vector<8x512xf32>
    %c2 = arith.constant 2 : index
    %c0_21 = arith.constant 0 : index
    %23 = vector.load %arg1[%c2, %c0_21] : memref<9x512xf32, #tpu.memory_space<vmem>>, vector<1x512xf32>
    %24 = vector.broadcast %23 : vector<1x512xf32> to vector<8x512xf32>
    %25 = arith.mulf %22, %24 : vector<8x512xf32>
    %c16 = arith.constant 16 : index
    %c0_22 = arith.constant 0 : index
    %26 = vector.load %arg15[%c16, %c0_22] : memref<216x512xf32, #tpu.memory_space<vmem>>, vector<8x512xf32>
    tpu.vector_store %arg15[%c16, %c0_22], %25 {strides = array<i32>} : memref<216x512xf32, #tpu.memory_space<vmem>>, vector<8x512xf32>,
    %c0_23 = arith.constant 0 : index
    %c63 = arith.constant 63 : index
    %27 = vector.load %arg14[%c0_23, %c63] : memref<8x768xf32, #tpu.memory_space<vmem>>, vector<8x512xf32>
    %c3 = arith.constant 3 : index
    %c0_24 = arith.constant 0 : index
    %28 = vector.load %arg1[%c3, %c0_24] : memref<9x512xf32, #tpu.memory_space<vmem>>, vector<1x512xf32>
    %29 = vector.broadcast %28 : vector<1x512xf32> to vector<8x512xf32>
    %30 = arith.mulf %27, %29 : vector<8x512xf32>
    %c24 = arith.constant 24 : index
    %c0_25 = arith.constant 0 : index
    %31 = vector.load %arg15[%c24, %c0_25] : memref<216x512xf32, #tpu.memory_space<vmem>>, vector<8x512xf32>
    tpu.vector_store %arg15[%c24, %c0_25], %30 {strides = array<i32>} : memref<216x512xf32, #tpu.memory_space<vmem>>, vector<8x512xf32>,
    %c0_26 = arith.constant 0 : index
    %c64 = arith.constant 64 : index
    %32 = vector.load %arg14[%c0_26, %c64] : memref<8x768xf32, #tpu.memory_space<vmem>>, vector<8x512xf32>
    %c32 = arith.constant 32 : index
    %c0_27 = arith.constant 0 : index
    %33 = vector.load %arg15[%c32, %c0_27] : memref<216x512xf32, #tpu.memory_space<vmem>>, vector<8x512xf32>
    tpu.vector_store %arg15[%c32, %c0_27], %32 {strides = array<i32>} : memref<216x512xf32, #tpu.memory_space<vmem>>, vector<8x512xf32>,
    %c0_28 = arith.constant 0 : index
    %c65 = arith.constant 65 : index
    %34 = vector.load %arg14[%c0_28, %c65] : memref<8x768xf32, #tpu.memory_space<vmem>>, vector<8x512xf32>
    %c5 = arith.constant 5 : index
    %c0_29 = arith.constant 0 : index
    %35 = vector.load %arg1[%c5, %c0_29] : memref<9x512xf32, #tpu.memory_space<vmem>>, vector<1x512xf32>
    %36 = vector.broadcast %35 : vector<1x512xf32> to vector<8x512xf32>
    %37 = arith.mulf %34, %36 : vector<8x512xf32>
    %c40 = arith.constant 40 : index
    %c0_30 = arith.constant 0 : index
    %38 = vector.load %arg15[%c40, %c0_30] : memref<216x512xf32, #tpu.memory_space<vmem>>, vector<8x512xf32>
    tpu.vector_store %arg15[%c40, %c0_30], %37 {strides = array<i32>} : memref<216x512xf32, #tpu.memory_space<vmem>>, vector<8x512xf32>,
    %c0_31 = arith.constant 0 : index
    %c71 = arith.constant 71 : index
    %39 = vector.load %arg14[%c0_31, %c71] : memref<8x768xf32, #tpu.memory_space<vmem>>, vector<8x512xf32>
    %c6 = arith.constant 6 : index
    %c0_32 = arith.constant 0 : index
    %40 = vector.load %arg1[%c6, %c0_32] : memref<9x512xf32, #tpu.memory_space<vmem>>, vector<1x512xf32>
    %41 = vector.broadcast %40 : vector<1x512xf32> to vector<8x512xf32>
    %42 = arith.mulf %39, %41 : vector<8x512xf32>
    %c48 = arith.constant 48 : index
    %c0_33 = arith.constant 0 : index
    %43 = vector.load %arg15[%c48, %c0_33] : memref<216x512xf32, #tpu.memory_space<vmem>>, vector<8x512xf32>
    tpu.vector_store %arg15[%c48, %c0_33], %42 {strides = array<i32>} : memref<216x512xf32, #tpu.memory_space<vmem>>, vector<8x512xf32>,
    %c0_34 = arith.constant 0 : index
    %c72 = arith.constant 72 : index
    %44 = vector.load %arg14[%c0_34, %c72] : memref<8x768xf32, #tpu.memory_space<vmem>>, vector<8x512xf32>
    %c7 = arith.constant 7 : index
    %c0_35 = arith.constant 0 : index
    %45 = vector.load %arg1[%c7, %c0_35] : memref<9x512xf32, #tpu.memory_space<vmem>>, vector<1x512xf32>
    %46 = vector.broadcast %45 : vector<1x512xf32> to vector<8x512xf32>
    %47 = arith.mulf %44, %46 : vector<8x512xf32>
    %c56_36 = arith.constant 56 : index
    %c0_37 = arith.constant 0 : index
    %48 = vector.load %arg15[%c56_36, %c0_37] : memref<216x512xf32, #tpu.memory_space<vmem>>, vector<8x512xf32>
    tpu.vector_store %arg15[%c56_36, %c0_37], %47 {strides = array<i32>} : memref<216x512xf32, #tpu.memory_space<vmem>>, vector<8x512xf32>,
    %c0_38 = arith.constant 0 : index
    %c73 = arith.constant 73 : index
    %49 = vector.load %arg14[%c0_38, %c73] : memref<8x768xf32, #tpu.memory_space<vmem>>, vector<8x512xf32>
    %c8_39 = arith.constant 8 : index
    %c0_40 = arith.constant 0 : index
    %50 = vector.load %arg1[%c8_39, %c0_40] : memref<9x512xf32, #tpu.memory_space<vmem>>, vector<1x512xf32>
    %51 = vector.broadcast %50 : vector<1x512xf32> to vector<8x512xf32>
    %52 = arith.mulf %49, %51 : vector<8x512xf32>
    %c64_41 = arith.constant 64 : index
    %c0_42 = arith.constant 0 : index
    %53 = vector.load %arg15[%c64_41, %c0_42] : memref<216x512xf32, #tpu.memory_space<vmem>>, vector<8x512xf32>
    tpu.vector_store %arg15[%c64_41, %c0_42], %52 {strides = array<i32>} : memref<216x512xf32, #tpu.memory_space<vmem>>, vector<8x512xf32>,
    %c0_43 = arith.constant 0 : index
    %c119 = arith.constant 119 : index
    %54 = vector.load %arg14[%c0_43, %c119] : memref<8x768xf32, #tpu.memory_space<vmem>>, vector<8x512xf32>
    %c0_44 = arith.constant 0 : index
    %c0_45 = arith.constant 0 : index
    %55 = vector.load %arg1[%c0_44, %c0_45] : memref<9x512xf32, #tpu.memory_space<vmem>>, vector<1x512xf32>
    %56 = vector.broadcast %55 : vector<1x512xf32> to vector<8x512xf32>
    %57 = arith.mulf %54, %56 : vector<8x512xf32>
    %c72_46 = arith.constant 72 : index
    %c0_47 = arith.constant 0 : index
    %58 = vector.load %arg15[%c72_46, %c0_47] : memref<216x512xf32, #tpu.memory_space<vmem>>, vector<8x512xf32>
    tpu.vector_store %arg15[%c72_46, %c0_47], %57 {strides = array<i32>} : memref<216x512xf32, #tpu.memory_space<vmem>>, vector<8x512xf32>,
    %c0_48 = arith.constant 0 : index
    %c120 = arith.constant 120 : index
    %59 = vector.load %arg14[%c0_48, %c120] : memref<8x768xf32, #tpu.memory_space<vmem>>, vector<8x512xf32>
    %c1_49 = arith.constant 1 : index
    %c0_50 = arith.constant 0 : index
    %60 = vector.load %arg1[%c1_49, %c0_50] : memref<9x512xf32, #tpu.memory_space<vmem>>, vector<1x512xf32>
    %61 = vector.broadcast %60 : vector<1x512xf32> to vector<8x512xf32>
    %62 = arith.mulf %59, %61 : vector<8x512xf32>
    %c80 = arith.constant 80 : index
    %c0_51 = arith.constant 0 : index
    %63 = vector.load %arg15[%c80, %c0_51] : memref<216x512xf32, #tpu.memory_space<vmem>>, vector<8x512xf32>
    tpu.vector_store %arg15[%c80, %c0_51], %62 {strides = array<i32>} : memref<216x512xf32, #tpu.memory_space<vmem>>, vector<8x512xf32>,
    %c0_52 = arith.constant 0 : index
    %c121 = arith.constant 121 : index
    %64 = vector.load %arg14[%c0_52, %c121] : memref<8x768xf32, #tpu.memory_space<vmem>>, vector<8x512xf32>
    %c2_53 = arith.constant 2 : index
    %c0_54 = arith.constant 0 : index
    %65 = vector.load %arg1[%c2_53, %c0_54] : memref<9x512xf32, #tpu.memory_space<vmem>>, vector<1x512xf32>
    %66 = vector.broadcast %65 : vector<1x512xf32> to vector<8x512xf32>
    %67 = arith.mulf %64, %66 : vector<8x512xf32>
    %c88 = arith.constant 88 : index
    %c0_55 = arith.constant 0 : index
    %68 = vector.load %arg15[%c88, %c0_55] : memref<216x512xf32, #tpu.memory_space<vmem>>, vector<8x512xf32>
    tpu.vector_store %arg15[%c88, %c0_55], %67 {strides = array<i32>} : memref<216x512xf32, #tpu.memory_space<vmem>>, vector<8x512xf32>,
    %c0_56 = arith.constant 0 : index
    %c127 = arith.constant 127 : index
    %69 = vector.load %arg14[%c0_56, %c127] : memref<8x768xf32, #tpu.memory_space<vmem>>, vector<8x512xf32>
    %c3_57 = arith.constant 3 : index
    %c0_58 = arith.constant 0 : index
    %70 = vector.load %arg1[%c3_57, %c0_58] : memref<9x512xf32, #tpu.memory_space<vmem>>, vector<1x512xf32>
    %71 = vector.broadcast %70 : vector<1x512xf32> to vector<8x512xf32>
    %72 = arith.mulf %69, %71 : vector<8x512xf32>
    %c96 = arith.constant 96 : index
    %c0_59 = arith.constant 0 : index
    %73 = vector.load %arg15[%c96, %c0_59] : memref<216x512xf32, #tpu.memory_space<vmem>>, vector<8x512xf32>
    tpu.vector_store %arg15[%c96, %c0_59], %72 {strides = array<i32>} : memref<216x512xf32, #tpu.memory_space<vmem>>, vector<8x512xf32>,
    %c0_60 = arith.constant 0 : index
    %c128_61 = arith.constant 128 : index
    %74 = vector.load %arg14[%c0_60, %c128_61] : memref<8x768xf32, #tpu.memory_space<vmem>>, vector<8x512xf32>
    %c104 = arith.constant 104 : index
    %c0_62 = arith.constant 0 : index
    %75 = vector.load %arg15[%c104, %c0_62] : memref<216x512xf32, #tpu.memory_space<vmem>>, vector<8x512xf32>
    tpu.vector_store %arg15[%c104, %c0_62], %74 {strides = array<i32>} : memref<216x512xf32, #tpu.memory_space<vmem>>, vector<8x512xf32>,
    %c0_63 = arith.constant 0 : index
    %c129 = arith.constant 129 : index
    %76 = vector.load %arg14[%c0_63, %c129] : memref<8x768xf32, #tpu.memory_space<vmem>>, vector<8x512xf32>
    %c5_64 = arith.constant 5 : index
    %c0_65 = arith.constant 0 : index
    %77 = vector.load %arg1[%c5_64, %c0_65] : memref<9x512xf32, #tpu.memory_space<vmem>>, vector<1x512xf32>
    %78 = vector.broadcast %77 : vector<1x512xf32> to vector<8x512xf32>
    %79 = arith.mulf %76, %78 : vector<8x512xf32>
    %c112 = arith.constant 112 : index
    %c0_66 = arith.constant 0 : index
    %80 = vector.load %arg15[%c112, %c0_66] : memref<216x512xf32, #tpu.memory_space<vmem>>, vector<8x512xf32>
    tpu.vector_store %arg15[%c112, %c0_66], %79 {strides = array<i32>} : memref<216x512xf32, #tpu.memory_space<vmem>>, vector<8x512xf32>,
    %c0_67 = arith.constant 0 : index
    %c135 = arith.constant 135 : index
    %81 = vector.load %arg14[%c0_67, %c135] : memref<8x768xf32, #tpu.memory_space<vmem>>, vector<8x512xf32>
    %c6_68 = arith.constant 6 : index
    %c0_69 = arith.constant 0 : index
    %82 = vector.load %arg1[%c6_68, %c0_69] : memref<9x512xf32, #tpu.memory_space<vmem>>, vector<1x512xf32>
    %83 = vector.broadcast %82 : vector<1x512xf32> to vector<8x512xf32>
    %84 = arith.mulf %81, %83 : vector<8x512xf32>
    %c120_70 = arith.constant 120 : index
    %c0_71 = arith.constant 0 : index
    %85 = vector.load %arg15[%c120_70, %c0_71] : memref<216x512xf32, #tpu.memory_space<vmem>>, vector<8x512xf32>
    tpu.vector_store %arg15[%c120_70, %c0_71], %84 {strides = array<i32>} : memref<216x512xf32, #tpu.memory_space<vmem>>, vector<8x512xf32>,
    %c0_72 = arith.constant 0 : index
    %c136 = arith.constant 136 : index
    %86 = vector.load %arg14[%c0_72, %c136] : memref<8x768xf32, #tpu.memory_space<vmem>>, vector<8x512xf32>
    %c7_73 = arith.constant 7 : index
    %c0_74 = arith.constant 0 : index
    %87 = vector.load %arg1[%c7_73, %c0_74] : memref<9x512xf32, #tpu.memory_space<vmem>>, vector<1x512xf32>
    %88 = vector.broadcast %87 : vector<1x512xf32> to vector<8x512xf32>
    %89 = arith.mulf %86, %88 : vector<8x512xf32>
    %c128_75 = arith.constant 128 : index
    %c0_76 = arith.constant 0 : index
    %90 = vector.load %arg15[%c128_75, %c0_76] : memref<216x512xf32, #tpu.memory_space<vmem>>, vector<8x512xf32>
    tpu.vector_store %arg15[%c128_75, %c0_76], %89 {strides = array<i32>} : memref<216x512xf32, #tpu.memory_space<vmem>>, vector<8x512xf32>,
    %c0_77 = arith.constant 0 : index
    %c137 = arith.constant 137 : index
    %91 = vector.load %arg14[%c0_77, %c137] : memref<8x768xf32, #tpu.memory_space<vmem>>, vector<8x512xf32>
    %c8_78 = arith.constant 8 : index
    %c0_79 = arith.constant 0 : index
    %92 = vector.load %arg1[%c8_78, %c0_79] : memref<9x512xf32, #tpu.memory_space<vmem>>, vector<1x512xf32>
    %93 = vector.broadcast %92 : vector<1x512xf32> to vector<8x512xf32>
    %94 = arith.mulf %91, %93 : vector<8x512xf32>
    %c136_80 = arith.constant 136 : index
    %c0_81 = arith.constant 0 : index
    %95 = vector.load %arg15[%c136_80, %c0_81] : memref<216x512xf32, #tpu.memory_space<vmem>>, vector<8x512xf32>
    tpu.vector_store %arg15[%c136_80, %c0_81], %94 {strides = array<i32>} : memref<216x512xf32, #tpu.memory_space<vmem>>, vector<8x512xf32>,
    %c0_82 = arith.constant 0 : index
    %c183 = arith.constant 183 : index
    %96 = vector.load %arg14[%c0_82, %c183] : memref<8x768xf32, #tpu.memory_space<vmem>>, vector<8x512xf32>
    %c0_83 = arith.constant 0 : index
    %c0_84 = arith.constant 0 : index
    %97 = vector.load %arg1[%c0_83, %c0_84] : memref<9x512xf32, #tpu.memory_space<vmem>>, vector<1x512xf32>
    %98 = vector.broadcast %97 : vector<1x512xf32> to vector<8x512xf32>
    %99 = arith.mulf %96, %98 : vector<8x512xf32>
    %c144 = arith.constant 144 : index
    %c0_85 = arith.constant 0 : index
    %100 = vector.load %arg15[%c144, %c0_85] : memref<216x512xf32, #tpu.memory_space<vmem>>, vector<8x512xf32>
    tpu.vector_store %arg15[%c144, %c0_85], %99 {strides = array<i32>} : memref<216x512xf32, #tpu.memory_space<vmem>>, vector<8x512xf32>,
    %c0_86 = arith.constant 0 : index
    %c184 = arith.constant 184 : index
    %101 = vector.load %arg14[%c0_86, %c184] : memref<8x768xf32, #tpu.memory_space<vmem>>, vector<8x512xf32>
    %c1_87 = arith.constant 1 : index
    %c0_88 = arith.constant 0 : index
    %102 = vector.load %arg1[%c1_87, %c0_88] : memref<9x512xf32, #tpu.memory_space<vmem>>, vector<1x512xf32>
    %103 = vector.broadcast %102 : vector<1x512xf32> to vector<8x512xf32>
    %104 = arith.mulf %101, %103 : vector<8x512xf32>
    %c152 = arith.constant 152 : index
    %c0_89 = arith.constant 0 : index
    %105 = vector.load %arg15[%c152, %c0_89] : memref<216x512xf32, #tpu.memory_space<vmem>>, vector<8x512xf32>
    tpu.vector_store %arg15[%c152, %c0_89], %104 {strides = array<i32>} : memref<216x512xf32, #tpu.memory_space<vmem>>, vector<8x512xf32>,
    %c0_90 = arith.constant 0 : index
    %c185 = arith.constant 185 : index
    %106 = vector.load %arg14[%c0_90, %c185] : memref<8x768xf32, #tpu.memory_space<vmem>>, vector<8x512xf32>
    %c2_91 = arith.constant 2 : index
    %c0_92 = arith.constant 0 : index
    %107 = vector.load %arg1[%c2_91, %c0_92] : memref<9x512xf32, #tpu.memory_space<vmem>>, vector<1x512xf32>
    %108 = vector.broadcast %107 : vector<1x512xf32> to vector<8x512xf32>
    %109 = arith.mulf %106, %108 : vector<8x512xf32>
    %c160 = arith.constant 160 : index
    %c0_93 = arith.constant 0 : index
    %110 = vector.load %arg15[%c160, %c0_93] : memref<216x512xf32, #tpu.memory_space<vmem>>, vector<8x512xf32>
    tpu.vector_store %arg15[%c160, %c0_93], %109 {strides = array<i32>} : memref<216x512xf32, #tpu.memory_space<vmem>>, vector<8x512xf32>,
    %c0_94 = arith.constant 0 : index
    %c191 = arith.constant 191 : index
    %111 = vector.load %arg14[%c0_94, %c191] : memref<8x768xf32, #tpu.memory_space<vmem>>, vector<8x512xf32>
    %c3_95 = arith.constant 3 : index
    %c0_96 = arith.constant 0 : index
    %112 = vector.load %arg1[%c3_95, %c0_96] : memref<9x512xf32, #tpu.memory_space<vmem>>, vector<1x512xf32>
    %113 = vector.broadcast %112 : vector<1x512xf32> to vector<8x512xf32>
    %114 = arith.mulf %111, %113 : vector<8x512xf32>
    %c168 = arith.constant 168 : index
    %c0_97 = arith.constant 0 : index
    %115 = vector.load %arg15[%c168, %c0_97] : memref<216x512xf32, #tpu.memory_space<vmem>>, vector<8x512xf32>
    tpu.vector_store %arg15[%c168, %c0_97], %114 {strides = array<i32>} : memref<216x512xf32, #tpu.memory_space<vmem>>, vector<8x512xf32>,
    %c0_98 = arith.constant 0 : index
    %c192 = arith.constant 192 : index
    %116 = vector.load %arg14[%c0_98, %c192] : memref<8x768xf32, #tpu.memory_space<vmem>>, vector<8x512xf32>
    %c176 = arith.constant 176 : index
    %c0_99 = arith.constant 0 : index
    %117 = vector.load %arg15[%c176, %c0_99] : memref<216x512xf32, #tpu.memory_space<vmem>>, vector<8x512xf32>
    tpu.vector_store %arg15[%c176, %c0_99], %116 {strides = array<i32>} : memref<216x512xf32, #tpu.memory_space<vmem>>, vector<8x512xf32>,
    %c0_100 = arith.constant 0 : index
    %c193 = arith.constant 193 : index
    %118 = vector.load %arg14[%c0_100, %c193] : memref<8x768xf32, #tpu.memory_space<vmem>>, vector<8x512xf32>
    %c5_101 = arith.constant 5 : index
    %c0_102 = arith.constant 0 : index
    %119 = vector.load %arg1[%c5_101, %c0_102] : memref<9x512xf32, #tpu.memory_space<vmem>>, vector<1x512xf32>
    %120 = vector.broadcast %119 : vector<1x512xf32> to vector<8x512xf32>
    %121 = arith.mulf %118, %120 : vector<8x512xf32>
    %c184_103 = arith.constant 184 : index
    %c0_104 = arith.constant 0 : index
    %122 = vector.load %arg15[%c184_103, %c0_104] : memref<216x512xf32, #tpu.memory_space<vmem>>, vector<8x512xf32>
    tpu.vector_store %arg15[%c184_103, %c0_104], %121 {strides = array<i32>} : memref<216x512xf32, #tpu.memory_space<vmem>>, vector<8x512xf32>,
    %c0_105 = arith.constant 0 : index
    %c199 = arith.constant 199 : index
    %123 = vector.load %arg14[%c0_105, %c199] : memref<8x768xf32, #tpu.memory_space<vmem>>, vector<8x512xf32>
    %c6_106 = arith.constant 6 : index
    %c0_107 = arith.constant 0 : index
    %124 = vector.load %arg1[%c6_106, %c0_107] : memref<9x512xf32, #tpu.memory_space<vmem>>, vector<1x512xf32>
    %125 = vector.broadcast %124 : vector<1x512xf32> to vector<8x512xf32>
    %126 = arith.mulf %123, %125 : vector<8x512xf32>
    %c192_108 = arith.constant 192 : index
    %c0_109 = arith.constant 0 : index
    %127 = vector.load %arg15[%c192_108, %c0_109] : memref<216x512xf32, #tpu.memory_space<vmem>>, vector<8x512xf32>
    tpu.vector_store %arg15[%c192_108, %c0_109], %126 {strides = array<i32>} : memref<216x512xf32, #tpu.memory_space<vmem>>, vector<8x512xf32>,
    %c0_110 = arith.constant 0 : index
    %c200 = arith.constant 200 : index
    %128 = vector.load %arg14[%c0_110, %c200] : memref<8x768xf32, #tpu.memory_space<vmem>>, vector<8x512xf32>
    %c7_111 = arith.constant 7 : index
    %c0_112 = arith.constant 0 : index
    %129 = vector.load %arg1[%c7_111, %c0_112] : memref<9x512xf32, #tpu.memory_space<vmem>>, vector<1x512xf32>
    %130 = vector.broadcast %129 : vector<1x512xf32> to vector<8x512xf32>
    %131 = arith.mulf %128, %130 : vector<8x512xf32>
    %c200_113 = arith.constant 200 : index
    %c0_114 = arith.constant 0 : index
    %132 = vector.load %arg15[%c200_113, %c0_114] : memref<216x512xf32, #tpu.memory_space<vmem>>, vector<8x512xf32>
    tpu.vector_store %arg15[%c200_113, %c0_114], %131 {strides = array<i32>} : memref<216x512xf32, #tpu.memory_space<vmem>>, vector<8x512xf32>,
    %c0_115 = arith.constant 0 : index
    %c201 = arith.constant 201 : index
    %133 = vector.load %arg14[%c0_115, %c201] : memref<8x768xf32, #tpu.memory_space<vmem>>, vector<8x512xf32>
    %c8_116 = arith.constant 8 : index
    %c0_117 = arith.constant 0 : index
    %134 = vector.load %arg1[%c8_116, %c0_117] : memref<9x512xf32, #tpu.memory_space<vmem>>, vector<1x512xf32>
    %135 = vector.broadcast %134 : vector<1x512xf32> to vector<8x512xf32>
    %136 = arith.mulf %133, %135 : vector<8x512xf32>
    %c208 = arith.constant 208 : index
    %c0_118 = arith.constant 0 : index
    %137 = vector.load %arg15[%c208, %c0_118] : memref<216x512xf32, #tpu.memory_space<vmem>>, vector<8x512xf32>
    tpu.vector_store %arg15[%c208, %c0_118], %136 {strides = array<i32>} : memref<216x512xf32, #tpu.memory_space<vmem>>, vector<8x512xf32>,
    %c0_119 = arith.constant 0 : index
    %c0_120 = arith.constant 0 : index
    %138 = vector.load %arg3[%c0_119, %c0_120] : memref<8x216xf32, #tpu.memory_space<vmem>>, vector<8x216xf32>
    %c0_121 = arith.constant 0 : index
    %c0_122 = arith.constant 0 : index
    %139 = vector.load %arg15[%c0_121, %c0_122] : memref<216x512xf32, #tpu.memory_space<vmem>>, vector<216x512xf32>
    %cst_123 = arith.constant dense<0.000000e+00> : vector<8x512xf32>
    %140 = tpu.matmul %138, %139, %cst_123 {dimension_numbers = #tpu.dot_dimension_numbers<[1], [0], [0], [1], [0, 0, 1, 1], [], []>} : vector<8x216xf32>, vector<216x512xf32>, vector<8x512xf32> -> vector<8x512xf32>
    %c0_124 = arith.constant 0 : index
    %c0_125 = arith.constant 0 : index
    %141 = vector.load %arg4[%c0_124, %c0_125] : memref<8x1xf32, #tpu.memory_space<vmem>>, vector<8x1xf32>
    %142 = vector.broadcast %141 : vector<8x1xf32> to vector<8x512xf32>
    %143 = arith.addf %140, %142 : vector<8x512xf32>
    %cst_126 = arith.constant 0.000000e+00 : f32
    %144 = vector.broadcast %cst_126 : f32 to vector<8x512xf32>
    %145 = arith.maximumf %143, %144 : vector<8x512xf32>
    %c0_127 = arith.constant 0 : index
    %c128_128 = arith.constant 128 : index
    %146 = vector.load %arg14[%c0_127, %c128_128] : memref<8x768xf32, #tpu.memory_space<vmem>>, vector<8x512xf32>
    tpu.vector_store %arg14[%c0_127, %c128_128], %145 {strides = array<i32>} : memref<8x768xf32, #tpu.memory_space<vmem>>, vector<8x512xf32>,
    %c0_129 = arith.constant 0 : index
    %c55_130 = arith.constant 55 : index
    %147 = vector.load %arg14[%c0_129, %c55_130] : memref<8x768xf32, #tpu.memory_space<vmem>>, vector<8x512xf32>
    %c0_131 = arith.constant 0 : index
    %c0_132 = arith.constant 0 : index
    %148 = vector.load %arg1[%c0_131, %c0_132] : memref<9x512xf32, #tpu.memory_space<vmem>>, vector<1x512xf32>
    %149 = vector.broadcast %148 : vector<1x512xf32> to vector<8x512xf32>
    %150 = arith.mulf %147, %149 : vector<8x512xf32>
    %c0_133 = arith.constant 0 : index
    %c0_134 = arith.constant 0 : index
    %151 = vector.load %arg15[%c0_133, %c0_134] : memref<216x512xf32, #tpu.memory_space<vmem>>, vector<8x512xf32>
    tpu.vector_store %arg15[%c0_133, %c0_134], %150 {strides = array<i32>} : memref<216x512xf32, #tpu.memory_space<vmem>>, vector<8x512xf32>,
    %c0_135 = arith.constant 0 : index
    %c56_136 = arith.constant 56 : index
    %152 = vector.load %arg14[%c0_135, %c56_136] : memref<8x768xf32, #tpu.memory_space<vmem>>, vector<8x512xf32>
    %c1_137 = arith.constant 1 : index
    %c0_138 = arith.constant 0 : index
    %153 = vector.load %arg1[%c1_137, %c0_138] : memref<9x512xf32, #tpu.memory_space<vmem>>, vector<1x512xf32>
    %154 = vector.broadcast %153 : vector<1x512xf32> to vector<8x512xf32>
    %155 = arith.mulf %152, %154 : vector<8x512xf32>
    %c8_139 = arith.constant 8 : index
    %c0_140 = arith.constant 0 : index
    %156 = vector.load %arg15[%c8_139, %c0_140] : memref<216x512xf32, #tpu.memory_space<vmem>>, vector<8x512xf32>
    tpu.vector_store %arg15[%c8_139, %c0_140], %155 {strides = array<i32>} : memref<216x512xf32, #tpu.memory_space<vmem>>, vector<8x512xf32>,
    %c0_141 = arith.constant 0 : index
    %c57_142 = arith.constant 57 : index
    %157 = vector.load %arg14[%c0_141, %c57_142] : memref<8x768xf32, #tpu.memory_space<vmem>>, vector<8x512xf32>
    %c2_143 = arith.constant 2 : index
    %c0_144 = arith.constant 0 : index
    %158 = vector.load %arg1[%c2_143, %c0_144] : memref<9x512xf32, #tpu.memory_space<vmem>>, vector<1x512xf32>
    %159 = vector.broadcast %158 : vector<1x512xf32> to vector<8x512xf32>
    %160 = arith.mulf %157, %159 : vector<8x512xf32>
    %c16_145 = arith.constant 16 : index
    %c0_146 = arith.constant 0 : index
    %161 = vector.load %arg15[%c16_145, %c0_146] : memref<216x512xf32, #tpu.memory_space<vmem>>, vector<8x512xf32>
    tpu.vector_store %arg15[%c16_145, %c0_146], %160 {strides = array<i32>} : memref<216x512xf32, #tpu.memory_space<vmem>>, vector<8x512xf32>,
    %c0_147 = arith.constant 0 : index
    %c63_148 = arith.constant 63 : index
    %162 = vector.load %arg14[%c0_147, %c63_148] : memref<8x768xf32, #tpu.memory_space<vmem>>, vector<8x512xf32>
    %c3_149 = arith.constant 3 : index
    %c0_150 = arith.constant 0 : index
    %163 = vector.load %arg1[%c3_149, %c0_150] : memref<9x512xf32, #tpu.memory_space<vmem>>, vector<1x512xf32>
    %164 = vector.broadcast %163 : vector<1x512xf32> to vector<8x512xf32>
    %165 = arith.mulf %162, %164 : vector<8x512xf32>
    %c24_151 = arith.constant 24 : index
    %c0_152 = arith.constant 0 : index
    %166 = vector.load %arg15[%c24_151, %c0_152] : memref<216x512xf32, #tpu.memory_space<vmem>>, vector<8x512xf32>
    tpu.vector_store %arg15[%c24_151, %c0_152], %165 {strides = array<i32>} : memref<216x512xf32, #tpu.memory_space<vmem>>, vector<8x512xf32>,
    %c0_153 = arith.constant 0 : index
    %c64_154 = arith.constant 64 : index
    %167 = vector.load %arg14[%c0_153, %c64_154] : memref<8x768xf32, #tpu.memory_space<vmem>>, vector<8x512xf32>
    %c32_155 = arith.constant 32 : index
    %c0_156 = arith.constant 0 : index
    %168 = vector.load %arg15[%c32_155, %c0_156] : memref<216x512xf32, #tpu.memory_space<vmem>>, vector<8x512xf32>
    tpu.vector_store %arg15[%c32_155, %c0_156], %167 {strides = array<i32>} : memref<216x512xf32, #tpu.memory_space<vmem>>, vector<8x512xf32>,
    %c0_157 = arith.constant 0 : index
    %c65_158 = arith.constant 65 : index
    %169 = vector.load %arg14[%c0_157, %c65_158] : memref<8x768xf32, #tpu.memory_space<vmem>>, vector<8x512xf32>
    %c5_159 = arith.constant 5 : index
    %c0_160 = arith.constant 0 : index
    %170 = vector.load %arg1[%c5_159, %c0_160] : memref<9x512xf32, #tpu.memory_space<vmem>>, vector<1x512xf32>
    %171 = vector.broadcast %170 : vector<1x512xf32> to vector<8x512xf32>
    %172 = arith.mulf %169, %171 : vector<8x512xf32>
    %c40_161 = arith.constant 40 : index
    %c0_162 = arith.constant 0 : index
    %173 = vector.load %arg15[%c40_161, %c0_162] : memref<216x512xf32, #tpu.memory_space<vmem>>, vector<8x512xf32>
    tpu.vector_store %arg15[%c40_161, %c0_162], %172 {strides = array<i32>} : memref<216x512xf32, #tpu.memory_space<vmem>>, vector<8x512xf32>,
    %c0_163 = arith.constant 0 : index
    %c71_164 = arith.constant 71 : index
    %174 = vector.load %arg14[%c0_163, %c71_164] : memref<8x768xf32, #tpu.memory_space<vmem>>, vector<8x512xf32>
    %c6_165 = arith.constant 6 : index
    %c0_166 = arith.constant 0 : index
    %175 = vector.load %arg1[%c6_165, %c0_166] : memref<9x512xf32, #tpu.memory_space<vmem>>, vector<1x512xf32>
    %176 = vector.broadcast %175 : vector<1x512xf32> to vector<8x512xf32>
    %177 = arith.mulf %174, %176 : vector<8x512xf32>
    %c48_167 = arith.constant 48 : index
    %c0_168 = arith.constant 0 : index
    %178 = vector.load %arg15[%c48_167, %c0_168] : memref<216x512xf32, #tpu.memory_space<vmem>>, vector<8x512xf32>
    tpu.vector_store %arg15[%c48_167, %c0_168], %177 {strides = array<i32>} : memref<216x512xf32, #tpu.memory_space<vmem>>, vector<8x512xf32>,
    %c0_169 = arith.constant 0 : index
    %c72_170 = arith.constant 72 : index
    %179 = vector.load %arg14[%c0_169, %c72_170] : memref<8x768xf32, #tpu.memory_space<vmem>>, vector<8x512xf32>
    %c7_171 = arith.constant 7 : index
    %c0_172 = arith.constant 0 : index
    %180 = vector.load %arg1[%c7_171, %c0_172] : memref<9x512xf32, #tpu.memory_space<vmem>>, vector<1x512xf32>
    %181 = vector.broadcast %180 : vector<1x512xf32> to vector<8x512xf32>
    %182 = arith.mulf %179, %181 : vector<8x512xf32>
    %c56_173 = arith.constant 56 : index
    %c0_174 = arith.constant 0 : index
    %183 = vector.load %arg15[%c56_173, %c0_174] : memref<216x512xf32, #tpu.memory_space<vmem>>, vector<8x512xf32>
    tpu.vector_store %arg15[%c56_173, %c0_174], %182 {strides = array<i32>} : memref<216x512xf32, #tpu.memory_space<vmem>>, vector<8x512xf32>,
    %c0_175 = arith.constant 0 : index
    %c73_176 = arith.constant 73 : index
    %184 = vector.load %arg14[%c0_175, %c73_176] : memref<8x768xf32, #tpu.memory_space<vmem>>, vector<8x512xf32>
    %c8_177 = arith.constant 8 : index
    %c0_178 = arith.constant 0 : index
    %185 = vector.load %arg1[%c8_177, %c0_178] : memref<9x512xf32, #tpu.memory_space<vmem>>, vector<1x512xf32>
    %186 = vector.broadcast %185 : vector<1x512xf32> to vector<8x512xf32>
    %187 = arith.mulf %184, %186 : vector<8x512xf32>
    %c64_179 = arith.constant 64 : index
    %c0_180 = arith.constant 0 : index
    %188 = vector.load %arg15[%c64_179, %c0_180] : memref<216x512xf32, #tpu.memory_space<vmem>>, vector<8x512xf32>
    tpu.vector_store %arg15[%c64_179, %c0_180], %187 {strides = array<i32>} : memref<216x512xf32, #tpu.memory_space<vmem>>, vector<8x512xf32>,
    %c0_181 = arith.constant 0 : index
    %c119_182 = arith.constant 119 : index
    %189 = vector.load %arg14[%c0_181, %c119_182] : memref<8x768xf32, #tpu.memory_space<vmem>>, vector<8x512xf32>
    %c0_183 = arith.constant 0 : index
    %c0_184 = arith.constant 0 : index
    %190 = vector.load %arg1[%c0_183, %c0_184] : memref<9x512xf32, #tpu.memory_space<vmem>>, vector<1x512xf32>
    %191 = vector.broadcast %190 : vector<1x512xf32> to vector<8x512xf32>
    %192 = arith.mulf %189, %191 : vector<8x512xf32>
    %c72_185 = arith.constant 72 : index
    %c0_186 = arith.constant 0 : index
    %193 = vector.load %arg15[%c72_185, %c0_186] : memref<216x512xf32, #tpu.memory_space<vmem>>, vector<8x512xf32>
    tpu.vector_store %arg15[%c72_185, %c0_186], %192 {strides = array<i32>} : memref<216x512xf32, #tpu.memory_space<vmem>>, vector<8x512xf32>,
    %c0_187 = arith.constant 0 : index
    %c120_188 = arith.constant 120 : index
    %194 = vector.load %arg14[%c0_187, %c120_188] : memref<8x768xf32, #tpu.memory_space<vmem>>, vector<8x512xf32>
    %c1_189 = arith.constant 1 : index
    %c0_190 = arith.constant 0 : index
    %195 = vector.load %arg1[%c1_189, %c0_190] : memref<9x512xf32, #tpu.memory_space<vmem>>, vector<1x512xf32>
    %196 = vector.broadcast %195 : vector<1x512xf32> to vector<8x512xf32>
    %197 = arith.mulf %194, %196 : vector<8x512xf32>
    %c80_191 = arith.constant 80 : index
    %c0_192 = arith.constant 0 : index
    %198 = vector.load %arg15[%c80_191, %c0_192] : memref<216x512xf32, #tpu.memory_space<vmem>>, vector<8x512xf32>
    tpu.vector_store %arg15[%c80_191, %c0_192], %197 {strides = array<i32>} : memref<216x512xf32, #tpu.memory_space<vmem>>, vector<8x512xf32>,
    %c0_193 = arith.constant 0 : index
    %c121_194 = arith.constant 121 : index
    %199 = vector.load %arg14[%c0_193, %c121_194] : memref<8x768xf32, #tpu.memory_space<vmem>>, vector<8x512xf32>
    %c2_195 = arith.constant 2 : index
    %c0_196 = arith.constant 0 : index
    %200 = vector.load %arg1[%c2_195, %c0_196] : memref<9x512xf32, #tpu.memory_space<vmem>>, vector<1x512xf32>
    %201 = vector.broadcast %200 : vector<1x512xf32> to vector<8x512xf32>
    %202 = arith.mulf %199, %201 : vector<8x512xf32>
    %c88_197 = arith.constant 88 : index
    %c0_198 = arith.constant 0 : index
    %203 = vector.load %arg15[%c88_197, %c0_198] : memref<216x512xf32, #tpu.memory_space<vmem>>, vector<8x512xf32>
    tpu.vector_store %arg15[%c88_197, %c0_198], %202 {strides = array<i32>} : memref<216x512xf32, #tpu.memory_space<vmem>>, vector<8x512xf32>,
    %c0_199 = arith.constant 0 : index
    %c127_200 = arith.constant 127 : index
    %204 = vector.load %arg14[%c0_199, %c127_200] : memref<8x768xf32, #tpu.memory_space<vmem>>, vector<8x512xf32>
    %c3_201 = arith.constant 3 : index
    %c0_202 = arith.constant 0 : index
    %205 = vector.load %arg1[%c3_201, %c0_202] : memref<9x512xf32, #tpu.memory_space<vmem>>, vector<1x512xf32>
    %206 = vector.broadcast %205 : vector<1x512xf32> to vector<8x512xf32>
    %207 = arith.mulf %204, %206 : vector<8x512xf32>
    %c96_203 = arith.constant 96 : index
    %c0_204 = arith.constant 0 : index
    %208 = vector.load %arg15[%c96_203, %c0_204] : memref<216x512xf32, #tpu.memory_space<vmem>>, vector<8x512xf32>
    tpu.vector_store %arg15[%c96_203, %c0_204], %207 {strides = array<i32>} : memref<216x512xf32, #tpu.memory_space<vmem>>, vector<8x512xf32>,
    %c0_205 = arith.constant 0 : index
    %c128_206 = arith.constant 128 : index
    %209 = vector.load %arg14[%c0_205, %c128_206] : memref<8x768xf32, #tpu.memory_space<vmem>>, vector<8x512xf32>
    %c104_207 = arith.constant 104 : index
    %c0_208 = arith.constant 0 : index
    %210 = vector.load %arg15[%c104_207, %c0_208] : memref<216x512xf32, #tpu.memory_space<vmem>>, vector<8x512xf32>
    tpu.vector_store %arg15[%c104_207, %c0_208], %209 {strides = array<i32>} : memref<216x512xf32, #tpu.memory_space<vmem>>, vector<8x512xf32>,
    %c0_209 = arith.constant 0 : index
    %c129_210 = arith.constant 129 : index
    %211 = vector.load %arg14[%c0_209, %c129_210] : memref<8x768xf32, #tpu.memory_space<vmem>>, vector<8x512xf32>
    %c5_211 = arith.constant 5 : index
    %c0_212 = arith.constant 0 : index
    %212 = vector.load %arg1[%c5_211, %c0_212] : memref<9x512xf32, #tpu.memory_space<vmem>>, vector<1x512xf32>
    %213 = vector.broadcast %212 : vector<1x512xf32> to vector<8x512xf32>
    %214 = arith.mulf %211, %213 : vector<8x512xf32>
    %c112_213 = arith.constant 112 : index
    %c0_214 = arith.constant 0 : index
    %215 = vector.load %arg15[%c112_213, %c0_214] : memref<216x512xf32, #tpu.memory_space<vmem>>, vector<8x512xf32>
    tpu.vector_store %arg15[%c112_213, %c0_214], %214 {strides = array<i32>} : memref<216x512xf32, #tpu.memory_space<vmem>>, vector<8x512xf32>,
    %c0_215 = arith.constant 0 : index
    %c135_216 = arith.constant 135 : index
    %216 = vector.load %arg14[%c0_215, %c135_216] : memref<8x768xf32, #tpu.memory_space<vmem>>, vector<8x512xf32>
    %c6_217 = arith.constant 6 : index
    %c0_218 = arith.constant 0 : index
    %217 = vector.load %arg1[%c6_217, %c0_218] : memref<9x512xf32, #tpu.memory_space<vmem>>, vector<1x512xf32>
    %218 = vector.broadcast %217 : vector<1x512xf32> to vector<8x512xf32>
    %219 = arith.mulf %216, %218 : vector<8x512xf32>
    %c120_219 = arith.constant 120 : index
    %c0_220 = arith.constant 0 : index
    %220 = vector.load %arg15[%c120_219, %c0_220] : memref<216x512xf32, #tpu.memory_space<vmem>>, vector<8x512xf32>
    tpu.vector_store %arg15[%c120_219, %c0_220], %219 {strides = array<i32>} : memref<216x512xf32, #tpu.memory_space<vmem>>, vector<8x512xf32>,
    %c0_221 = arith.constant 0 : index
    %c136_222 = arith.constant 136 : index
    %221 = vector.load %arg14[%c0_221, %c136_222] : memref<8x768xf32, #tpu.memory_space<vmem>>, vector<8x512xf32>
    %c7_223 = arith.constant 7 : index
    %c0_224 = arith.constant 0 : index
    %222 = vector.load %arg1[%c7_223, %c0_224] : memref<9x512xf32, #tpu.memory_space<vmem>>, vector<1x512xf32>
    %223 = vector.broadcast %222 : vector<1x512xf32> to vector<8x512xf32>
    %224 = arith.mulf %221, %223 : vector<8x512xf32>
    %c128_225 = arith.constant 128 : index
    %c0_226 = arith.constant 0 : index
    %225 = vector.load %arg15[%c128_225, %c0_226] : memref<216x512xf32, #tpu.memory_space<vmem>>, vector<8x512xf32>
    tpu.vector_store %arg15[%c128_225, %c0_226], %224 {strides = array<i32>} : memref<216x512xf32, #tpu.memory_space<vmem>>, vector<8x512xf32>,
    %c0_227 = arith.constant 0 : index
    %c137_228 = arith.constant 137 : index
    %226 = vector.load %arg14[%c0_227, %c137_228] : memref<8x768xf32, #tpu.memory_space<vmem>>, vector<8x512xf32>
    %c8_229 = arith.constant 8 : index
    %c0_230 = arith.constant 0 : index
    %227 = vector.load %arg1[%c8_229, %c0_230] : memref<9x512xf32, #tpu.memory_space<vmem>>, vector<1x512xf32>
    %228 = vector.broadcast %227 : vector<1x512xf32> to vector<8x512xf32>
    %229 = arith.mulf %226, %228 : vector<8x512xf32>
    %c136_231 = arith.constant 136 : index
    %c0_232 = arith.constant 0 : index
    %230 = vector.load %arg15[%c136_231, %c0_232] : memref<216x512xf32, #tpu.memory_space<vmem>>, vector<8x512xf32>
    tpu.vector_store %arg15[%c136_231, %c0_232], %229 {strides = array<i32>} : memref<216x512xf32, #tpu.memory_space<vmem>>, vector<8x512xf32>,
    %c0_233 = arith.constant 0 : index
    %c183_234 = arith.constant 183 : index
    %231 = vector.load %arg14[%c0_233, %c183_234] : memref<8x768xf32, #tpu.memory_space<vmem>>, vector<8x512xf32>
    %c0_235 = arith.constant 0 : index
    %c0_236 = arith.constant 0 : index
    %232 = vector.load %arg1[%c0_235, %c0_236] : memref<9x512xf32, #tpu.memory_space<vmem>>, vector<1x512xf32>
    %233 = vector.broadcast %232 : vector<1x512xf32> to vector<8x512xf32>
    %234 = arith.mulf %231, %233 : vector<8x512xf32>
    %c144_237 = arith.constant 144 : index
    %c0_238 = arith.constant 0 : index
    %235 = vector.load %arg15[%c144_237, %c0_238] : memref<216x512xf32, #tpu.memory_space<vmem>>, vector<8x512xf32>
    tpu.vector_store %arg15[%c144_237, %c0_238], %234 {strides = array<i32>} : memref<216x512xf32, #tpu.memory_space<vmem>>, vector<8x512xf32>,
    %c0_239 = arith.constant 0 : index
    %c184_240 = arith.constant 184 : index
    %236 = vector.load %arg14[%c0_239, %c184_240] : memref<8x768xf32, #tpu.memory_space<vmem>>, vector<8x512xf32>
    %c1_241 = arith.constant 1 : index
    %c0_242 = arith.constant 0 : index
    %237 = vector.load %arg1[%c1_241, %c0_242] : memref<9x512xf32, #tpu.memory_space<vmem>>, vector<1x512xf32>
    %238 = vector.broadcast %237 : vector<1x512xf32> to vector<8x512xf32>
    %239 = arith.mulf %236, %238 : vector<8x512xf32>
    %c152_243 = arith.constant 152 : index
    %c0_244 = arith.constant 0 : index
    %240 = vector.load %arg15[%c152_243, %c0_244] : memref<216x512xf32, #tpu.memory_space<vmem>>, vector<8x512xf32>
    tpu.vector_store %arg15[%c152_243, %c0_244], %239 {strides = array<i32>} : memref<216x512xf32, #tpu.memory_space<vmem>>, vector<8x512xf32>,
    %c0_245 = arith.constant 0 : index
    %c185_246 = arith.constant 185 : index
    %241 = vector.load %arg14[%c0_245, %c185_246] : memref<8x768xf32, #tpu.memory_space<vmem>>, vector<8x512xf32>
    %c2_247 = arith.constant 2 : index
    %c0_248 = arith.constant 0 : index
    %242 = vector.load %arg1[%c2_247, %c0_248] : memref<9x512xf32, #tpu.memory_space<vmem>>, vector<1x512xf32>
    %243 = vector.broadcast %242 : vector<1x512xf32> to vector<8x512xf32>
    %244 = arith.mulf %241, %243 : vector<8x512xf32>
    %c160_249 = arith.constant 160 : index
    %c0_250 = arith.constant 0 : index
    %245 = vector.load %arg15[%c160_249, %c0_250] : memref<216x512xf32, #tpu.memory_space<vmem>>, vector<8x512xf32>
    tpu.vector_store %arg15[%c160_249, %c0_250], %244 {strides = array<i32>} : memref<216x512xf32, #tpu.memory_space<vmem>>, vector<8x512xf32>,
    %c0_251 = arith.constant 0 : index
    %c191_252 = arith.constant 191 : index
    %246 = vector.load %arg14[%c0_251, %c191_252] : memref<8x768xf32, #tpu.memory_space<vmem>>, vector<8x512xf32>
    %c3_253 = arith.constant 3 : index
    %c0_254 = arith.constant 0 : index
    %247 = vector.load %arg1[%c3_253, %c0_254] : memref<9x512xf32, #tpu.memory_space<vmem>>, vector<1x512xf32>
    %248 = vector.broadcast %247 : vector<1x512xf32> to vector<8x512xf32>
    %249 = arith.mulf %246, %248 : vector<8x512xf32>
    %c168_255 = arith.constant 168 : index
    %c0_256 = arith.constant 0 : index
    %250 = vector.load %arg15[%c168_255, %c0_256] : memref<216x512xf32, #tpu.memory_space<vmem>>, vector<8x512xf32>
    tpu.vector_store %arg15[%c168_255, %c0_256], %249 {strides = array<i32>} : memref<216x512xf32, #tpu.memory_space<vmem>>, vector<8x512xf32>,
    %c0_257 = arith.constant 0 : index
    %c192_258 = arith.constant 192 : index
    %251 = vector.load %arg14[%c0_257, %c192_258] : memref<8x768xf32, #tpu.memory_space<vmem>>, vector<8x512xf32>
    %c176_259 = arith.constant 176 : index
    %c0_260 = arith.constant 0 : index
    %252 = vector.load %arg15[%c176_259, %c0_260] : memref<216x512xf32, #tpu.memory_space<vmem>>, vector<8x512xf32>
    tpu.vector_store %arg15[%c176_259, %c0_260], %251 {strides = array<i32>} : memref<216x512xf32, #tpu.memory_space<vmem>>, vector<8x512xf32>,
    %c0_261 = arith.constant 0 : index
    %c193_262 = arith.constant 193 : index
    %253 = vector.load %arg14[%c0_261, %c193_262] : memref<8x768xf32, #tpu.memory_space<vmem>>, vector<8x512xf32>
    %c5_263 = arith.constant 5 : index
    %c0_264 = arith.constant 0 : index
    %254 = vector.load %arg1[%c5_263, %c0_264] : memref<9x512xf32, #tpu.memory_space<vmem>>, vector<1x512xf32>
    %255 = vector.broadcast %254 : vector<1x512xf32> to vector<8x512xf32>
    %256 = arith.mulf %253, %255 : vector<8x512xf32>
    %c184_265 = arith.constant 184 : index
    %c0_266 = arith.constant 0 : index
    %257 = vector.load %arg15[%c184_265, %c0_266] : memref<216x512xf32, #tpu.memory_space<vmem>>, vector<8x512xf32>
    tpu.vector_store %arg15[%c184_265, %c0_266], %256 {strides = array<i32>} : memref<216x512xf32, #tpu.memory_space<vmem>>, vector<8x512xf32>,
    %c0_267 = arith.constant 0 : index
    %c199_268 = arith.constant 199 : index
    %258 = vector.load %arg14[%c0_267, %c199_268] : memref<8x768xf32, #tpu.memory_space<vmem>>, vector<8x512xf32>
    %c6_269 = arith.constant 6 : index
    %c0_270 = arith.constant 0 : index
    %259 = vector.load %arg1[%c6_269, %c0_270] : memref<9x512xf32, #tpu.memory_space<vmem>>, vector<1x512xf32>
    %260 = vector.broadcast %259 : vector<1x512xf32> to vector<8x512xf32>
    %261 = arith.mulf %258, %260 : vector<8x512xf32>
    %c192_271 = arith.constant 192 : index
    %c0_272 = arith.constant 0 : index
    %262 = vector.load %arg15[%c192_271, %c0_272] : memref<216x512xf32, #tpu.memory_space<vmem>>, vector<8x512xf32>
    tpu.vector_store %arg15[%c192_271, %c0_272], %261 {strides = array<i32>} : memref<216x512xf32, #tpu.memory_space<vmem>>, vector<8x512xf32>,
    %c0_273 = arith.constant 0 : index
    %c200_274 = arith.constant 200 : index
    %263 = vector.load %arg14[%c0_273, %c200_274] : memref<8x768xf32, #tpu.memory_space<vmem>>, vector<8x512xf32>
    %c7_275 = arith.constant 7 : index
    %c0_276 = arith.constant 0 : index
    %264 = vector.load %arg1[%c7_275, %c0_276] : memref<9x512xf32, #tpu.memory_space<vmem>>, vector<1x512xf32>
    %265 = vector.broadcast %264 : vector<1x512xf32> to vector<8x512xf32>
    %266 = arith.mulf %263, %265 : vector<8x512xf32>
    %c200_277 = arith.constant 200 : index
    %c0_278 = arith.constant 0 : index
    %267 = vector.load %arg15[%c200_277, %c0_278] : memref<216x512xf32, #tpu.memory_space<vmem>>, vector<8x512xf32>
    tpu.vector_store %arg15[%c200_277, %c0_278], %266 {strides = array<i32>} : memref<216x512xf32, #tpu.memory_space<vmem>>, vector<8x512xf32>,
    %c0_279 = arith.constant 0 : index
    %c201_280 = arith.constant 201 : index
    %268 = vector.load %arg14[%c0_279, %c201_280] : memref<8x768xf32, #tpu.memory_space<vmem>>, vector<8x512xf32>
    %c8_281 = arith.constant 8 : index
    %c0_282 = arith.constant 0 : index
    %269 = vector.load %arg1[%c8_281, %c0_282] : memref<9x512xf32, #tpu.memory_space<vmem>>, vector<1x512xf32>
    %270 = vector.broadcast %269 : vector<1x512xf32> to vector<8x512xf32>
    %271 = arith.mulf %268, %270 : vector<8x512xf32>
    %c208_283 = arith.constant 208 : index
    %c0_284 = arith.constant 0 : index
    %272 = vector.load %arg15[%c208_283, %c0_284] : memref<216x512xf32, #tpu.memory_space<vmem>>, vector<8x512xf32>
    tpu.vector_store %arg15[%c208_283, %c0_284], %271 {strides = array<i32>} : memref<216x512xf32, #tpu.memory_space<vmem>>, vector<8x512xf32>,
    %c0_285 = arith.constant 0 : index
    %c0_286 = arith.constant 0 : index
    %273 = vector.load %arg5[%c0_285, %c0_286] : memref<8x216xf32, #tpu.memory_space<vmem>>, vector<8x216xf32>
    %c0_287 = arith.constant 0 : index
    %c0_288 = arith.constant 0 : index
    %274 = vector.load %arg15[%c0_287, %c0_288] : memref<216x512xf32, #tpu.memory_space<vmem>>, vector<216x512xf32>
    %cst_289 = arith.constant dense<0.000000e+00> : vector<8x512xf32>
    %275 = tpu.matmul %273, %274, %cst_289 {dimension_numbers = #tpu.dot_dimension_numbers<[1], [0], [0], [1], [0, 0, 1, 1], [], []>} : vector<8x216xf32>, vector<216x512xf32>, vector<8x512xf32> -> vector<8x512xf32>
    %c0_290 = arith.constant 0 : index
    %c0_291 = arith.constant 0 : index
    %276 = vector.load %arg6[%c0_290, %c0_291] : memref<8x1xf32, #tpu.memory_space<vmem>>, vector<8x1xf32>
    %277 = vector.broadcast %276 : vector<8x1xf32> to vector<8x512xf32>
    %278 = arith.addf %275, %277 : vector<8x512xf32>
    %cst_292 = arith.constant dense<0.000000e+00> : vector<8xf32>
    %279 = vector.multi_reduction <add>, %278, %cst_292 [1] : vector<8x512xf32> to vector<8xf32>
    %280 = vector.shape_cast %279 : vector<8xf32> to vector<8x1xf32>
    %cst_293 = arith.constant 5.120000e+02 : f32
    %281 = vector.broadcast %cst_293 : f32 to vector<8x1xf32>
    %282 = arith.divf %280, %281 : vector<8x1xf32>
    %c0_294 = arith.constant 0 : index
    %c0_295 = arith.constant 0 : index
    %283 = vector.load %arg9[%c0_294, %c0_295] : memref<8x2xf32, #tpu.memory_space<vmem>>, vector<8x2xf32>
    %284 = vector.broadcast %282 : vector<8x1xf32> to vector<8x2xf32>
    %285 = arith.mulf %284, %283 : vector<8x2xf32>
    %cst_296 = arith.constant dense<0.000000e+00> : vector<2xf32>
    %286 = vector.multi_reduction <add>, %285, %cst_296 [0] : vector<8x2xf32> to vector<2xf32>
    %287 = vector.shape_cast %286 : vector<2xf32> to vector<1x2xf32>
    %c0_297 = arith.constant 0 : index
    %c0_298 = arith.constant 0 : index
    %288 = vector.load %arg10[%c0_297, %c0_298] : memref<1x2xf32, #tpu.memory_space<vmem>>, vector<1x2xf32>
    %289 = arith.addf %287, %288 : vector<1x2xf32>
    %cst_299 = arith.constant 0.000000e+00 : f32
    %290 = vector.broadcast %cst_299 : f32 to vector<1x2xf32>
    %291 = arith.maximumf %289, %290 : vector<1x2xf32>
    %c0_300 = arith.constant 0 : index
    %c0_301 = arith.constant 0 : index
    %292 = vector.load %arg11[%c0_300, %c0_301] : memref<8x2xf32, #tpu.memory_space<vmem>>, vector<8x2xf32>
    %293 = vector.broadcast %291 : vector<1x2xf32> to vector<8x2xf32>
    %294 = arith.mulf %292, %293 : vector<8x2xf32>
    %cst_302 = arith.constant dense<0.000000e+00> : vector<8xf32>
    %295 = vector.multi_reduction <add>, %294, %cst_302 [1] : vector<8x2xf32> to vector<8xf32>
    %296 = vector.shape_cast %295 : vector<8xf32> to vector<8x1xf32>
    %c0_303 = arith.constant 0 : index
    %c0_304 = arith.constant 0 : index
    %297 = vector.load %arg12[%c0_303, %c0_304] : memref<8x1xf32, #tpu.memory_space<vmem>>, vector<8x1xf32>
    %298 = arith.addf %296, %297 : vector<8x1xf32>
    %299 = arith.negf %298 : vector<8x1xf32>
    %300 = math.exp %299 : vector<8x1xf32>
    %cst_305 = arith.constant 1.000000e+00 : f32
    %301 = vector.broadcast %cst_305 : f32 to vector<8x1xf32>
    %302 = arith.addf %301, %300 : vector<8x1xf32>
    %303 = arith.divf %301, %302 : vector<8x1xf32>
    %304 = vector.broadcast %303 : vector<8x1xf32> to vector<8x512xf32>
    %305 = arith.mulf %278, %304 : vector<8x512xf32>
    %306 = arith.addf %305, %6 : vector<8x512xf32>
    %cst_306 = arith.constant 0.000000e+00 : f32
    %307 = vector.broadcast %cst_306 : f32 to vector<8x512xf32>
    %308 = arith.maximumf %306, %307 : vector<8x512xf32>
    %c0_307 = arith.constant 0 : index
    %c0_308 = arith.constant 0 : index
    %c0_309 = arith.constant 0 : index
    %309 = vector.load %arg13[%c0_307, %c0_308, %c0_309] : memref<1x8x512xf32, #tpu.memory_space<vmem>>, vector<1x8x512xf32>
    %310 = vector.shape_cast %309 : vector<1x8x512xf32> to vector<8x512xf32>
    %311 = vector.shape_cast %308 : vector<8x512xf32> to vector<1x8x512xf32>
    tpu.vector_store %arg13[%c0_307, %c0_308, %c0_309], %311 {strides = array<i32>} : memref<1x8x512xf32, #tpu.memory_space<vmem>>, vector<1x8x512xf32>,
    return
  }
  func.func @transform_0(%arg0: i32) -> (i32, i32) {
    %c0_i32 = arith.constant 0 : i32
    %c0_i32_0 = arith.constant 0 : i32
    %c0_i32_1 = arith.constant 0 : i32
    return %c0_i32, %c0_i32_0 : i32, i32
  }
  func.func @transform_1(%arg0: i32) -> (i32, i32, i32) {
    %c0_i32 = arith.constant 0 : i32
    %c0_i32_0 = arith.constant 0 : i32
    %c0_i32_1 = arith.constant 0 : i32
    return %arg0, %c0_i32, %c0_i32_0 : i32, i32, i32
  }
  func.func @transform_2(%arg0: i32) -> (i32, i32) {
    %c0_i32 = arith.constant 0 : i32
    %c0_i32_0 = arith.constant 0 : i32
    %c0_i32_1 = arith.constant 0 : i32
    return %c0_i32, %c0_i32_0 : i32, i32
  }
  func.func @transform_3(%arg0: i32) -> (i32, i32) {
    %c0_i32 = arith.constant 0 : i32
    %c0_i32_0 = arith.constant 0 : i32
    %c0_i32_1 = arith.constant 0 : i32
    return %c0_i32, %c0_i32_0 : i32, i32
  }
  func.func @transform_4(%arg0: i32) -> (i32, i32) {
    %c0_i32 = arith.constant 0 : i32
    %c0_i32_0 = arith.constant 0 : i32
    %c0_i32_1 = arith.constant 0 : i32
    return %c0_i32, %c0_i32_0 : i32, i32
  }
  func.func @transform_5(%arg0: i32) -> (i32, i32) {
    %c0_i32 = arith.constant 0 : i32
    %c0_i32_0 = arith.constant 0 : i32
    %c0_i32_1 = arith.constant 0 : i32
    return %c0_i32, %c0_i32_0 : i32, i32
  }
  func.func @transform_6(%arg0: i32) -> (i32, i32) {
    %c0_i32 = arith.constant 0 : i32
    %c0_i32_0 = arith.constant 0 : i32
    %c0_i32_1 = arith.constant 0 : i32
    return %c0_i32, %c0_i32_0 : i32, i32
  }
  func.func @transform_7(%arg0: i32) -> (i32, i32) {
    %c0_i32 = arith.constant 0 : i32
    %c0_i32_0 = arith.constant 0 : i32
    %c0_i32_1 = arith.constant 0 : i32
    return %c0_i32, %c0_i32_0 : i32, i32
  }
  func.func @transform_8(%arg0: i32) -> (i32, i32) {
    %c0_i32 = arith.constant 0 : i32
    %c0_i32_0 = arith.constant 0 : i32
    %c0_i32_1 = arith.constant 0 : i32
    return %c0_i32, %c0_i32_0 : i32, i32
  }
  func.func @transform_9(%arg0: i32) -> (i32, i32) {
    %c0_i32 = arith.constant 0 : i32
    %c0_i32_0 = arith.constant 0 : i32
    %c0_i32_1 = arith.constant 0 : i32
    return %c0_i32, %c0_i32_0 : i32, i32
  }
  func.func @transform_10(%arg0: i32) -> (i32, i32) {
    %c0_i32 = arith.constant 0 : i32
    %c0_i32_0 = arith.constant 0 : i32
    %c0_i32_1 = arith.constant 0 : i32
    return %c0_i32, %c0_i32_0 : i32, i32
  }
  func.func @transform_11(%arg0: i32) -> (i32, i32) {
    %c0_i32 = arith.constant 0 : i32
    %c0_i32_0 = arith.constant 0 : i32
    %c0_i32_1 = arith.constant 0 : i32
    return %c0_i32, %c0_i32_0 : i32, i32
  }
  func.func @transform_12(%arg0: i32) -> (i32, i32, i32) {
    %c0_i32 = arith.constant 0 : i32
    %c0_i32_0 = arith.constant 0 : i32
    %c0_i32_1 = arith.constant 0 : i32
    return %arg0, %c0_i32, %c0_i32_0 : i32, i32, i32
  }
}

</mosaic_0001>

<bundles_post_ra>
// kernel: tpu_custom_call.1
= control target key start
LH: loop header
LB: loop body
LE: loop exit
PB: predicated region body
PF: predicated region fallthrough
CT: control target
= control target key end

     0   :  { %s7379_s0 = inlined_call_operand.hbm [shape: f32[9,512], index: 0, kind: input, shape index: {}]   ;;  %s7380_s1 = inlined_call_operand.hbm [shape: f32[2,8,512], index: 1, kind: input, shape index: {}]   ;;  %s7381_s2 = inlined_call_operand.vmem [shape: f32[8,216], index: 2, kind: input, shape index: {}]   ;;  %s7382_s3 = inlined_call_operand.vmem [shape: f32[8,1], index: 3, kind: input, shape index: {}]   ;;  %s7383_s4 = inlined_call_operand.vmem [shape: f32[8,216], index: 4, kind: input, shape index: {}]   ;;  %s7384_s5 = inlined_call_operand.vmem [shape: f32[8,1], index: 5, kind: input, shape index: {}]   ;;  %s7385_s6 = inlined_call_operand.vmem [shape: f32[8,8], index: 6, kind: input, shape index: {}]   ;;  %s7386_s7 = inlined_call_operand.vmem [shape: f32[8,1], index: 7, kind: input, shape index: {}]   ;;  %s7387_s8 = inlined_call_operand.vmem [shape: f32[8,2], index: 8, kind: input, shape index: {}]   ;;  %s7388_s9 = inlined_call_operand.vmem [shape: f32[1,2], index: 9, kind: input, shape index: {}]   ;;  %s7389_s10 = inlined_call_operand.vmem [shape: f32[8,2], index: 10, kind: input, shape index: {}]   ;;  %s7390_s11 = inlined_call_operand.vmem [shape: f32[8,1], index: 11, kind: input, shape index: {}]   ;;  %s7391_s12 = inlined_call_operand.hbm [shape: f32[2,8,512], index: 12, kind: output, shape index: {}]  }
   0x1   :  { %7463 = sst [smem:[#allocation33_spill]] %s7379_s0 }
   0x2   :  { %17 = vsyncpa [#allocation5], 0 }
   0x3   :  { %18 = vsyncpa [#allocation8], 0 }
   0x4   :  { %20 = vsyncpa [#allocation8 + $0x1], 0 }
   0x5   :  { %21 = vsyncpa [#allocation6], 0 }
   0x6   :  { %23 = vsyncpa [#allocation6 + $0x1], 0  ;;  %s5160_s21 = smov 0   ;;  %s5162_s22 = smov 0  }
   0x7   :  { %s5164_s23 = smov 0   ;;  %s5166_s24 = smov 0  }
   0x8 LB: > { %7464 = sst [smem:[#allocation13_spill]] %s5058_s21  ;;  %s5184_s28 = sadd.s32 4294967295, %s5070_s24   ;;  %s5070_s24 = sphi %s5166_s24, %s7622_s24   ;;  %s5066_s23 = sphi %s5164_s23, %s7624_s23   ;;  %s5062_s22 = sphi %s5162_s22, %s7626_s22   ;;  %s5058_s21 = sphi %s5160_s21, %s7625_s21  }
   0x9   : > { %7465 = sst [smem:[#allocation14_spill]] %s5066_s23  ;;  %p4290_p0 = scmp.ge.s32.totalorder %s5070_s24, 1 }
   0xa   : > { %s7466_s0 = sld [smem:[#allocation33_spill]]  ;;  %p71_p1 = scmp.eq.s32.totalorder %s5184_s28, 0 }
   0xb   : > { %p317_p2 = scmp.lt.s32.totalorder %s5070_s24, 3  ;;  %s5072_s30 = smov [#allocation4]  }
   0xc   : > { %s330_s13 = sshll.u32 %s5072_s30, 4  ;;  %s5073_s14 = smov 512   ;;  %s331_s13 = int_to_ptr.vmem [resolvable:$true] %s330_s13 }
   0xd   : > { %p5189_p3 = pnand %p4290_p0, %p317_p2  ;;  %s5074_s15 = smov 32  }
   0xe   : > { %s4289_s16 = sadd.s32 4294967294, %s5070_s24   ;;  %s5200_s17 = sadd.s32 1, %s5070_s24  }
   0xf   : > { %p4328_p4 = pneg %p5189_p3  ;;  %7468 = sst [smem:[#allocation15_spill]] %s5200_s17 }
  0x10   : > { %s328_s27 = sshll.u32 %s7466_s0, 4  ;;  %s57_s18 = sadd.s32 1, %s5066_s23  ;;  %s329_s27 = int_to_ptr.hbm [resolvable:$true] %s328_s27 }
  0x11   : > { %p4329_p6 = pnand %p4328_p4, %p71_p1  ;;  %s54_s19 = ssub.s32 %s5070_s24, %s5200_s17 }
  0x12   : > { %p64_p7 = scmp.ne.s32.totalorder %s5066_s23, %s5062_s22  ;;  %p55_p8 = scmp.eq.s32.totalorder %s54_s19, 0 }
  0x13   : > { %4331 = dma.hbm_to_vmem [thread:$0]  (!%p4329_p6), %s329_s27, 1024, %s331_s13, [#allocation5], %s5073_s14, %s5073_s14, %s5074_s15  }
  0x14   : > { %p65_p9 = scmp.eq.s32.totalorder %s5070_s24, 0  ;;  %p70_p10 = scmp.ne.s32.totalorder %s5062_s22, %s5058_s21 }
  0x15   : > { %p304_p11 = scmp.eq.s32.totalorder %s5184_s28, 1  ;;  %p310_p0 = scmp.eq.s32.totalorder %s4289_s16, 1 }
  0x16   : > { %s5212_s20 = scalar_select %p55_p8, %s5066_s23, %s57_s18  }
  0x17   : > { %p5216_p12 = por %p71_p1, %p70_p10  ;;  %p5220_p13 = por %p304_p11, %p64_p7 }
  0x18   : > { %7469 = sst [smem:[#allocation16_spill]] %s5212_s20  ;;  %p66_p2 = por %p65_p9, %p64_p7 }
  0x19   : > { %s374_s27 = sand.u32 1, %s5066_s23   ;;  %p5225_p4 = por %p310_p0, %p70_p10 }
  0x1a   : > { %p4341_p6 = scmp.lt.s32.totalorder %s5070_s24, 2  ;;  %s4293_s13 = sshll.u32 %s374_s27, 5 }
  0x1b   : > { %s7472_s30 = scalar_select %p5225_p4, 1, 0 }
  0x1c   : > { %s4318_s14 = sshll.u32 %s5070_s24, 5  ;;  %s378_s20 = scalar_lea.vmem [#allocation7], %s4293_s13 }
  0x1d   : > { %7473 = sst [smem:[#allocation17_spill]] %s7472_s30  ;;  %s383_s19 = scalar_lea.hbm %s7380_s1, %s4318_s14 }
  0x1e   : > { %s385_s0 = sshll.u32 %s383_s19, 4  ;;  %s387_s17 = sshll.u32 %s378_s20, 4  ;;  %s386_s0 = int_to_ptr.hbm [resolvable:$true] %s385_s0  ;;  %s388_s17 = int_to_ptr.vmem [resolvable:$true] %s387_s17 }
  0x1f   : > { %p5234_p8 = pnand %p4341_p6, %p66_p2  ;;  %s375_s23 = scalar_lea.sflag [#allocation8], %s374_s27 }
  0x20   : > { %s4970_s21 = sshra.s32 %s386_s0, 4  ;;  %s4977_s20 = scalar_lea.hbm %s7380_s1, 64  ;;  %s4971_s21 = int_to_ptr.hbm [resolvable:$true] %s4970_s21 }
  0x21   : > { %s4972_s30 = scalar_lea.hbm %s4971_s21, 32  ;;  %p4974_p9 = pneg %p5234_p8 }
  0x22   : > { %p4973_p7 = scmp.ne.s32.totalorder %s4971_s21, %s4972_s30  ;;  %p4978_p0 = scmp.lt.s32.totalorder %s4971_s21, %s7380_s1 }
  0x23   : > { %p4979_p2 = scmp.lt.s32.totalorder %s4977_s20, %s4972_s30 }
  0x24   : > { %p4975_p10 = pnand %p4974_p9, %p4973_p7 }
  0x25   : > { %p4980_p6 = por %p4979_p2, %p4978_p0 }
  0x26   : > { %p4976_p11 = pneg %p4975_p10 }
  0x28   : > { %p4981_p5 = pnand %p4980_p6, %p4976_p11 }
  0x2a   : > { %4984 = shalt.err (!%p4981_p5)
}
  0x2b   : > { %4335 = dma.hbm_to_vmem [thread:$0]  (!%p5234_p8), %s386_s0, 512, %s388_s17, %s375_s23  }
  0x2c   : > { %396 = sbr.rel (%p5189_p3) target bundleno = 4931 (0x1343), region = 68 }
  0x31   : > { %5045 = dma.done.wait (%p71_p1), [#allocation5], 1024  }
  0x32   : > { %5047 = vsyncadd (%p71_p1), [#allocation5], 4294966272  ;;  %s5255_s27 = sand.u32 1, %s5062_s22  }
  0x33   : > { %s7407_s21 = sshll.u32 %s5255_s27, 5  ;;  %s404_s30 = scalar_lea.sflag [#allocation8], %s5255_s27 }
  0x34   : > { %s5261_s0 = scalar_lea.vmem [#allocation7], %s7407_s21 }
  0x35   : > { %5049 = dma.done.wait (%p5216_p12), %s404_s30, 512  }
  0x36   : > { %5051 = vsyncadd (%p5216_p12), %s404_s30, 4294966784  ;;  %v5075_v0 = vmov 0   ;;  %v454_v1 = vld [vmem:[%s7386_s7] sm:$0xff]  ;;  %v5274_v3 = vld [vmem:[%s5261_s0 + $0x8] sm:$0xff]  ;;  %vm7447_vm0 = vcmask 64512   ;;  %s5076_s19 = smov 55  }
  0x37   : > { %4399 = vset.pattern.permute.xlu0 %v5075_v0  ;;  %v5271_v2 = vld [vmem:[%s5261_s0] sm:$0xff]  ;;  %v5278_v4 = vld [vmem:[%s5261_s0 + $0x10] sm:$0xff]  ;;  %499 = vmatpush.msra.mxu1 %v5274_v3  ;;  %v5286_v9 = vld [vmem:[%s5261_s0 + $0x18] sm:$0xff]  ;;  %s5077_s16 = smov 56   ;;  %s5078_s14 = smov 57   ;;  %v7397_v26 = vmov 0.0  }
  0x38   : > { %457 = vperm.xlu0 %4399, %v454_v1   ;;  %479 = vmatpush.msra.mxu3 %v5271_v2  ;;  %v453_v5 = vld [vmem:[%s7385_s6] sm:$0xff]  ;;  %s7418_s15 = smov 63   ;;  %v4400_v27 = vpack.i.bf16 %v5271_v2, %v7397_v26  ;;  %s7414_s20 = smov 64   ;;  %v4405_v29 = vpack.i.bf16 %v5278_v4, %v5274_v3  ;;  %v4410_v32 = vpack.i.bf16 %v5271_v2, %v5286_v9  ;;  %vm569_vm1 = vcmask 449536  }
  0x39   : > { %v555_v6 = vld [vmem:[#allocation4] ss:$8 sm:$0xf]  ;;  %519 = vmatpush.msra.mxu2 %v5278_v4  ;;  %4300 = vmatmul.msk.f32.vlgmr.msra.gmra.mxu3 %vm7447_vm0, %v453_v5  ;;  %v617_v11 = vld [vmem:[#allocation4 + $0x1] ss:$8 sm:$0xf] }
  0x3a   : > { %v560_v7 = vperm.slane %v555_v6, 3  ;;  %v558_v8 = vperm.slane %v555_v6, 1  ;;  %4301 = vmatmul.msk.f32.vlgmr.msra.gmra.mxu1 %vm7447_vm0, %v453_v5  ;;  %4302 = vmatmul.msk.f32.vlgmr.msra.gmra.mxu2 %vm7447_vm0, %v453_v5  ;;  %v557_v10 = vperm.slane %v555_v6, 0  ;;  %v619_v12 = vperm.slane %v617_v11, 0  ;;  %s7416_s13 = smov 65   ;;  %s7427_s18 = smov 71  }
  0x3b   : > { %539 = vmatpush.msrb.mxu3 %v5286_v9  ;;  %v559_v13 = vperm.slane %v555_v6, 2  ;;  %v620_v14 = vperm.slane %v617_v11, 1  ;;  %v622_v15 = vperm.slane %v617_v11, 3  ;;  %v621_v16 = vperm.slane %v617_v11, 2  ;;  %s7460_s30 = smov 72   ;;  %s5085_s23 = smov 73  }
  0x3c   : > { %567 = vrot.lane.b32.xlu2 %v560_v7, %s5076_s19  ;;  %563 = vrot.lane.b32.xlu1 %v558_v8, %s5076_s19  ;;  %v679_v17 = vld [vmem:[#allocation4 + $0x2] ss:$8 sm:$0xf]  ;;  %v741_v22 = vld [vmem:[#allocation4 + $0x3] ss:$8 sm:$0xf] }
  0x3d   : > { %v681_v18 = vperm.slane %v679_v17, 0  ;;  %v683_v19 = vperm.slane %v679_v17, 2  ;;  %v682_v20 = vperm.slane %v679_v17, 1  ;;  %v684_v21 = vperm.slane %v679_v17, 3  ;;  %s7451_s29 = smov 119   ;;  %s5087_s17 = smov 9  }
  0x3e   : > { %v744_v23 = vperm.slane %v741_v22, 1  ;;  %v743_v24 = vperm.slane %v741_v22, 0  ;;  %v745_v25 = vperm.slane %v741_v22, 2  ;;  %v746_v28 = vperm.slane %v741_v22, 3  ;;  %s7453_s25 = smov 120   ;;  %s7437_s21 = smov 8  }
  0x3f   : > { %v836_v30 = vld [vmem:[#allocation4 + $0x5] ss:$8 sm:$0xf]  ;;  %v896_v36 = vld [vmem:[#allocation4 + $0x6] ss:$8 sm:$0xf] }
  0x40   : > { %561 = vrot.lane.b32.xlu0 %v557_v10, %s5076_s19  ;;  %v838_v31 = vperm.slane %v836_v30, 0  ;;  %v839_v33 = vperm.slane %v836_v30, 1  ;;  %v841_v34 = vperm.slane %v836_v30, 3  ;;  %v840_v35 = vperm.slane %v836_v30, 2 }
  0x41   : > { %4303 = vmatmul.msk.f32.vlgmr.msrb.gmra.mxu3 %vm7447_vm0, %v453_v5  ;;  %v898_v37 = vperm.slane %v896_v36, 0  ;;  %v900_v38 = vperm.slane %v896_v36, 2  ;;  %v899_v39 = vperm.slane %v896_v36, 1  ;;  %v901_v40 = vperm.slane %v896_v36, 3 }
  0x42   : > { %v956_v41 = vld [vmem:[#allocation4 + $0x7] ss:$8 sm:$0xf]  ;;  %vm693_vm2 = vcmask 465920   ;;  %vm631_vm3 = vcmask 457728   ;;  %vm817_vm4 = vcmask 523264  }
  0x43   : > { %v958_v42 = vperm.slane %v956_v41, 0  ;;  %v960_v43 = vperm.slane %v956_v41, 2  ;;  %v961_v44 = vperm.slane %v956_v41, 3  ;;  %v959_v45 = vperm.slane %v956_v41, 1 }
  0x44   : > { %623 = vrot.lane.b32.xlu2 %v619_v12, %s5077_s16  ;;  %565 = vrot.lane.b32.xlu1 %v559_v13, %s5076_s19  ;;  %vm755_vm5 = vcmask 515072   ;;  %vm784_vm6 = vcmask 531456   ;;  %vm722_vm7 = vcmask 580608   ;;  %vm660_vm8 = vcmask 588800  }
  0x45   : > { %vm598_vm9 = vcmask 596992   ;;  %vm1089_vm10 = vcmask 973824   ;;  %vm1118_vm11 = vcmask 72704   ;;  %vm7432_vm12 = vcmask 982016  }
  0x46   : > { %vm7448_vm13 = vcmask 990208   ;;  %vm1239_vm14 = vcmask 56320   ;;  %vm7449_vm15 = vcmask 1039360  }
  0x48   : > { %625 = vrot.lane.b32.xlu0 %v620_v14, %s5077_s16 }
  0x4c   : > { %629 = vrot.lane.b32.xlu2 %v622_v15, %s5077_s16  ;;  %627 = vrot.lane.b32.xlu1 %v621_v16, %s5077_s16 }
  0x50   : > { %685 = vrot.lane.b32.xlu0 %v681_v18, %s5078_s14 }
  0x54   : > { %689 = vrot.lane.b32.xlu2 %v683_v19, %s5078_s14  ;;  %687 = vrot.lane.b32.xlu1 %v682_v20, %s5078_s14 }
  0x58   : > { %691 = vrot.lane.b32.xlu0 %v684_v21, %s5078_s14 }
  0x5c   : > { %749 = vrot.lane.b32.xlu2 %v744_v23, %s7418_s15  ;;  %747 = vrot.lane.b32.xlu1 %v743_v24, %s7418_s15 }
  0x60   : > { %751 = vrot.lane.b32.xlu0 %v745_v25, %s7418_s15 }
  0x64   : > { %4401 = vrot.lane.b32.xlu2 %v4400_v27, %s7414_s20  ;;  %753 = vrot.lane.b32.xlu1 %v746_v28, %s7418_s15 }
  0x68   : > { %4406 = vrot.lane.b32.xlu0 %v4405_v29, %s7414_s20 }
  0x6c   : > { %842 = vrot.lane.b32.xlu2 %v838_v31, %s7416_s13  ;;  %4411 = vrot.lane.b32.xlu1 %v4410_v32, %s7414_s20  ;;  %s7439_s20 = smov 121  }
  0x70   : > { %844 = vrot.lane.b32.xlu0 %v839_v33, %s7416_s13 }
  0x74   : > { %848 = vrot.lane.b32.xlu2 %v841_v34, %s7416_s13  ;;  %846 = vrot.lane.b32.xlu1 %v840_v35, %s7416_s13 }
  0x78   : > { %902 = vrot.lane.b32.xlu0 %v898_v37, %s7427_s18 }
  0x7c   : > { %906 = vrot.lane.b32.xlu2 %v900_v38, %s7427_s18  ;;  %904 = vrot.lane.b32.xlu1 %v899_v39, %s7427_s18 }
  0x80   : > { %908 = vrot.lane.b32.xlu0 %v901_v40, %s7427_s18 }
  0x84   : > { %962 = vrot.lane.b32.xlu1 %v958_v42, %s7460_s30  ;;  %964 = vrot.lane.b32.xlu2 %v959_v45, %s7460_s30 }
  0x88   : > { %966 = vrot.lane.b32.xlu0 %v960_v43, %s7460_s30 }
  0x8c   : > { %968 = vrot.lane.b32.xlu1 %v961_v44, %s7460_s30 }
  0x96   : > { %v5329_v46 = vpop.permute.xlu2 %567 }
  0x97   : > { %v582_v47 = vmul.f32 %v5329_v46, %v5286_v9 }
  0x99   : > { %596 = vrot.lane.b32.xlu1 %v582_v47, %s5085_s23 }
  0x9e   : > { %v5335_v48 = vpop.permute.xlu2 %623 }
  0xa6   : > { %v630_v49 = vpop.permute.xlu2 %629 }
  0xa7   : > { %v644_v50 = vmul.f32 %v630_v49, %v5286_v9 }
  0xa9   : > { %658 = vrot.lane.b32.xlu2 %v644_v50, %s7460_s30 }
  0xaa   : > { %v5339_v51 = vpop.permute.xlu0 %457 }
  0xab   : > { %7475 = vst [vmem:[#allocation18_spill] sm:$0xff] %v5339_v51 }
  0xae   : > { %v690_v52 = vpop.permute.xlu2 %689  ;;  %v5341_v53 = vpop.permute.xlu1 %563 }
  0xb2   : > { %v562_v54 = vpop.permute.xlu0 %561 }
  0xb3   : > { %v570_v7 = vsel %vm569_vm1, %v562_v54, %v5341_v53  ;;  %v578_v8 = vmul.f32 0.0, %v562_v54 }
  0xb4   : > { %v579_v10 = vmul.f32 %v570_v7, %v5271_v2 }
  0xb6   : > { %v5343_v55 = vpop.permute.xlu2 %749  ;;  %v5345_v56 = vpop.permute.xlu1 %565  ;;  %v4415_v13 = vpack.i.bf16 %v579_v10, %v578_v8 }
  0xba   : > { %v5347_v57 = vpop.permute.xlu0 %625 }
  0xbe   : > { %v5349_v58 = vpop.permute.xlu2 %4401  ;;  %v628_v59 = vpop.permute.xlu1 %627 }
  0xbf   : > { %v633_v17 = vsel %vm631_vm3, %v5347_v57, %v628_v59  ;;  %v634_v18 = vsel %vm631_vm3, %v628_v59, %v630_v49 }
  0xc0   : > { %v642_v22 = vmul.f32 %v633_v17, %v5274_v3  ;;  %v643_v23 = vmul.f32 %v634_v18, %v5278_v4  ;;  %v632_v18 = vsel %vm631_vm3, %v5335_v48, %v5347_v57 }
  0xc2   : > { %v686_v60 = vpop.permute.xlu0 %685  ;;  %v4430_v31 = vpack.i.bf16 %v643_v23, %v642_v22  ;;  %v640_v22 = vmul.f32 0.0, %v5335_v48  ;;  %v641_v23 = vmul.f32 %v632_v18, %v5271_v2 }
  0xc3   : > { %v702_v38 = vmul.f32 0.0, %v686_v60 }
  0xc6   : > { %v5351_v61 = vpop.permute.xlu2 %842  ;;  %v688_v62 = vpop.permute.xlu1 %687 }
  0xc7   : > { %v695_v14 = vsel %vm693_vm2, %v688_v62, %v690_v52  ;;  %v694_v32 = vsel %vm693_vm2, %v686_v60, %v688_v62 }
  0xc8   : > { %v704_v19 = vmul.f32 %v695_v14, %v5274_v3  ;;  %v703_v36 = vmul.f32 %v694_v32, %v5271_v2 }
  0xca   : > { %v692_v63 = vpop.permute.xlu0 %691  ;;  %v4435_v40 = vpack.i.bf16 %v703_v36, %v702_v38 }
  0xcb   : > { %v706_v0 = vmul.f32 %v692_v63, %v5286_v9  ;;  %v696_v15 = vsel %vm693_vm2, %v690_v52, %v692_v63 }
  0xcc   : > { %v705_v20 = vmul.f32 %v696_v15, %v5278_v4 }
  0xcd   : > { %720 = vrot.lane.b32.xlu0 %v706_v0, %s7427_s18 }
  0xce   : > { %v849_v1 = vpop.permute.xlu2 %848  ;;  %v748_v5 = vpop.permute.xlu1 %747  ;;  %v4440_v30 = vpack.i.bf16 %v705_v20, %v704_v19 }
  0xcf   : > { %v862_v6 = vmul.f32 %v849_v1, %v5286_v9  ;;  %v756_v27 = vsel %vm755_vm5, %v748_v5, %v5343_v55  ;;  %v764_v33 = vmul.f32 0.0, %v748_v5  ;;  %v572_v5 = vsel %vm569_vm1, %v5345_v56, %v5329_v46 }
  0xd0   : > { %v765_v34 = vmul.f32 %v756_v27, %v5271_v2  ;;  %v581_v15 = vmul.f32 %v572_v5, %v5278_v4 }
  0xd1   : > { %876 = vrot.lane.b32.xlu2 %v862_v6, %s7418_s15 }
  0xd2   : > { %v5360_v11 = vpop.permute.xlu0 %751  ;;  %v4445_v37 = vpack.i.bf16 %v765_v34, %v764_v33 }
  0xd3   : > { %v757_v48 = vsel %vm755_vm5, %v5343_v55, %v5360_v11 }
  0xd4   : > { %v766_v34 = vmul.f32 %v757_v48, %v5274_v3 }
  0xd6   : > { %v5362_v12 = vpop.permute.xlu1 %753  ;;  %v907_v47 = vpop.permute.xlu2 %906 }
  0xd7   : > { %v768_v16 = vmul.f32 %v5362_v12, %v5286_v9  ;;  %v758_v57 = vsel %vm755_vm5, %v5360_v11, %v5362_v12  ;;  %v858_v12 = vmul.f32 0.0, %v5351_v61 }
  0xd8   : > { %v767_v33 = vmul.f32 %v758_v57, %v5278_v4 }
  0xd9   : > { %4416 = vrot.lane.b32.xlu2 %v4415_v13, %s5085_s23  ;;  %782 = vrot.lane.b32.xlu1 %v768_v16, %s7416_s13 }
  0xda   : > { %v5375_v21 = vpop.permute.xlu0 %4406  ;;  %v4450_v36 = vpack.i.bf16 %v767_v33, %v766_v34 }
  0xdb   : > { %v7402_v24 = vunpack.i.h.bf16 %v5375_v21  ;;  %v7413_v25 = vunpack.i.l.bf16 %v5375_v21 }
  0xdd   : > { %v5388_v28 = vsel %vm817_vm4, %v7413_v25, %v7402_v24 }
  0xde   : > { %7476 = vst [vmem:[#allocation19_spill] sm:$0xff] %v5388_v28  ;;  %v5390_v29 = vpop.permute.xlu1 %4411  ;;  %v965_v7 = vpop.permute.xlu2 %964  ;;  %v1385_v28 = vld [vmem:[#allocation4 + $0x6] ss:$8 sm:$0xf] }
  0xe1   : > { %4441 = vrot.lane.b32.xlu2 %v4440_v30, %s7427_s18  ;;  %4431 = vrot.lane.b32.xlu1 %v4430_v31, %s7460_s30  ;;  %v1016_v30 = vld [vmem:[#allocation4 + $0x20] ss:$8 sm:$0xf]  ;;  %v4425_v31 = vpack.i.bf16 %v641_v23, %v640_v22 }
  0xe2   : > { %v5396_v35 = vpop.permute.xlu0 %844  ;;  %v1020_v32 = vperm.slane %v1016_v30, 2 }
  0xe6   : > { %v847_v39 = vpop.permute.xlu1 %846 }
  0xe7   : > { %v851_v41 = vsel %vm784_vm6, %v5396_v35, %v847_v39  ;;  %v852_v42 = vsel %vm784_vm6, %v847_v39, %v849_v1  ;;  %v571_v1 = vsel %vm569_vm1, %v5341_v53, %v5345_v56 }
  0xe8   : > { %v860_v44 = vmul.f32 %v851_v41, %v5274_v3  ;;  %v861_v45 = vmul.f32 %v852_v42, %v5278_v4  ;;  %v580_v14 = vmul.f32 %v571_v1, %v5274_v3  ;;  %v1018_v41 = vperm.slane %v1016_v30, 0 }
  0xe9   : > { %4446 = vrot.lane.b32.xlu2 %v4445_v37, %s7416_s13  ;;  %4436 = vrot.lane.b32.xlu1 %v4435_v40, %s7427_s18  ;;  %v850_v37 = vsel %vm784_vm6, %v5351_v61, %v5396_v35  ;;  %s7443_s18 = smov 1  }
  0xea   : > { %v903_v43 = vpop.permute.xlu0 %902  ;;  %v4460_v50 = vpack.i.bf16 %v861_v45, %v860_v44  ;;  %v4420_v56 = vpack.i.bf16 %v581_v15, %v580_v14  ;;  %v859_v38 = vmul.f32 %v850_v37, %v5271_v2  ;;  %v1021_v44 = vperm.slane %v1016_v30, 3 }
  0xeb   : > { %v918_v8 = vmul.f32 0.0, %v903_v43  ;;  %v1019_v45 = vperm.slane %v1016_v30, 1 }
  0xec   : > { %v4455_v40 = vpack.i.bf16 %v859_v38, %v858_v12  ;;  %v1075_v38 = vld [vmem:[#allocation4] ss:$8 sm:$0xf] }
  0xee   : > { %v905_v49 = vpop.permute.xlu1 %904 }
  0xef   : > { %v911_v52 = vsel %vm722_vm7, %v905_v49, %v907_v47  ;;  %v910_v54 = vsel %vm722_vm7, %v903_v43, %v905_v49 }
  0xf0   : > { %v920_v60 = vmul.f32 %v911_v52, %v5274_v3  ;;  %v919_v62 = vmul.f32 %v910_v54, %v5271_v2 }
  0xf1   : > { %4461 = vrot.lane.b32.xlu1 %v4460_v50, %s7418_s15 }
  0xf2   : > { %v909_v59 = vpop.permute.xlu0 %908  ;;  %v4465_v16 = vpack.i.bf16 %v919_v62, %v918_v8 }
  0xf3   : > { %v922_v63 = vmul.f32 %v909_v59, %v5286_v9  ;;  %v912_v0 = vsel %vm722_vm7, %v907_v47, %v909_v59 }
  0xf4   : > { %v921_v6 = vmul.f32 %v912_v0, %v5278_v4 }
  0xf5   : > { %936 = vrot.lane.b32.xlu0 %v922_v63, %s5078_s14 }
  0xf6   : > { %v4470_v10 = vpack.i.bf16 %v921_v6, %v920_v60  ;;  %v963_v13 = vpop.permute.xlu1 %962 }
  0xf7   : > { %v970_v53 = vsel %vm660_vm8, %v963_v13, %v965_v7  ;;  %v978_v17 = vmul.f32 0.0, %v963_v13 }
  0xf8   : > { %4471 = vrot.lane.b32.xlu2 %v4470_v10, %s5078_s14  ;;  %v979_v46 = vmul.f32 %v970_v53, %v5271_v2 }
  0xf9   : > { %4466 = vrot.lane.b32.xlu1 %v4465_v16, %s5078_s14 }
  0xfa   : > { %v4475_v19 = vpack.i.bf16 %v979_v46, %v978_v17  ;;  %v967_v39 = vpop.permute.xlu0 %966 }
  0xfb   : > { %v971_v55 = vsel %vm660_vm8, %v965_v7, %v967_v39 }
  0xfc   : > { %v980_v42 = vmul.f32 %v971_v55, %v5274_v3 }
  0xfd   : > { %4421 = vrot.lane.b32.xlu0 %v4420_v56, %s5085_s23 }
  0xfe   : > { %v969_v20 = vpop.permute.xlu1 %968 }
  0xff   : > { %v982_v27 = vmul.f32 %v969_v20, %v5286_v9  ;;  %v972_v11 = vsel %vm660_vm8, %v967_v39, %v969_v20  ;;  %v1079_v39 = vperm.slane %v1075_v38, 2 }
 0x100   : > { %4476 = vrot.lane.b32.xlu2 %v4475_v19, %s5077_s16  ;;  %v981_v43 = vmul.f32 %v972_v11, %v5278_v4 }
 0x101   : > { %996 = vrot.lane.b32.xlu1 %v982_v27, %s5077_s16 }
 0x102   : > { %v4480_v35 = vpack.i.bf16 %v981_v43, %v980_v42 }
 0x103   : > { %v5460_v61 = vpop.permute.xlu2 %658 }
 0x105   : > { %4426 = vrot.lane.b32.xlu0 %v4425_v31, %s7460_s30 }
 0x108   : > { %1022 = vrot.lane.b32.xlu2 %v1018_v41, %s5085_s23 }
 0x109   : > { %1026 = vrot.lane.b32.xlu1 %v1020_v32, %s5085_s23 }
 0x10b   : > { %v5478_v60 = vpop.permute.xlu1 %596 }
 0x10d   : > { %4451 = vrot.lane.b32.xlu0 %v4450_v36, %s7416_s13  ;;  %s7445_s13 = smov 7  }
 0x110   : > { %1028 = vrot.lane.b32.xlu2 %v1021_v44, %s5085_s23 }
 0x115   : > { %4456 = vrot.lane.b32.xlu0 %v4455_v40, %s7418_s15  ;;  %s7441_s15 = smov 127  }
 0x11d   : > { %4481 = vrot.lane.b32.xlu0 %v4480_v35, %s5077_s16 }
 0x125   : > { %1024 = vrot.lane.b32.xlu0 %v1019_v45, %s5085_s23 }
 0x12b   : > { %v5463_v47 = vpop.permute.xlu2 %876 }
 0x133   : > { %v5465_v49 = vpop.permute.xlu2 %4416 }
 0x13b   : > { %v5467_v50 = vpop.permute.xlu2 %4441 }
 0x13c   : > { %v7400_v52 = vunpack.i.h.bf16 %v5467_v50  ;;  %v7411_v54 = vunpack.i.l.bf16 %v5467_v50 }
 0x13e   : > { %v5476_v59 = vsel %vm722_vm7, %v7411_v54, %v7400_v52 }
 0x13f   : > { %7477 = vst [vmem:[#allocation20_spill] sm:$0xff] %v5476_v59  ;;  %v5508_v15 = vpop.permute.xlu0 %720 }
 0x143   : > { %v5480_v62 = vpop.permute.xlu2 %4446 }
 0x14b   : > { %v5482_v63 = vpop.permute.xlu1 %782 }
 0x152   : > { %v5484_v0 = vpop.permute.xlu2 %4471 }
 0x153   : > { %v5486_v1 = vpop.permute.xlu1 %4431  ;;  %v7404_v5 = vunpack.i.h.bf16 %v5484_v0  ;;  %v7421_v6 = vunpack.i.l.bf16 %v5484_v0 }
 0x154   : > { %v7399_v7 = vunpack.i.h.bf16 %v5486_v1  ;;  %v7410_v8 = vunpack.i.l.bf16 %v5486_v1 }
 0x155   : > { %v5497_v10 = vsel %vm693_vm2, %v7421_v6, %v7404_v5 }
 0x156   : > { %7478 = vst [vmem:[#allocation21_spill] sm:$0xff] %v5497_v10  ;;  %v5504_v13 = vsel %vm660_vm8, %v7410_v8, %v7399_v7  ;;  %v1387_v10 = vperm.slane %v1385_v28, 0 }
 0x157   : > { %7479 = vst [vmem:[#allocation22_spill] sm:$0xff] %v5504_v13 }
 0x15a   : > { %v5523_v18 = vpop.permute.xlu2 %4476 }
 0x15b   : > { %v5506_v14 = vpop.permute.xlu1 %4436 }
 0x162   : > { %v1023_v23 = vpop.permute.xlu2 %1022 }
 0x163   : > { %v5510_v16 = vpop.permute.xlu1 %4461 }
 0x164   : > { %v7403_v53 = vunpack.i.h.bf16 %v5510_v16  ;;  %v7420_v17 = vunpack.i.l.bf16 %v5510_v16 }
 0x166   : > { %v5519_v46 = vsel %vm755_vm5, %v7420_v17, %v7403_v53 }
 0x167   : > { %7480 = vst [vmem:[#allocation23_spill] sm:$0xff] %v5519_v46  ;;  %v5521_v56 = vpop.permute.xlu0 %936 }
 0x16a   : > { %v1029_v31 = vpop.permute.xlu2 %1028 }
 0x16b   : > { %v1042_v57 = vmul.f32 %v1029_v31, %v5286_v9  ;;  %v5544_v34 = vpop.permute.xlu1 %4466 }
 0x16d   : > { %1056 = vrot.lane.b32.xlu2 %v1042_v57, %s5076_s19 }
 0x16f   : > { %v5525_v19 = vpop.permute.xlu0 %4421 }
 0x170   : > { %v7398_v20 = vunpack.i.h.bf16 %v5525_v19  ;;  %v7409_v22 = vunpack.i.l.bf16 %v5525_v19 }
 0x172   : > { %v5534_v27 = vsel %vm598_vm9, %v7409_v22, %v7398_v20 }
 0x173   : > { %7481 = vst [vmem:[#allocation24_spill] sm:$0xff] %v5534_v27  ;;  %v5555_v12 = vpop.permute.xlu1 %996 }
 0x175   : > { %1085 = vrot.lane.b32.xlu2 %v1079_v39, %s7451_s29  ;;  %v1038_v39 = vmul.f32 0.0, %v1023_v23 }
 0x177   : > { %v5536_v30 = vpop.permute.xlu0 %4426 }
 0x17b   : > { %v1027_v41 = vpop.permute.xlu1 %1026 }
 0x17c   : > { %v1032_v43 = vsel %vm598_vm9, %v1027_v41, %v1029_v31  ;;  %v1078_v31 = vperm.slane %v1075_v38, 1 }
 0x17d   : > { %v1041_v44 = vmul.f32 %v1032_v43, %v5278_v4  ;;  %v1080_v43 = vperm.slane %v1075_v38, 3 }
 0x17f   : > { %v5540_v32 = vpop.permute.xlu0 %4451 }
 0x180   : > { %v7401_v48 = vunpack.i.h.bf16 %v5540_v32  ;;  %v7412_v33 = vunpack.i.l.bf16 %v5540_v32 }
 0x182   : > { %v5551_v36 = vsel %vm784_vm6, %v7412_v33, %v7401_v48  ;;  %v1077_v48 = vperm.slane %v1075_v38, 0  ;;  %v1196_v33 = vld [vmem:[#allocation4 + $0x2] ss:$8 sm:$0xf] }
 0x183   : > { %7482 = vst [vmem:[#allocation25_spill] sm:$0xff] %v5551_v36 }
 0x187   : > { %v5553_v37 = vpop.permute.xlu0 %4456 }
 0x18f   : > { %v5557_v55 = vpop.permute.xlu0 %4481 }
 0x190   : > { %v7405_v11 = vunpack.i.h.bf16 %v5557_v55  ;;  %v7422_v40 = vunpack.i.l.bf16 %v5557_v55 }
 0x192   : > { %v5567_v42 = vsel %vm631_vm3, %v7422_v40, %v7405_v11 }
 0x193   : > { %7483 = vst [vmem:[#allocation26_spill] sm:$0xff] %v5567_v42 }
 0x197   : > { %v1025_v35 = vpop.permute.xlu0 %1024 }
 0x198   : > { %v1030_v45 = vsel %vm598_vm9, %v1023_v23, %v1025_v35  ;;  %v1031_v57 = vsel %vm598_vm9, %v1025_v35, %v1027_v41 }
 0x199   : > { %v1039_v26 = vmul.f32 %v1030_v45, %v5271_v2  ;;  %v1040_v20 = vmul.f32 %v1031_v57, %v5274_v3 }
 0x19b   : > { %v4485_v7 = vpack.i.bf16 %v1039_v26, %v1038_v39  ;;  %v4490_v52 = vpack.i.bf16 %v1041_v44, %v1040_v20 }
 0x19d   : > { %4486 = vrot.lane.b32.xlu0 %v4485_v7, %s5076_s19  ;;  %4491 = vrot.lane.b32.xlu1 %v4490_v52, %s5076_s19 }
 0x1a5   : > { %1081 = vrot.lane.b32.xlu0 %v1077_v48, %s7451_s29  ;;  %1083 = vrot.lane.b32.xlu1 %v1078_v31, %s7451_s29 }
 0x1ad   : > { %1087 = vrot.lane.b32.xlu0 %v1080_v43, %s7451_s29  ;;  %v1136_v43 = vld [vmem:[#allocation4 + $0x1] ss:$8 sm:$0xf] }
 0x1c7   : > { %v5593_v7 = vpop.permute.xlu2 %1056 }
 0x1cf   : > { %v1086_v57 = vpop.permute.xlu2 %1085 }
 0x20f   : > { %v5580_v23 = vpop.permute.xlu0 %4486  ;;  %v5582_v41 = vpop.permute.xlu1 %4491 }
 0x210   : > { %v7406_v26 = vunpack.i.h.bf16 %v5582_v41  ;;  %v7423_v20 = vunpack.i.l.bf16 %v5582_v41 }
 0x212   : > { %v5591_v52 = vsel %vm569_vm1, %v7423_v20, %v7406_v26 }
 0x213   : > { %7484 = vst [vmem:[#allocation27_spill] sm:$0xff] %v5591_v52 }
 0x217   : > { %v1082_v48 = vpop.permute.xlu0 %1081  ;;  %v1084_v38 = vpop.permute.xlu1 %1083 }
 0x218   : > { %v1098_v35 = vmul.f32 0.0, %v1082_v48  ;;  %v1090_v44 = vsel %vm1089_vm10, %v1082_v48, %v1084_v38  ;;  %v1091_v31 = vsel %vm1089_vm10, %v1084_v38, %v1086_v57  ;;  %v1138_v48 = vperm.slane %v1136_v43, 0 }
 0x219   : > { %v1099_v45 = vmul.f32 %v1090_v44, %v5271_v2  ;;  %v1100_v11 = vmul.f32 %v1091_v31, %v5274_v3  ;;  %v1140_v38 = vperm.slane %v1136_v43, 2 }
 0x21b   : > { %v4495_v39 = vpack.i.bf16 %v1099_v45, %v1098_v35  ;;  %v1141_v35 = vperm.slane %v1136_v43, 3  ;;  %v1139_v45 = vperm.slane %v1136_v43, 1 }
 0x21d   : > { %4496 = vrot.lane.b32.xlu1 %v4495_v39, %s5087_s17 }
 0x21f   : > { %v1088_v24 = vpop.permute.xlu0 %1087 }
 0x220   : > { %v1092_v53 = vsel %vm1089_vm10, %v1086_v57, %v1088_v24  ;;  %v1102_v5 = vmul.f32 %v1088_v24, %v5286_v9 }
 0x221   : > { %v1101_v26 = vmul.f32 %v1092_v53, %v5278_v4 }
 0x222   : > { %1116 = vrot.lane.b32.xlu0 %v1102_v5, %s5087_s17 }
 0x223   : > { %v4500_v44 = vpack.i.bf16 %v1101_v26, %v1100_v11 }
 0x225   : > { %4501 = vrot.lane.b32.xlu2 %v4500_v44, %s5087_s17  ;;  %1142 = vrot.lane.b32.xlu1 %v1138_v48, %s7453_s25 }
 0x22a   : > { %1146 = vrot.lane.b32.xlu0 %v1140_v38, %s7453_s25 }
 0x22d   : > { %1148 = vrot.lane.b32.xlu1 %v1141_v35, %s7453_s25  ;;  %1144 = vrot.lane.b32.xlu2 %v1139_v45, %s7453_s25 }
 0x27f   : > { %v5609_v24 = vpop.permute.xlu2 %4501 }
 0x280   : > { %v7408_v5 = vunpack.i.h.bf16 %v5609_v24  ;;  %v7424_v53 = vunpack.i.l.bf16 %v5609_v24 }
 0x282   : > { %v5618_v11 = vsel %vm1118_vm11, %v7424_v53, %v7408_v5 }
 0x283   : > { %7485 = vst [vmem:[#allocation28_spill] sm:$0xff] %v5618_v11 }
 0x287   : > { %v1145_v39 = vpop.permute.xlu2 %1144 }
 0x28f   : > { %v5620_v26 = vpop.permute.xlu1 %4496 }
 0x294   : > { %v5622_v57 = vpop.permute.xlu0 %1116 }
 0x297   : > { %v1143_v31 = vpop.permute.xlu1 %1142 }
 0x298   : > { %v1151_v43 = vsel %vm7432_vm12, %v1143_v31, %v1145_v39  ;;  %v1159_v48 = vmul.f32 0.0, %v1143_v31  ;;  %v1198_v31 = vperm.slane %v1196_v33, 0 }
 0x299   : > { %v1160_v44 = vmul.f32 %v1151_v43, %v5271_v2 }
 0x29b   : > { %v4505_v38 = vpack.i.bf16 %v1160_v44, %v1159_v48  ;;  %v1199_v48 = vperm.slane %v1196_v33, 1  ;;  %v1201_v44 = vperm.slane %v1196_v33, 3 }
 0x29c   : > { %v1147_v35 = vpop.permute.xlu0 %1146 }
 0x29d   : > { %4506 = vrot.lane.b32.xlu2 %v4505_v38, %s7437_s21  ;;  %v1152_v45 = vsel %vm7432_vm12, %v1145_v39, %v1147_v35  ;;  %v1200_v39 = vperm.slane %v1196_v33, 2 }
 0x29e   : > { %v1161_v5 = vmul.f32 %v1152_v45, %v5274_v3 }
 0x29f   : > { %v1149_v22 = vpop.permute.xlu1 %1148 }
 0x2a0   : > { %v1153_v8 = vsel %vm7432_vm12, %v1147_v35, %v1149_v22  ;;  %v1163_v54 = vmul.f32 %v1149_v22, %v5286_v9  ;;  %vm7450_vm12 = vcmask 7168  }
 0x2a1   : > { %v1162_v25 = vmul.f32 %v1153_v8, %v5278_v4 }
 0x2a2   : > { %1177 = vrot.lane.b32.xlu1 %v1163_v54, %s7437_s21 }
 0x2a3   : > { %v4510_v43 = vpack.i.bf16 %v1162_v25, %v1161_v5  ;;  %v1257_v5 = vld [vmem:[#allocation4 + $0x3] ss:$8 sm:$0xf] }
 0x2a4   : > { %v1261_v35 = vperm.slane %v1257_v5, 2 }
 0x2a5   : > { %4511 = vrot.lane.b32.xlu0 %v4510_v43, %s7437_s21  ;;  %1202 = vrot.lane.b32.xlu2 %v1198_v31, %s7439_s20 }
 0x2aa   : > { %1206 = vrot.lane.b32.xlu1 %v1200_v39, %s7439_s20 }
 0x2ad   : > { %1204 = vrot.lane.b32.xlu0 %v1199_v48, %s7439_s20  ;;  %1208 = vrot.lane.b32.xlu2 %v1201_v44, %s7439_s20 }
 0x2f7   : > { %v5638_v22 = vpop.permute.xlu2 %4506 }
 0x2ff   : > { %v1203_v8 = vpop.permute.xlu2 %1202 }
 0x300   : > { %v1219_v6 = vmul.f32 0.0, %v1203_v8 }
 0x307   : > { %v1209_v38 = vpop.permute.xlu2 %1208 }
 0x308   : > { %v1223_v25 = vmul.f32 %v1209_v38, %v5286_v9 }
 0x30a   : > { %1237 = vrot.lane.b32.xlu2 %v1223_v25, %s7445_s13 }
 0x312   : > { %1267 = vrot.lane.b32.xlu2 %v1261_v35, %s7441_s15 }
 0x314   : > { %v5642_v54 = vpop.permute.xlu1 %1177 }
 0x317   : > { %v5644_v33 = vpop.permute.xlu0 %4511 }
 0x318   : > { %v7426_v45 = vunpack.i.h.bf16 %v5644_v33  ;;  %v7430_v31 = vunpack.i.l.bf16 %v5644_v33 }
 0x31a   : > { %v5654_v43 = vsel %vm7447_vm0, %v7430_v31, %v7426_v45  ;;  %v1260_v45 = vperm.slane %v1257_v5, 1 }
 0x31b   : > { %7486 = vst [vmem:[#allocation29_spill] sm:$0xff] %v5654_v43 }
 0x31c   : > { %v1207_v39 = vpop.permute.xlu1 %1206 }
 0x31d   : > { %v1213_v48 = vsel %vm7448_vm13, %v1207_v39, %v1209_v38  ;;  %v1259_v38 = vperm.slane %v1257_v5, 0 }
 0x31e   : > { %v1222_v44 = vmul.f32 %v1213_v48, %v5278_v4  ;;  %v1262_v48 = vperm.slane %v1257_v5, 3 }
 0x31f   : > { %v1205_v25 = vpop.permute.xlu0 %1204 }
 0x320   : > { %v1211_v35 = vsel %vm7448_vm13, %v1203_v8, %v1205_v25  ;;  %v1212_v17 = vsel %vm7448_vm13, %v1205_v25, %v1207_v39 }
 0x321   : > { %v1220_v40 = vmul.f32 %v1211_v35, %v5271_v2  ;;  %v1221_v20 = vmul.f32 %v1212_v17, %v5274_v3 }
 0x323   : > { %v4520_v53 = vpack.i.bf16 %v1222_v44, %v1221_v20  ;;  %v4515_v51 = vpack.i.bf16 %v1220_v40, %v1219_v6 }
 0x325   : > { %4521 = vrot.lane.b32.xlu1 %v4520_v53, %s7445_s13  ;;  %4516 = vrot.lane.b32.xlu0 %v4515_v51, %s7445_s13 }
 0x32d   : > { %1265 = vrot.lane.b32.xlu1 %v1260_v45, %s7441_s15  ;;  %1263 = vrot.lane.b32.xlu0 %v1259_v38, %s7441_s15 }
 0x335   : > { %1269 = vrot.lane.b32.xlu0 %v1262_v48, %s7441_s15  ;;  %v1326_v48 = vld [vmem:[#allocation4 + $0x5] ss:$8 sm:$0xf] }
 0x364   : > { %v5680_v40 = vpop.permute.xlu2 %1237 }
 0x36c   : > { %v1268_v25 = vpop.permute.xlu2 %1267 }
 0x397   : > { %v5667_v8 = vpop.permute.xlu1 %4521  ;;  %v5669_v39 = vpop.permute.xlu0 %4516 }
 0x398   : > { %v7429_v6 = vunpack.i.h.bf16 %v5667_v8  ;;  %v7431_v17 = vunpack.i.l.bf16 %v5667_v8 }
 0x39a   : > { %v5678_v51 = vsel %vm1239_vm14, %v7431_v17, %v7429_v6 }
 0x39b   : > { %7487 = vst [vmem:[#allocation30_spill] sm:$0xff] %v5678_v51 }
 0x39f   : > { %v1266_v20 = vpop.permute.xlu1 %1265  ;;  %v1264_v53 = vpop.permute.xlu0 %1263 }
 0x3a0   : > { %v1272_v5 = vsel %vm7449_vm15, %v1264_v53, %v1266_v20  ;;  %v1280_v45 = vmul.f32 0.0, %v1264_v53  ;;  %v1273_v38 = vsel %vm7449_vm15, %v1266_v20, %v1268_v25  ;;  %v1328_v53 = vperm.slane %v1326_v48, 0 }
 0x3a1   : > { %v1281_v44 = vmul.f32 %v1272_v5, %v5271_v2  ;;  %v1282_v27 = vmul.f32 %v1273_v38, %v5274_v3  ;;  %v1331_v20 = vperm.slane %v1326_v48, 3 }
 0x3a3   : > { %v4525_v35 = vpack.i.bf16 %v1281_v44, %v1280_v45  ;;  %v1330_v45 = vperm.slane %v1326_v48, 2  ;;  %v1329_v44 = vperm.slane %v1326_v48, 1 }
 0x3a5   : > { %4526 = vrot.lane.b32.xlu1 %v4525_v35, %s7443_s18 }
 0x3a7   : > { %v1270_v6 = vpop.permute.xlu0 %1269 }
 0x3a8   : > { %v1274_v31 = vsel %vm7449_vm15, %v1268_v25, %v1270_v6  ;;  %v1284_v17 = vmul.f32 %v1270_v6, %v5286_v9 }
 0x3a9   : > { %v1283_v13 = vmul.f32 %v1274_v31, %v5278_v4 }
 0x3aa   : > { %1298 = vrot.lane.b32.xlu0 %v1284_v17, %s7443_s18 }
 0x3ab   : > { %v4530_v5 = vpack.i.bf16 %v1283_v13, %v1282_v27 }
 0x3ad   : > { %1332 = vrot.lane.b32.xlu1 %v1328_v53, %s7443_s18  ;;  %4531 = vrot.lane.b32.xlu2 %v4530_v5, %s7443_s18 }
 0x3b2   : > { %1336 = vrot.lane.b32.xlu0 %v1330_v45, %s7443_s18 }
 0x3b5   : > { %1338 = vrot.lane.b32.xlu1 %v1331_v20, %s7443_s18  ;;  %1334 = vrot.lane.b32.xlu2 %v1329_v44, %s7443_s18  ;;  %s7550_s18 = smov 1  }
 0x407   : > { %v5696_v6 = vpop.permute.xlu2 %4531 }
 0x408   : > { %v7433_v31 = vunpack.i.h.bf16 %v5696_v6  ;;  %v7434_v13 = vunpack.i.l.bf16 %v5696_v6 }
 0x40a   : > { %v5705_v27 = vsel %vm7450_vm12, %v7434_v13, %v7433_v31 }
 0x40f   : > { %v1335_v35 = vpop.permute.xlu2 %1334 }
 0x417   : > { %v5707_v17 = vpop.permute.xlu1 %4526 }
 0x41c   : > { %v5709_v25 = vpop.permute.xlu0 %1298 }
 0x41f   : > { %v1333_v38 = vpop.permute.xlu1 %1332 }
 0x420   : > { %v1348_v48 = vmul.f32 %v1333_v38, %v5271_v2  ;;  %v1340_v53 = vsel %vm7450_vm12, %v1333_v38, %v1335_v35 }
 0x421   : > { %v1349_v5 = vmul.f32 %v1340_v53, %v5274_v3  ;;  %v1388_v53 = vperm.slane %v1385_v28, 1 }
 0x423   : > { %v4535_v45 = vpack.i.bf16 %v1349_v5, %v1348_v48  ;;  %v1389_v48 = vperm.slane %v1385_v28, 2 }
 0x424   : > { %v1337_v20 = vpop.permute.xlu0 %1336 }
 0x425   : > { %4536 = vrot.lane.b32.xlu2 %v4535_v45, %s7441_s15  ;;  %v1341_v44 = vsel %vm7450_vm12, %v1335_v35, %v1337_v20  ;;  %v1390_v35 = vperm.slane %v1385_v28, 3 }
 0x426   : > { %v1350_v13 = vmul.f32 %v1341_v44, %v5278_v4 }
 0x427   : > { %v1339_v31 = vpop.permute.xlu1 %1338 }
 0x428   : > { %v1352_v59 = vmul.f32 0.0, %v1339_v31  ;;  %v1342_v36 = vsel %vm7450_vm12, %v1337_v20, %v1339_v31 }
 0x429   : > { %v1351_v46 = vmul.f32 %v1342_v36, %v5286_v9 }
 0x42a   : > { %1366 = vrot.lane.b32.xlu1 %v1352_v59, %s7441_s15 }
 0x42b   : > { %v4540_v38 = vpack.i.bf16 %v1351_v46, %v1350_v13  ;;  %v1444_v46 = vld [vmem:[#allocation4 + $0x7] ss:$8 sm:$0xf] }
 0x42c   : > { %v1448_v13 = vperm.slane %v1444_v46, 2 }
 0x42d   : > { %4541 = vrot.lane.b32.xlu0 %v4540_v38, %s7441_s15  ;;  %1391 = vrot.lane.b32.xlu2 %v1387_v10, %s7445_s13  ;;  %s7519_s15 = smov 64  }
 0x432   : > { %1395 = vrot.lane.b32.xlu1 %v1389_v48, %s7445_s13 }
 0x435   : > { %1393 = vrot.lane.b32.xlu0 %v1388_v53, %s7445_s13  ;;  %1397 = vrot.lane.b32.xlu2 %v1390_v35, %s7445_s13  ;;  %s7549_s13 = smov 7  }
 0x47f   : > { %v4537_v31 = vpop.permute.xlu2 %4536 }
 0x487   : > { %v1392_v5 = vpop.permute.xlu2 %1391 }
 0x48f   : > { %v1398_v36 = vpop.permute.xlu2 %1397 }
 0x490   : > { %v1411_v45 = vmul.f32 0.0, %v1398_v36 }
 0x492   : > { %1425 = vrot.lane.b32.xlu2 %v1411_v45, %s7439_s20 }
 0x49a   : > { %1454 = vrot.lane.b32.xlu2 %v1448_v13, %s7437_s21  ;;  %v1407_v13 = vmul.f32 %v1392_v5, %v5271_v2  ;;  %v4539_v2 = vunpack.i.h.bf16 %v4537_v31 }
 0x49c   : > { %v5726_v59 = vpop.permute.xlu1 %1366 }
 0x49f   : > { %v5728_v10 = vpop.permute.xlu0 %4541 }
 0x4a0   : > { %v7435_v28 = vunpack.i.h.bf16 %v5728_v10  ;;  %v4543_v20 = vunpack.i.l.bf16 %v5728_v10 }
 0x4a2   : > { %v5736_v44 = vsel %vm7449_vm15, %v4543_v20, %v7435_v28  ;;  %v1447_v28 = vperm.slane %v1444_v46, 1 }
 0x4a4   : > { %v1396_v38 = vpop.permute.xlu1 %1395 }
 0x4a5   : > { %v1401_v48 = vsel %vm1239_vm14, %v1396_v38, %v1398_v36  ;;  %v1446_v36 = vperm.slane %v1444_v46, 0 }
 0x4a6   : > { %v1410_v35 = vmul.f32 %v1401_v48, %v5286_v9  ;;  %v1449_v9 = vperm.slane %v1444_v46, 3  ;;  %v4528_v48 = vunpack.i.l.bf16 %v5707_v17 }
 0x4a7   : > { %v1394_v53 = vpop.permute.xlu0 %1393 }
 0x4a8   : > { %v1399_v45 = vsel %vm1239_vm14, %v1392_v5, %v1394_v53  ;;  %v1400_v42 = vsel %vm1239_vm14, %v1394_v53, %v1396_v38  ;;  %v4538_v5 = vunpack.i.l.bf16 %v4537_v31 }
 0x4a9   : > { %v1408_v52 = vmul.f32 %v1399_v45, %v5274_v3  ;;  %v1409_v11 = vmul.f32 %v1400_v42, %v5278_v4  ;;  %v4519_v45 = vunpack.i.h.bf16 %v5669_v39 }
 0x4aa   : > { %v1368_v53 = vsel %vm7449_vm15, %v4538_v5, %v4539_v2  ;;  %v7488_v5 = vunpack.i.l.bf16 %v5696_v6 }
 0x4ab   : > { %v4545_v43 = vpack.i.bf16 %v1408_v52, %v1407_v13  ;;  %v4550_v51 = vpack.i.bf16 %v1410_v35, %v1409_v11  ;;  %v1369_v35 = vsel %vm7449_vm15, %v4539_v2, %v4543_v20  ;;  %v4518_v13 = vunpack.i.l.bf16 %v5669_v39 }
 0x4ad   : > { %4546 = vrot.lane.b32.xlu0 %v4545_v43, %s7439_s20  ;;  %4551 = vrot.lane.b32.xlu1 %v4550_v51, %s7439_s20  ;;  %s7518_s20 = smov 65  }
 0x4b5   : > { %1450 = vrot.lane.b32.xlu0 %v1446_v36, %s7437_s21  ;;  %1452 = vrot.lane.b32.xlu1 %v1447_v28, %s7437_s21  ;;  %v4529_v28 = vunpack.i.h.bf16 %v5707_v17  ;;  %v4509_v36 = vunpack.i.h.bf16 %v5638_v22  ;;  %v5776_v17 = vld [vmem:[%s5261_s0 + $0x8] sm:$0xff] }
 0x4b7   : > { %v1301_v39 = vsel %vm7450_vm12, %v4528_v48, %v4529_v28 }
 0x4bd   : > { %1456 = vrot.lane.b32.xlu0 %v1449_v9, %s7437_s21  ;;  %v4508_v9 = vunpack.i.l.bf16 %v5638_v22  ;;  %v1302_v22 = vsel %vm7450_vm12, %v4529_v28, %v7488_v5  ;;  %v4489_v28 = vunpack.i.h.bf16 %v5580_v23  ;;  %v4478_v5 = vunpack.i.l.bf16 %v5523_v18  ;;  %s7517_s21 = smov 63  }
 0x4ec   : > { %v5761_v31 = vpop.permute.xlu2 %1425 }
 0x51f   : > { %v4547_v3 = vpop.permute.xlu0 %4546  ;;  %v5750_v38 = vpop.permute.xlu1 %4551 }
 0x520   : > { %v4549_v4 = vunpack.i.h.bf16 %v4547_v3  ;;  %v4548_v42 = vunpack.i.l.bf16 %v4547_v3  ;;  %v7436_v52 = vunpack.i.h.bf16 %v5750_v38  ;;  %v4553_v11 = vunpack.i.l.bf16 %v5750_v38 }
 0x522   : > { %v1427_v43 = vsel %vm7448_vm13, %v4548_v42, %v4549_v4  ;;  %v1428_v51 = vsel %vm7448_vm13, %v4549_v4, %v4553_v11  ;;  %v5759_v46 = vsel %vm7448_vm13, %v4553_v11, %v7436_v52  ;;  %v5772_v42 = vld [vmem:[%s5261_s0] sm:$0xff]  ;;  %v1455_v52 = vpop.permute.xlu2 %1454 }
 0x523   : > { %2181 = vmatpush.msra.mxu0 %v1427_v43  ;;  %2221 = vmatpush.msrb.mxu2 %v1428_v51  ;;  %v4499_v43 = vunpack.i.h.bf16 %v5620_v26  ;;  %v4498_v51 = vunpack.i.l.bf16 %v5620_v26  ;;  %v7490_v26 = vunpack.i.l.bf16 %v5644_v33 }
 0x525   : > { %2182 = vmatpush.msra.mxu0 %v1368_v53  ;;  %2222 = vmatpush.msrb.mxu2 %v1369_v35  ;;  %v1240_v53 = vsel %vm1239_vm14, %v4518_v13, %v4519_v45  ;;  %v7489_v35 = vunpack.i.l.bf16 %v5667_v8  ;;  %v1180_v13 = vsel %vm7447_vm0, %v4509_v36, %v7490_v26 }
 0x527   : > { %v1451_v3 = vpop.permute.xlu0 %1450  ;;  %v1453_v4 = vpop.permute.xlu1 %1452  ;;  %2183 = vmatpush.msra.mxu0 %v5772_v42  ;;  %2223 = vmatpush.msrb.mxu2 %v5776_v17 }
 0x528   : > { %v1466_v20 = vmul.f32 %v5772_v42, %v1451_v3  ;;  %v1458_v2 = vsel %vm7447_vm0, %v1451_v3, %v1453_v4  ;;  %v1241_v3 = vsel %vm1239_vm14, %v4519_v45, %v7489_v35  ;;  %v4479_v45 = vunpack.i.h.bf16 %v5523_v18 }
 0x529   : > { %v1467_v11 = vmul.f32 %v5776_v17, %v1458_v2  ;;  %2184 = vmatpush.msra.mxu0 %v1301_v39  ;;  %2224 = vmatpush.msrb.mxu2 %v1302_v22  ;;  %v4488_v2 = vunpack.i.l.bf16 %v5580_v23  ;;  %v1179_v39 = vsel %vm7447_vm0, %v4508_v9, %v4509_v36  ;;  %v1119_v23 = vsel %vm1118_vm11, %v4498_v51, %v4499_v43  ;;  %v1503_v22 = vld [vmem:[#allocation4 + $0x20] ss:$8 sm:$0xf] }
 0x52a   : > { %v4469_v9 = vunpack.i.h.bf16 %v5544_v34  ;;  %v4468_v35 = vunpack.i.l.bf16 %v5544_v34  ;;  %v1505_v34 = vperm.slane %v1503_v22, 0 }
 0x52b   : > { %2185 = vmatpush.msra.mxu0 %v1240_v53  ;;  %2225 = vmatpush.msrb.mxu2 %v1241_v3  ;;  %v4555_v48 = vpack.i.bf16 %v1467_v11, %v1466_v20  ;;  %v1459_v20 = vsel %vm7447_vm0, %v1453_v4, %v1455_v52  ;;  %v7491_v53 = vunpack.i.l.bf16 %v5609_v24  ;;  %v1058_v4 = vsel %vm569_vm1, %v4488_v2, %v4489_v28 }
 0x52c   : > { %v4459_v2 = vunpack.i.h.bf16 %v5553_v37 }
 0x52d   : > { %4556 = vrot.lane.b32.xlu1 %v4555_v48, %s7453_s25  ;;  %2186 = vmatpush.msra.mxu0 %v1179_v39  ;;  %v1120_v36 = vsel %vm1118_vm11, %v4499_v43, %v7491_v53  ;;  %v5811_v48 = vld [vmem:[%s5261_s0 + $0x10] sm:$0xff]  ;;  %v5815_v39 = vld [vmem:[%s5261_s0 + $0x18] sm:$0xff]  ;;  %s7516_s0 = smov 71  }
 0x52e   : > { %2226 = vmatpush.msrb.mxu2 %v1180_v13  ;;  %v1468_v51 = vmul.f32 %v5811_v48, %v1459_v20  ;;  %v7492_v13 = vunpack.i.l.bf16 %v5582_v41  ;;  %v7493_v20 = vunpack.i.l.bf16 %v5557_v55 }
 0x52f   : > { %v1457_v11 = vpop.permute.xlu0 %1456  ;;  %2187 = vmatpush.msra.mxu0 %v1119_v23  ;;  %v4458_v23 = vunpack.i.l.bf16 %v5553_v37 }
 0x530   : > { %v1460_v3 = vsel %vm7447_vm0, %v1455_v52, %v1457_v11  ;;  %v1470_v18 = vmul.f32 0.0, %v1457_v11  ;;  %2227 = vmatpush.msrb.mxu2 %v1120_v36  ;;  %v1059_v43 = vsel %vm569_vm1, %v4489_v28, %v7492_v13  ;;  %v998_v52 = vsel %vm631_vm3, %v4478_v5, %v4479_v45 }
 0x531   : > { %v1469_v26 = vmul.f32 %v5815_v39, %v1460_v3  ;;  %2188 = vmatpush.msra.mxu0 %v1058_v4  ;;  %v999_v11 = vsel %vm631_vm3, %v4479_v45, %v7493_v20  ;;  %v4404_v36 = vunpack.i.h.bf16 %v5349_v58  ;;  %v4403_v28 = vunpack.i.l.bf16 %v5349_v58 }
 0x532   : > { %2228 = vmatpush.msrb.mxu2 %v1059_v43  ;;  %1484 = vrot.lane.b32.xlu0 %v1470_v18, %s7453_s25  ;;  %v938_v5 = vsel %vm693_vm2, %v4468_v35, %v4469_v9  ;;  %v7494_v3 = vunpack.i.l.bf16 %v5484_v0  ;;  %v4449_v18 = vunpack.i.h.bf16 %v5480_v62  ;;  %v4448_v45 = vunpack.i.l.bf16 %v5480_v62 }
 0x533   : > { %2189 = vmatpush.msra.mxu0 %v998_v52  ;;  %v4560_v53 = vpack.i.bf16 %v1469_v26, %v1468_v51  ;;  %v878_v4 = vsel %vm755_vm5, %v4458_v23, %v4459_v2  ;;  %v7495_v58 = vunpack.i.l.bf16 %v5510_v16  ;;  %v1507_v26 = vperm.slane %v1503_v22, 2 }
 0x534   : > { %2229 = vmatpush.msrb.mxu2 %v999_v11  ;;  %v939_v37 = vsel %vm693_vm2, %v4469_v9, %v7494_v3  ;;  %v818_v35 = vsel %vm817_vm4, %v4403_v28, %v4404_v36  ;;  %v7496_v13 = vunpack.i.l.bf16 %v5375_v21  ;;  %v4439_v43 = vunpack.i.h.bf16 %v5506_v14 }
 0x535   : > { %4561 = vrot.lane.b32.xlu2 %v4560_v53, %s7453_s25  ;;  %1509 = vrot.lane.b32.xlu1 %v1505_v34, %s5087_s17  ;;  %v879_v51 = vsel %vm755_vm5, %v4459_v2, %v7495_v58  ;;  %v4438_v34 = vunpack.i.l.bf16 %v5506_v14  ;;  %v1508_v62 = vperm.slane %v1503_v22, 3  ;;  %v1506_v52 = vperm.slane %v1503_v22, 1 }
 0x536   : > { %2190 = vmatpush.msra.mxu0 %v938_v5  ;;  %2230 = vmatpush.msrb.mxu2 %v939_v37  ;;  %v819_v9 = vsel %vm817_vm4, %v4404_v36, %v7496_v13  ;;  %v4429_v23 = vunpack.i.h.bf16 %v5536_v30  ;;  %v4428_v2 = vunpack.i.l.bf16 %v5536_v30  ;;  %v785_v20 = vsel %vm784_vm6, %v4448_v45, %v4449_v18 }
 0x537   : > { %v7497_v11 = vunpack.i.l.bf16 %v5540_v32  ;;  %v4419_v14 = vunpack.i.h.bf16 %v5465_v49  ;;  %v4418_v22 = vunpack.i.l.bf16 %v5465_v49  ;;  %v723_v36 = vsel %vm722_vm7, %v4438_v34, %v4439_v43 }
 0x538   : > { %2191 = vmatpush.msra.mxu0 %v878_v4  ;;  %2231 = vmatpush.msrb.mxu2 %v879_v51  ;;  %v7498_v30 = vunpack.i.l.bf16 %v5467_v50  ;;  %v661_v5 = vsel %vm660_vm8, %v4428_v2, %v4429_v23  ;;  %v7499_v3 = vunpack.i.l.bf16 %v5486_v1  ;;  %v7501_v4 = vunpack.i.h.bf16 %v5750_v38 }
 0x539   : > { %v786_v53 = vsel %vm784_vm6, %v4449_v18, %v7497_v11  ;;  %v599_v49 = vsel %vm598_vm9, %v4418_v22, %v4419_v14  ;;  %v7500_v18 = vunpack.i.l.bf16 %v5525_v19  ;;  %v7502_v51 = vunpack.i.h.bf16 %v5728_v10  ;;  %v1562_v22 = vld [vmem:[#allocation4] ss:$8 sm:$0xf] }
 0x53a   : > { %2192 = vmatpush.msra.mxu0 %v818_v35  ;;  %2232 = vmatpush.msrb.mxu2 %v819_v9  ;;  %v724_v28 = vsel %vm722_vm7, %v4439_v43, %v7498_v30  ;;  %v662_v37 = vsel %vm660_vm8, %v4429_v23, %v7499_v3  ;;  %v1430_v58 = vsel %vm7448_vm13, %v7501_v4, %v5761_v31  ;;  %v7503_v35 = vunpack.i.h.bf16 %v5696_v6 }
 0x53b   : > { %1513 = vrot.lane.b32.xlu0 %v1507_v26, %s5087_s17  ;;  %v600_v45 = vsel %vm598_vm9, %v4419_v14, %v7500_v18  ;;  %v1371_v26 = vsel %vm7449_vm15, %v7502_v51, %v5726_v59  ;;  %v7504_v38 = vunpack.i.h.bf16 %v5667_v8  ;;  %v7505_v10 = vunpack.i.h.bf16 %v5644_v33  ;;  %v1621_v51 = vld [vmem:[#allocation4 + $0x1] ss:$8 sm:$0xf] }
 0x53c   : > { %2193 = vmatpush.msra.mxu0 %v785_v20  ;;  %2233 = vmatpush.msrb.mxu2 %v786_v53  ;;  %v1304_v13 = vsel %vm7450_vm12, %v7503_v35, %v5709_v25  ;;  %v7506_v9 = vunpack.i.h.bf16 %v5609_v24  ;;  %v7507_v25 = vunpack.i.h.bf16 %v5582_v41  ;;  %v7509_v24 = vunpack.i.h.bf16 %v5484_v0 }
 0x53d   : > { %1515 = vrot.lane.b32.xlu1 %v1508_v62, %s5087_s17  ;;  %1511 = vrot.lane.b32.xlu2 %v1506_v52, %s5087_s17  ;;  %v1243_v31 = vsel %vm1239_vm14, %v7504_v38, %v5680_v40  ;;  %v1182_v59 = vsel %vm7447_vm0, %v7505_v10, %v5642_v54  ;;  %v7508_v40 = vunpack.i.h.bf16 %v5557_v55  ;;  %v4413_v54 = vunpack.i.l.bf16 %v5390_v29 }
 0x53e   : > { %2194 = vmatpush.msra.mxu0 %v723_v36  ;;  %2234 = vmatpush.msrb.mxu2 %v724_v28  ;;  %v1122_v6 = vsel %vm1118_vm11, %v7506_v9, %v5622_v57  ;;  %v1061_v8 = vsel %vm569_vm1, %v7507_v25, %v5593_v7  ;;  %v941_v57 = vsel %vm693_vm2, %v7509_v24, %v5521_v56  ;;  %v7510_v41 = vunpack.i.h.bf16 %v5510_v16 }
 0x53f   : > { %v1001_v33 = vsel %vm631_vm3, %v7508_v40, %v5555_v12  ;;  %v7511_v43 = vunpack.i.h.bf16 %v5375_v21  ;;  %v7512_v12 = vunpack.i.h.bf16 %v5540_v32  ;;  %v7513_v0 = vunpack.i.h.bf16 %v5467_v50 }
 0x540   : > { %2195 = vmatpush.msra.mxu0 %v661_v5  ;;  %2235 = vmatpush.msrb.mxu2 %v662_v37  ;;  %v881_v7 = vsel %vm755_vm5, %v7510_v41, %v5463_v47  ;;  %v7514_v47 = vunpack.i.h.bf16 %v5486_v1  ;;  %v7515_v16 = vunpack.i.h.bf16 %v5525_v19  ;;  %v1564_v30 = vperm.slane %v1562_v22, 0 }
 0x541   : > { %v821_v55 = vsel %vm817_vm4, %v7511_v43, %v4413_v54  ;;  %v788_v34 = vsel %vm784_vm6, %v7512_v12, %v5482_v63  ;;  %v726_v56 = vsel %vm722_vm7, %v7513_v0, %v5508_v15  ;;  %v1566_v5 = vperm.slane %v1562_v22, 2 }
 0x542   : > { %2196 = vmatpush.msra.mxu0 %v599_v49  ;;  %2236 = vmatpush.msrb.mxu2 %v600_v45  ;;  %v664_v21 = vsel %vm660_vm8, %v7514_v47, %v5460_v61  ;;  %v602_v32 = vsel %vm598_vm9, %v7515_v16, %v5478_v60  ;;  %v1565_v3 = vperm.slane %v1562_v22, 1  ;;  %v1567_v37 = vperm.slane %v1562_v22, 3 }
 0x543   : > { %v1624_v54 = vperm.slane %v1621_v51, 1  ;;  %v1623_v24 = vperm.slane %v1621_v51, 0  ;;  %vm7462_vm0 = vcmask 719872   ;;  %vm7520_vm13 = vcmask 982016  }
 0x544   : > { %2301 = vmatpush.msrb.mxu0 %v1430_v58  ;;  %vm7521_vm15 = vmmov %vm7520_vm13 }
 0x545   : > { %vm7522_vm12 = vmmov %vm7520_vm13 }
 0x546   : > { %2302 = vmatpush.msrb.mxu0 %v1371_v26  ;;  %v1625_v26 = vperm.slane %v1621_v51, 2 }
 0x548   : > { %2303 = vmatpush.msrb.mxu0 %v5815_v39 }
 0x54a   : > { %2304 = vmatpush.msrb.mxu0 %v1304_v13 }
 0x54c   : > { %2305 = vmatpush.msrb.mxu0 %v1243_v31 }
 0x54e   : > { %2306 = vmatpush.msrb.mxu0 %v1182_v59 }
 0x550   : > { %2307 = vmatpush.msrb.mxu0 %v1122_v6 }
 0x552   : > { %2308 = vmatpush.msrb.mxu0 %v1061_v8 }
 0x554   : > { %2309 = vmatpush.msrb.mxu0 %v1001_v33 }
 0x556   : > { %2310 = vmatpush.msrb.mxu0 %v941_v57  ;;  %v1626_v57 = vperm.slane %v1621_v51, 3 }
 0x558   : > { %2311 = vmatpush.msrb.mxu0 %v881_v7 }
 0x55a   : > { %2312 = vmatpush.msrb.mxu0 %v821_v55 }
 0x55c   : > { %2313 = vmatpush.msrb.mxu0 %v788_v34 }
 0x55e   : > { %2314 = vmatpush.msrb.mxu0 %v726_v56 }
 0x560   : > { %2315 = vmatpush.msrb.mxu0 %v664_v21 }
 0x562   : > { %2316 = vmatpush.msrb.mxu0 %v602_v32  ;;  %v1680_v32 = vld [vmem:[#allocation4 + $0x2] ss:$8 sm:$0xf] }
 0x58f   : > { %v5932_v63 = vpop.permute.xlu2 %4561 }
 0x597   : > { %v1512_v15 = vpop.permute.xlu2 %1511 }
 0x59f   : > { %v5934_v62 = vpop.permute.xlu1 %4556 }
 0x5a4   : > { %v5936_v50 = vpop.permute.xlu0 %1484 }
 0x5a7   : > { %v1510_v52 = vpop.permute.xlu1 %1509 }
 0x5a8   : > { %v1517_v23 = vsel %vm1118_vm11, %v1510_v52, %v1512_v15  ;;  %v1525_v1 = vmul.f32 %v5772_v42, %v1510_v52 }
 0x5a9   : > { %v1526_v61 = vmul.f32 %v5776_v17, %v1517_v23 }
 0x5ab   : > { %v4565_v2 = vpack.i.bf16 %v1526_v61, %v1525_v1 }
 0x5ad   : > { %4566 = vrot.lane.b32.xlu2 %v4565_v2, %s7451_s29  ;;  %v1514_v19 = vpop.permute.xlu0 %1513  ;;  %v1682_v2 = vperm.slane %v1680_v32, 0 }
 0x5ae   : > { %v1518_v60 = vsel %vm1118_vm11, %v1512_v15, %v1514_v19 }
 0x5af   : > { %v1527_v20 = vmul.f32 %v5811_v48, %v1518_v60  ;;  %v1516_v11 = vpop.permute.xlu1 %1515  ;;  %v1684_v60 = vperm.slane %v1680_v32, 2 }
 0x5b0   : > { %v1519_v53 = vsel %vm1118_vm11, %v1514_v19, %v1516_v11  ;;  %v1529_v14 = vmul.f32 0.0, %v1516_v11  ;;  %v1683_v11 = vperm.slane %v1680_v32, 1 }
 0x5b1   : > { %v1528_v36 = vmul.f32 %v5815_v39, %v1519_v53 }
 0x5b2   : > { %1543 = vrot.lane.b32.xlu1 %v1529_v14, %s7451_s29 }
 0x5b3   : > { %v4570_v28 = vpack.i.bf16 %v1528_v36, %v1527_v20  ;;  %v1685_v20 = vperm.slane %v1680_v32, 3 }
 0x5b5   : > { %4571 = vrot.lane.b32.xlu0 %v4570_v28, %s7451_s29  ;;  %1568 = vrot.lane.b32.xlu2 %v1564_v30, %s5076_s19 }
 0x5ba   : > { %1572 = vrot.lane.b32.xlu1 %v1566_v5, %s5076_s19 }
 0x5bd   : > { %1570 = vrot.lane.b32.xlu0 %v1565_v3, %s5076_s19  ;;  %1574 = vrot.lane.b32.xlu2 %v1567_v37, %s5076_s19 }
 0x607   : > { %v5952_v49 = vpop.permute.xlu2 %4566 }
 0x60f   : > { %v1569_v18 = vpop.permute.xlu2 %1568 }
 0x610   : > { %v1584_v6 = vmul.f32 %v5772_v42, %v1569_v18 }
 0x617   : > { %v1575_v45 = vpop.permute.xlu2 %1574 }
 0x618   : > { %v1588_v4 = vmul.f32 0.0, %v1575_v45 }
 0x61a   : > { %1602 = vrot.lane.b32.xlu2 %v1588_v4, %s5085_s23 }
 0x622   : > { %1631 = vrot.lane.b32.xlu2 %v1625_v26, %s5077_s16 }
 0x624   : > { %v5955_v58 = vpop.permute.xlu1 %1543 }
 0x627   : > { %v5957_v35 = vpop.permute.xlu0 %4571 }
 0x62c   : > { %v1573_v13 = vpop.permute.xlu1 %1572 }
 0x62d   : > { %v1578_v38 = vsel %vm569_vm1, %v1573_v13, %v1575_v45 }
 0x62e   : > { %v1587_v31 = vmul.f32 %v5815_v39, %v1578_v38  ;;  %v1739_v38 = vld [vmem:[#allocation4 + $0x3] ss:$8 sm:$0xf] }
 0x62f   : > { %v1571_v10 = vpop.permute.xlu0 %1570 }
 0x630   : > { %v1576_v59 = vsel %vm569_vm1, %v1569_v18, %v1571_v10  ;;  %v1577_v9 = vsel %vm569_vm1, %v1571_v10, %v1573_v13  ;;  %v1741_v10 = vperm.slane %v1739_v38, 0 }
 0x631   : > { %v1585_v25 = vmul.f32 %v5776_v17, %v1576_v59  ;;  %v1586_v8 = vmul.f32 %v5811_v48, %v1577_v9  ;;  %v1743_v9 = vperm.slane %v1739_v38, 2 }
 0x633   : > { %v4580_v40 = vpack.i.bf16 %v1587_v31, %v1586_v8  ;;  %v4575_v33 = vpack.i.bf16 %v1585_v25, %v1584_v6  ;;  %v1742_v6 = vperm.slane %v1739_v38, 1  ;;  %v1744_v25 = vperm.slane %v1739_v38, 3 }
 0x635   : > { %4581 = vrot.lane.b32.xlu1 %v4580_v40, %s5085_s23  ;;  %4576 = vrot.lane.b32.xlu0 %v4575_v33, %s5085_s23 }
 0x63d   : > { %1629 = vrot.lane.b32.xlu1 %v1624_v54, %s5077_s16  ;;  %1627 = vrot.lane.b32.xlu0 %v1623_v24, %s5077_s16 }
 0x645   : > { %1633 = vrot.lane.b32.xlu0 %v1626_v57, %s5077_s16  ;;  %v1830_v57 = vld [vmem:[#allocation4 + $0x5] ss:$8 sm:$0xf] }
 0x674   : > { %v5976_v43 = vpop.permute.xlu2 %1602 }
 0x67c   : > { %v1632_v47 = vpop.permute.xlu2 %1631 }
 0x6a7   : > { %v5972_v41 = vpop.permute.xlu1 %4581  ;;  %v5974_v7 = vpop.permute.xlu0 %4576 }
 0x6af   : > { %v1630_v55 = vpop.permute.xlu1 %1629  ;;  %v1628_v12 = vpop.permute.xlu0 %1627 }
 0x6b0   : > { %v1635_v34 = vsel %vm631_vm3, %v1628_v12, %v1630_v55  ;;  %v1643_v0 = vmul.f32 %v5772_v42, %v1628_v12  ;;  %v1636_v16 = vsel %vm631_vm3, %v1630_v55, %v1632_v47  ;;  %v1832_v55 = vperm.slane %v1830_v57, 0 }
 0x6b1   : > { %v1644_v56 = vmul.f32 %v5776_v17, %v1635_v34  ;;  %v1645_v1 = vmul.f32 %v5811_v48, %v1636_v16  ;;  %v1835_v34 = vperm.slane %v1830_v57, 3 }
 0x6b3   : > { %v4585_v21 = vpack.i.bf16 %v1644_v56, %v1643_v0 }
 0x6b5   : > { %4586 = vrot.lane.b32.xlu1 %v4585_v21, %s7460_s30 }
 0x6b7   : > { %v1634_v15 = vpop.permute.xlu0 %1633 }
 0x6b8   : > { %v1637_v52 = vsel %vm631_vm3, %v1632_v47, %v1634_v15  ;;  %v1647_v23 = vmul.f32 0.0, %v1634_v15 }
 0x6b9   : > { %v1646_v61 = vmul.f32 %v5815_v39, %v1637_v52 }
 0x6ba   : > { %1661 = vrot.lane.b32.xlu0 %v1647_v23, %s7460_s30 }
 0x6bb   : > { %v4590_v19 = vpack.i.bf16 %v1646_v61, %v1645_v1 }
 0x6bd   : > { %1686 = vrot.lane.b32.xlu1 %v1682_v2, %s5078_s14  ;;  %4591 = vrot.lane.b32.xlu2 %v4590_v19, %s7460_s30  ;;  %v4615_v2 = vpack.i.bf16 %v5811_v48, %v5776_v17  ;;  %v4620_v19 = vpack.i.bf16 0.0, %v5815_v39 }
 0x6c2   : > { %1690 = vrot.lane.b32.xlu0 %v1684_v60, %s5078_s14  ;;  %v1833_v60 = vperm.slane %v1830_v57, 1 }
 0x6c5   : > { %1692 = vrot.lane.b32.xlu1 %v1685_v20, %s5078_s14  ;;  %1688 = vrot.lane.b32.xlu2 %v1683_v11, %s5078_s14  ;;  %v1834_v20 = vperm.slane %v1830_v57, 2 }
 0x717   : > { %v5992_v53 = vpop.permute.xlu2 %4591 }
 0x71f   : > { %v1689_v36 = vpop.permute.xlu2 %1688 }
 0x727   : > { %v5994_v14 = vpop.permute.xlu1 %4586 }
 0x72c   : > { %v5996_v22 = vpop.permute.xlu0 %1661 }
 0x72f   : > { %v1687_v30 = vpop.permute.xlu1 %1686 }
 0x730   : > { %v1702_v28 = vmul.f32 %v5772_v42, %v1687_v30  ;;  %v1694_v5 = vsel %vm693_vm2, %v1687_v30, %v1689_v36 }
 0x731   : > { %v1703_v3 = vmul.f32 %v5776_v17, %v1694_v5 }
 0x733   : > { %v4595_v37 = vpack.i.bf16 %v1703_v3, %v1702_v28 }
 0x734   : > { %v1691_v18 = vpop.permute.xlu0 %1690 }
 0x735   : > { %4596 = vrot.lane.b32.xlu2 %v4595_v37, %s7516_s0  ;;  %v1695_v45 = vsel %vm693_vm2, %v1689_v36, %v1691_v18  ;;  %v1889_v37 = vld [vmem:[#allocation4 + $0x6] ss:$8 sm:$0xf] }
 0x736   : > { %v1704_v51 = vmul.f32 %v5811_v48, %v1695_v45  ;;  %v1894_v57 = vperm.slane %v1889_v37, 3 }
 0x737   : > { %v1693_v4 = vpop.permute.xlu1 %1692 }
 0x738   : > { %v1706_v26 = vmul.f32 0.0, %v1693_v4  ;;  %v1696_v13 = vsel %vm693_vm2, %v1691_v18, %v1693_v4  ;;  %v1893_v18 = vperm.slane %v1889_v37, 2 }
 0x739   : > { %v1705_v31 = vmul.f32 %v5815_v39, %v1696_v13 }
 0x73a   : > { %1720 = vrot.lane.b32.xlu1 %v1706_v26, %s7516_s0 }
 0x73b   : > { %v4600_v59 = vpack.i.bf16 %v1705_v31, %v1704_v51 }
 0x73d   : > { %4601 = vrot.lane.b32.xlu0 %v4600_v59, %s7516_s0  ;;  %1745 = vrot.lane.b32.xlu2 %v1741_v10, %s7517_s21 }
 0x742   : > { %1749 = vrot.lane.b32.xlu1 %v1743_v9, %s7517_s21 }
 0x745   : > { %1747 = vrot.lane.b32.xlu0 %v1742_v6, %s7517_s21  ;;  %1751 = vrot.lane.b32.xlu2 %v1744_v25, %s7517_s21 }
 0x78f   : > { %v6012_v8 = vpop.permute.xlu2 %4596 }
 0x797   : > { %v1746_v40 = vpop.permute.xlu2 %1745 }
 0x798   : > { %v1761_v15 = vmul.f32 %v5772_v42, %v1746_v40 }
 0x79f   : > { %v1752_v33 = vpop.permute.xlu2 %1751 }
 0x7a0   : > { %v1765_v54 = vmul.f32 0.0, %v1752_v33 }
 0x7a2   : > { %1779 = vrot.lane.b32.xlu2 %v1765_v54, %s7518_s20  ;;  %v1892_v54 = vperm.slane %v1889_v37, 1 }
 0x7aa   : > { %1836 = vrot.lane.b32.xlu2 %v1832_v55, %s7518_s20 }
 0x7ac   : > { %v6015_v24 = vpop.permute.xlu1 %1720 }
 0x7af   : > { %v6017_v12 = vpop.permute.xlu0 %4601 }
 0x7b2   : > { %1842 = vrot.lane.b32.xlu2 %v1835_v34, %s7518_s20 }
 0x7b4   : > { %v1750_v0 = vpop.permute.xlu1 %1749 }
 0x7b5   : > { %v1755_v56 = vsel %vm755_vm5, %v1750_v0, %v1752_v33  ;;  %v1891_v33 = vperm.slane %v1889_v37, 0 }
 0x7b6   : > { %v1764_v21 = vmul.f32 %v5815_v39, %v1755_v56 }
 0x7b7   : > { %v1748_v47 = vpop.permute.xlu0 %1747 }
 0x7b8   : > { %v1753_v16 = vsel %vm755_vm5, %v1746_v40, %v1748_v47  ;;  %v1754_v32 = vsel %vm755_vm5, %v1748_v47, %v1750_v0 }
 0x7b9   : > { %v1762_v52 = vmul.f32 %v5776_v17, %v1753_v16  ;;  %v1763_v23 = vmul.f32 %v5811_v48, %v1754_v32 }
 0x7bb   : > { %v4605_v1 = vpack.i.bf16 %v1762_v52, %v1761_v15  ;;  %v4610_v61 = vpack.i.bf16 %v1764_v21, %v1763_v23 }
 0x7bd   : > { %4606 = vrot.lane.b32.xlu0 %v4605_v1, %s7518_s20  ;;  %4611 = vrot.lane.b32.xlu1 %v4610_v61, %s7518_s20  ;;  %v1948_v1 = vld [vmem:[#allocation4 + $0x7] ss:$8 sm:$0xf] }
 0x7be   : > { %v1953_v37 = vperm.slane %v1948_v1, 3 }
 0x7c5   : > { %4616 = vrot.lane.b32.xlu0 %v4615_v2, %s7519_s15  ;;  %4621 = vrot.lane.b32.xlu1 %v4620_v19, %s7519_s15 }
 0x7cd   : > { %1838 = vrot.lane.b32.xlu0 %v1833_v60, %s7518_s20  ;;  %1840 = vrot.lane.b32.xlu1 %v1834_v20, %s7518_s20 }
 0x7fc   : > { %v6037_v11 = vpop.permute.xlu2 %1779 }
 0x804   : > { %v1837_v36 = vpop.permute.xlu2 %1836 }
 0x805   : > { %v1852_v10 = vmul.f32 %v5772_v42, %v1837_v36 }
 0x80c   : > { %v1843_v30 = vpop.permute.xlu2 %1842 }
 0x80d   : > { %v1856_v28 = vmul.f32 0.0, %v1843_v30 }
 0x80f   : > { %1870 = vrot.lane.b32.xlu2 %v1856_v28, %s7517_s21  ;;  %v1952_v28 = vperm.slane %v1948_v1, 2 }
 0x817   : > { %1899 = vrot.lane.b32.xlu2 %v1893_v18, %s7516_s0  ;;  %v1951_v18 = vperm.slane %v1948_v1, 1 }
 0x82f   : > { %v6040_v5 = vpop.permute.xlu0 %4606  ;;  %v6042_v3 = vpop.permute.xlu1 %4611 }
 0x837   : > { %v6044_v45 = vpop.permute.xlu0 %4616  ;;  %v6046_v4 = vpop.permute.xlu1 %4621 }
 0x83f   : > { %v1839_v51 = vpop.permute.xlu0 %1838  ;;  %v1841_v26 = vpop.permute.xlu1 %1840 }
 0x840   : > { %v1844_v13 = vsel %vm784_vm6, %v1837_v36, %v1839_v51  ;;  %v1845_v38 = vsel %vm784_vm6, %v1839_v51, %v1841_v26  ;;  %v1846_v31 = vsel %vm784_vm6, %v1841_v26, %v1843_v30  ;;  %v1950_v36 = vperm.slane %v1948_v1, 0 }
 0x841   : > { %v1853_v59 = vmul.f32 %v5776_v17, %v1844_v13  ;;  %v1854_v9 = vmul.f32 %v5811_v48, %v1845_v38  ;;  %v1855_v6 = vmul.f32 %v5815_v39, %v1846_v31 }
 0x843   : > { %v4625_v25 = vpack.i.bf16 %v1853_v59, %v1852_v10  ;;  %v4630_v40 = vpack.i.bf16 %v1855_v6, %v1854_v9 }
 0x845   : > { %4626 = vrot.lane.b32.xlu0 %v4625_v25, %s7517_s21  ;;  %4631 = vrot.lane.b32.xlu1 %v4630_v40, %s7517_s21 }
 0x84d   : > { %1895 = vrot.lane.b32.xlu0 %v1891_v33, %s7516_s0  ;;  %1897 = vrot.lane.b32.xlu1 %v1892_v54, %s7516_s0 }
 0x855   : > { %1901 = vrot.lane.b32.xlu0 %v1894_v57, %s7516_s0 }
 0x869   : > { %v6065_v0 = vpop.permute.xlu2 %1870 }
 0x871   : > { %v1900_v15 = vpop.permute.xlu2 %1899 }
 0x8b7   : > { %v6061_v55 = vpop.permute.xlu0 %4626  ;;  %v6063_v34 = vpop.permute.xlu1 %4631 }
 0x8bf   : > { %v1896_v56 = vpop.permute.xlu0 %1895  ;;  %v1898_v47 = vpop.permute.xlu1 %1897 }
 0x8c0   : > { %v1911_v21 = vmul.f32 %v5772_v42, %v1896_v56  ;;  %v1903_v16 = vsel %vm722_vm7, %v1896_v56, %v1898_v47  ;;  %v1904_v23 = vsel %vm722_vm7, %v1898_v47, %v1900_v15  ;;  %v2007_v47 = vld [vmem:[#allocation4 + $0x20] ss:$8 sm:$0xf] }
 0x8c1   : > { %v1912_v32 = vmul.f32 %v5776_v17, %v1903_v16  ;;  %v1913_v60 = vmul.f32 %v5811_v48, %v1904_v23  ;;  %v2009_v16 = vperm.slane %v2007_v47, 0  ;;  %v2012_v23 = vperm.slane %v2007_v47, 3 }
 0x8c3   : > { %v4635_v52 = vpack.i.bf16 %v1912_v32, %v1911_v21 }
 0x8c5   : > { %4636 = vrot.lane.b32.xlu1 %v4635_v52, %s5078_s14  ;;  %v2010_v52 = vperm.slane %v2007_v47, 1 }
 0x8c7   : > { %v1902_v61 = vpop.permute.xlu0 %1901 }
 0x8c8   : > { %v1905_v2 = vsel %vm722_vm7, %v1900_v15, %v1902_v61  ;;  %v1915_v19 = vmul.f32 0.0, %v1902_v61  ;;  %v2011_v15 = vperm.slane %v2007_v47, 2  ;;  %v6104_v61 = vld [vmem:[%s7381_s2] sm:$0xff] }
 0x8c9   : > { %v1914_v20 = vmul.f32 %v5815_v39, %v1905_v2  ;;  %2197 = vmatmul.f32.vlgmr.msra.gmra.mxu0 %v6104_v61  ;;  %2237 = vmatmul.f32.vlgmr.msrb.gmra.mxu2 %v6104_v61 }
 0x8ca   : > { %1929 = vrot.lane.b32.xlu0 %v1915_v19, %s5078_s14 }
 0x8cb   : > { %v4640_v30 = vpack.i.bf16 %v1914_v20, %v1913_v60 }
 0x8cd   : > { %4641 = vrot.lane.b32.xlu2 %v4640_v30, %s5078_s14  ;;  %1954 = vrot.lane.b32.xlu1 %v1950_v36, %s7460_s30 }
 0x8d1   : > { %2317 = vmatmul.f32.vlgmr.msrb.gmra.mxu0 %v6104_v61 }
 0x8d2   : > { %1958 = vrot.lane.b32.xlu0 %v1952_v28, %s7460_s30 }
 0x8d5   : > { %1960 = vrot.lane.b32.xlu1 %v1953_v37, %s7460_s30  ;;  %1956 = vrot.lane.b32.xlu2 %v1951_v18, %s7460_s30 }
 0x927   : > { %v6081_v51 = vpop.permute.xlu2 %4641 }
 0x92f   : > { %v1957_v38 = vpop.permute.xlu2 %1956 }
 0x937   : > { %v6083_v26 = vpop.permute.xlu1 %4636 }
 0x93c   : > { %v6085_v13 = vpop.permute.xlu0 %1929 }
 0x93f   : > { %v1955_v31 = vpop.permute.xlu1 %1954 }
 0x940   : > { %v1962_v10 = vsel %vm660_vm8, %v1955_v31, %v1957_v38  ;;  %v1970_v59 = vmul.f32 %v5772_v42, %v1955_v31 }
 0x941   : > { %v1971_v9 = vmul.f32 %v5776_v17, %v1962_v10 }
 0x943   : > { %v4645_v6 = vpack.i.bf16 %v1971_v9, %v1970_v59 }
 0x944   : > { %v1959_v25 = vpop.permute.xlu0 %1958 }
 0x945   : > { %4646 = vrot.lane.b32.xlu2 %v4645_v6, %s5077_s16  ;;  %v1963_v40 = vsel %vm660_vm8, %v1957_v38, %v1959_v25 }
 0x946   : > { %v1972_v33 = vmul.f32 %v5811_v48, %v1963_v40 }
 0x947   : > { %v1961_v54 = vpop.permute.xlu1 %1960 }
 0x948   : > { %v1964_v57 = vsel %vm660_vm8, %v1959_v25, %v1961_v54  ;;  %v1974_v56 = vmul.f32 0.0, %v1961_v54 }
 0x949   : > { %v1973_v21 = vmul.f32 %v5815_v39, %v1964_v57 }
 0x94a   : > { %1988 = vrot.lane.b32.xlu1 %v1974_v56, %s5077_s16 }
 0x94b   : > { %v4650_v32 = vpack.i.bf16 %v1973_v21, %v1972_v33 }
 0x94d   : > { %4651 = vrot.lane.b32.xlu0 %v4650_v32, %s5077_s16  ;;  %2013 = vrot.lane.b32.xlu2 %v2009_v16, %s5085_s23  ;;  %v4639_v16 = vunpack.i.h.bf16 %v6083_v26 }
 0x952   : > { %2017 = vrot.lane.b32.xlu1 %v2011_v15, %s5085_s23 }
 0x955   : > { %2015 = vrot.lane.b32.xlu0 %v2010_v52, %s5085_s23  ;;  %2019 = vrot.lane.b32.xlu2 %v2012_v23, %s5085_s23  ;;  %v4638_v52 = vunpack.i.l.bf16 %v6083_v26  ;;  %v4633_v26 = vunpack.i.l.bf16 %v6063_v34 }
 0x99f   : > { %v4647_v1 = vpop.permute.xlu2 %4646 }
 0x9a0   : > { %v4649_v40 = vunpack.i.h.bf16 %v4647_v1  ;;  %v4648_v33 = vunpack.i.l.bf16 %v4647_v1 }
 0x9a7   : > { %v2014_v2 = vpop.permute.xlu2 %2013 }
 0x9a8   : > { %v2029_v10 = vmul.f32 %v5772_v42, %v2014_v2 }
 0x9af   : > { %v2020_v19 = vpop.permute.xlu2 %2019 }
 0x9b0   : > { %v2033_v60 = vmul.f32 0.0, %v2020_v19 }
 0x9b2   : > { %2047 = vrot.lane.b32.xlu2 %v2033_v60, %s5076_s19  ;;  %v4629_v60 = vunpack.i.h.bf16 %v6061_v55 }
 0x9bc   : > { %v1989_v20 = vpop.permute.xlu1 %1988 }
 0x9bf   : > { %v6110_v36 = vpop.permute.xlu0 %4651 }
 0x9c0   : > { %v4653_v54 = vunpack.i.l.bf16 %v6110_v36  ;;  %v4654_v32 = vunpack.i.h.bf16 %v6110_v36  ;;  %v7523_v36 = vld [vmem:[#allocation30_spill] sm:$0xff] }
 0x9c4   : > { %v2018_v30 = vpop.permute.xlu1 %2017 }
 0x9c5   : > { %v2023_v28 = vsel %vm598_vm9, %v2018_v30, %v2020_v19  ;;  %v4414_v19 = vunpack.i.h.bf16 %v5390_v29  ;;  %v4634_v29 = vunpack.i.h.bf16 %v6063_v34  ;;  %v7525_v34 = vld [vmem:[#allocation28_spill] sm:$0xff] }
 0x9c6   : > { %v2032_v37 = vmul.f32 %v5815_v39, %v2023_v28  ;;  %v2171_v39 = vld [vmem:[%s7382_s3] sm:$0xff]  ;;  %v4643_v28 = vunpack.i.l.bf16 %v6081_v51 }
 0x9c7   : > { %v2016_v18 = vpop.permute.xlu0 %2015 }
 0x9c8   : > { %v2022_v38 = vsel %vm598_vm9, %v2016_v18, %v2018_v30  ;;  %v2021_v31 = vsel %vm598_vm9, %v2014_v2, %v2016_v18  ;;  %v4628_v30 = vunpack.i.l.bf16 %v6061_v55  ;;  %v1991_v18 = vsel %vm631_vm3, %v4649_v40, %v4653_v54 }
 0x9c9   : > { %v2031_v59 = vmul.f32 %v5811_v48, %v2022_v38  ;;  %v2030_v9 = vmul.f32 %v5776_v17, %v2021_v31  ;;  %v6148_v38 = vld [vmem:[#allocation4] ss:$8 sm:$0xf]  ;;  %v4644_v31 = vunpack.i.h.bf16 %v6081_v51  ;;  %v1993_v55 = vsel %vm631_vm3, %v4654_v32, %v1989_v20 }
 0x9ca   : > { %v7524_v51 = vld [vmem:[#allocation29_spill] sm:$0xff] }
 0x9cb   : > { %v4660_v6 = vpack.i.bf16 %v2032_v37, %v2031_v59  ;;  %v4655_v25 = vpack.i.bf16 %v2030_v9, %v2029_v10  ;;  %v1990_v37 = vsel %vm631_vm3, %v4648_v33, %v4649_v40  ;;  %v2356_v10 = vperm.slane %v6148_v38, 0 }
 0x9cc   : > { %v4619_v59 = vunpack.i.h.bf16 %v6044_v45  ;;  %v4618_v9 = vunpack.i.l.bf16 %v6044_v45  ;;  %v4624_v40 = vunpack.i.h.bf16 %v6046_v4  ;;  %v4623_v33 = vunpack.i.l.bf16 %v6046_v4  ;;  %v7526_v4 = vld [vmem:[#allocation27_spill] sm:$0xff] }
 0x9cd   : > { %4661 = vrot.lane.b32.xlu1 %v4660_v6, %s5076_s19  ;;  %4656 = vrot.lane.b32.xlu0 %v4655_v25, %s5076_s19  ;;  %v1931_v6 = vsel %vm693_vm2, %v4638_v52, %v4639_v16  ;;  %v1932_v25 = vsel %vm693_vm2, %v4639_v16, %v4643_v28  ;;  %v1934_v20 = vsel %vm693_vm2, %v4644_v31, %v6085_v13  ;;  %v4614_v52 = vunpack.i.h.bf16 %v6042_v3 }
 0x9ce   : > { %v1873_v16 = vsel %vm755_vm5, %v4629_v60, %v4633_v26  ;;  %v4598_v13 = vunpack.i.l.bf16 %v6012_v8 }
 0x9d5   : > { %2174 = vperm.xlu0 %4399, %v2171_v39   ;;  %v4609_v39 = vunpack.i.h.bf16 %v6040_v5  ;;  %2360 = vrot.lane.b32.xlu1 %v2356_v10, %s5076_s19  ;;  %v4579_v10 = vunpack.i.h.bf16 %v5974_v7 }
 0xa0c   : > { %v2048_v15 = vpop.permute.xlu2 %2047 }
 0xa3f   : > { %v6125_v42 = vpop.permute.xlu1 %4661  ;;  %v4657_v57 = vpop.permute.xlu0 %4656 }
 0xa40   : > { %v4664_v17 = vunpack.i.h.bf16 %v6125_v42  ;;  %v4663_v56 = vunpack.i.l.bf16 %v6125_v42  ;;  %v4659_v47 = vunpack.i.h.bf16 %v4657_v57  ;;  %v4658_v21 = vunpack.i.l.bf16 %v4657_v57  ;;  %v7528_v42 = vld [vmem:[#allocation21_spill] sm:$0xff] }
 0xa41   : > { %v4608_v57 = vunpack.i.l.bf16 %v6040_v5  ;;  %v1875_v5 = vsel %vm755_vm5, %v4634_v29, %v6065_v0  ;;  %v1816_v0 = vsel %vm817_vm4, %v4623_v33, %v4624_v40 }
 0xa42   : > { %v2049_v23 = vsel %vm569_vm1, %v4658_v21, %v4659_v47  ;;  %v2050_v1 = vsel %vm569_vm1, %v4659_v47, %v4663_v56  ;;  %v2052_v2 = vsel %vm569_vm1, %v4664_v17, %v2048_v15  ;;  %v4613_v47 = vunpack.i.l.bf16 %v6042_v3 }
 0xa43   : > { %2206 = vmatpush.msrb.mxu1 %v2049_v23  ;;  %2246 = vmatpush.msra.mxu3 %v2050_v1  ;;  %v1872_v21 = vsel %vm755_vm5, %v4628_v30, %v4629_v60  ;;  %v4599_v15 = vunpack.i.h.bf16 %v6012_v8  ;;  %v4603_v23 = vunpack.i.l.bf16 %v6017_v12  ;;  %v1813_v1 = vsel %vm817_vm4, %v4414_v19, %v4618_v9 }
 0xa44   : > { %2326 = vmatpush.msra.mxu2 %v2052_v2  ;;  %v1814_v2 = vsel %vm817_vm4, %v4618_v9, %v4619_v59  ;;  %v4589_v60 = vunpack.i.h.bf16 %v5994_v14  ;;  %v4604_v30 = vunpack.i.h.bf16 %v6017_v12  ;;  %v4588_v8 = vunpack.i.l.bf16 %v5994_v14 }
 0xa45   : > { %2207 = vmatpush.msrb.mxu1 %v1990_v37  ;;  %2247 = vmatpush.msra.mxu3 %v1991_v18  ;;  %v1781_v37 = vsel %vm784_vm6, %v4608_v57, %v4609_v39  ;;  %v1782_v19 = vsel %vm784_vm6, %v4609_v39, %v4613_v47  ;;  %v2358_v18 = vperm.slane %v6148_v38, 2  ;;  %v1784_v14 = vsel %vm784_vm6, %v4614_v52, %v6037_v11 }
 0xa46   : > { %2327 = vmatpush.msra.mxu2 %v1993_v55  ;;  %v4583_v55 = vunpack.i.l.bf16 %v5972_v41  ;;  %v2359_v9 = vperm.slane %v6148_v38, 3  ;;  %v1722_v39 = vsel %vm722_vm7, %v4598_v13, %v4599_v15  ;;  %v1723_v40 = vsel %vm722_vm7, %v4599_v15, %v4603_v23 }
 0xa47   : > { %2208 = vmatpush.msrb.mxu1 %v1931_v6  ;;  %2248 = vmatpush.msra.mxu3 %v1932_v25  ;;  %v4578_v6 = vunpack.i.l.bf16 %v5974_v7  ;;  %v4593_v25 = vunpack.i.l.bf16 %v5992_v53  ;;  %v4584_v57 = vunpack.i.h.bf16 %v5972_v41  ;;  %v4594_v11 = vunpack.i.h.bf16 %v5992_v53  ;;  %v7531_v41 = vld [vmem:[#allocation25_spill] sm:$0xff] }
 0xa48   : > { %2328 = vmatpush.msra.mxu2 %v1934_v20  ;;  %2364 = vrot.lane.b32.xlu0 %v2358_v18, %s5076_s19  ;;  %v4569_v20 = vunpack.i.h.bf16 %v5952_v49  ;;  %v1725_v7 = vsel %vm722_vm7, %v4604_v30, %v6015_v24  ;;  %v1663_v15 = vsel %vm660_vm8, %v4588_v8, %v4589_v60  ;;  %v4574_v13 = vunpack.i.h.bf16 %v5957_v35 }
 0xa49   : > { %2209 = vmatpush.msrb.mxu1 %v1872_v21  ;;  %2249 = vmatpush.msra.mxu3 %v1873_v16  ;;  %v4568_v21 = vunpack.i.l.bf16 %v5952_v49  ;;  %v4573_v16 = vunpack.i.l.bf16 %v5957_v35  ;;  %v1666_v49 = vsel %vm660_vm8, %v4594_v11, %v5996_v22  ;;  %v4559_v24 = vunpack.i.h.bf16 %v5934_v62  ;;  %v6333_v35 = vpop.f32.mrf.mxu1 }
 0xa4a   : > { %2329 = vmatpush.msra.mxu2 %v1875_v5  ;;  %v1664_v5 = vsel %vm660_vm8, %v4589_v60, %v4593_v25  ;;  %2366 = vrot.lane.b32.xlu1 %v2359_v9, %s5076_s19  ;;  %v1605_v60 = vsel %vm598_vm9, %v4579_v10, %v4583_v55  ;;  %v4563_v22 = vunpack.i.l.bf16 %v5932_v63  ;;  %v1724_v45 = vsel %vm722_vm7, %v4603_v23, %v4604_v30 }
 0xa4b   : > { %2210 = vmatpush.msrb.mxu1 %v1813_v1  ;;  %2250 = vmatpush.msra.mxu3 %v1814_v2  ;;  %v4558_v1 = vunpack.i.l.bf16 %v5934_v62  ;;  %v1604_v2 = vsel %vm598_vm9, %v4578_v6, %v4579_v10  ;;  %v1545_v8 = vsel %vm1089_vm10, %v4568_v21, %v4569_v20  ;;  %v1546_v62 = vsel %vm1089_vm10, %v4569_v20, %v4573_v16 }
 0xa4c   : > { %2330 = vmatpush.msra.mxu2 %v1816_v0  ;;  %v1607_v0 = vsel %vm598_vm9, %v4584_v57, %v5976_v43  ;;  %v2062_v43 = vld [vmem:[%s7381_s2 + $0x8] sm:$0xff]  ;;  %v1487_v10 = vsel %vm7521_vm15, %v4559_v24, %v4563_v22  ;;  %v1665_v3 = vsel %vm660_vm8, %v4593_v25, %v4594_v11  ;;  %v1606_v12 = vsel %vm598_vm9, %v4583_v55, %v4584_v57  ;;  %vm7556_vm15 = vmmov %vm7522_vm12 }
 0xa4d   : > { %2211 = vmatpush.msrb.mxu1 %v1781_v37  ;;  %2251 = vmatpush.msra.mxu3 %v1782_v19  ;;  %v4564_v37 = vunpack.i.h.bf16 %v5932_v63  ;;  %v1548_v19 = vsel %vm1089_vm10, %v4574_v13, %v5955_v58  ;;  %v1486_v18 = vsel %vm7520_vm13, %v4558_v1, %v4559_v24  ;;  %v2357_v58 = vperm.slane %v6148_v38, 1  ;;  %v7534_v38 = vld [vmem:[#allocation24_spill] sm:$0xff]  ;;  %7535 = vst [vmem:[#allocation30_spill] sm:$0xff] %v6333_v35  ;;  %vm7554_vm13 = vmmov %vm7522_vm12 }
 0xa4e   : > { %2331 = vmatpush.msra.mxu2 %v1784_v14  ;;  %v2051_v14 = vsel %vm569_vm1, %v4663_v56, %v4664_v17  ;;  %v1547_v53 = vsel %vm1089_vm10, %v4573_v16, %v4574_v13  ;;  %v7529_v17 = vld [vmem:[#allocation23_spill] sm:$0xff] }
 0xa4f   : > { %2212 = vmatpush.msrb.mxu1 %v1722_v39  ;;  %2252 = vmatpush.msra.mxu3 %v1723_v40  ;;  %v1489_v63 = vsel %vm7522_vm12, %v4564_v37, %v5936_v50  ;;  %v1992_v50 = vsel %vm631_vm3, %v4653_v54, %v4654_v32  ;;  %v7527_v54 = vld [vmem:[#allocation26_spill] sm:$0xff]  ;;  %v1488_v56 = vsel %vm7522_vm12, %v4563_v22, %v4564_v37  ;;  %v7530_v32 = vld [vmem:[#allocation19_spill] sm:$0xff]  ;;  %v6341_v40 = vpop.f32.mrf.mxu3 }
 0xa50   : > { %2332 = vmatpush.msra.mxu2 %v1725_v7  ;;  %2362 = vrot.lane.b32.xlu2 %v2357_v58, %s5076_s19  ;;  %7537 = vst [vmem:[#allocation28_spill] sm:$0xff] %v6341_v40  ;;  %v2413_v16 = vld [vmem:[#allocation4 + $0x1] ss:$8 sm:$0xf] }
 0xa51   : > { %2213 = vmatpush.msrb.mxu1 %v1663_v15  ;;  %2253 = vmatpush.msra.mxu3 %v1664_v5  ;;  %v2415_v13 = vperm.slane %v2413_v16, 0  ;;  %v2417_v24 = vperm.slane %v2413_v16, 2  ;;  %v2418_v1 = vperm.slane %v2413_v16, 3 }
 0xa52   : > { %2333 = vmatpush.msra.mxu2 %v1666_v49 }
 0xa53   : > { %2214 = vmatpush.msrb.mxu1 %v1604_v2  ;;  %2254 = vmatpush.msra.mxu3 %v1605_v60 }
 0xa54   : > { %2334 = vmatpush.msra.mxu2 %v1607_v0 }
 0xa55   : > { %2215 = vmatpush.msrb.mxu1 %v1545_v8  ;;  %2255 = vmatpush.msra.mxu3 %v1546_v62 }
 0xa56   : > { %2335 = vmatpush.msra.mxu2 %v1548_v19 }
 0xa57   : > { %2216 = vmatpush.msrb.mxu1 %v1486_v18  ;;  %2256 = vmatpush.msra.mxu3 %v1487_v10  ;;  %v6348_v49 = vpop.f32.mrf.mxu3 }
 0xa58   : > { %2336 = vmatpush.msra.mxu2 %v1489_v63  ;;  %4304 = vmatmul.msk.f32.vlgmr.msrb.gmra.mxu1 %vm7462_vm0, %v2062_v43  ;;  %7538 = vst [vmem:[#allocation27_spill] sm:$0xff] %v6348_v49 }
 0xa59   : > { %4305 = vmatmul.msk.f32.vlgmr.msra.gmra.mxu3 %vm7462_vm0, %v2062_v43  ;;  %2261 = vmatpush.msra.mxu1 %v5759_v46  ;;  %v1933_v46 = vsel %vm693_vm2, %v4643_v28, %v4644_v31  ;;  %v7533_v28 = vld [vmem:[#allocation22_spill] sm:$0xff]  ;;  %v2198_v31 = vpop.f32.mrf.mxu0 }
 0xa5a   : > { %2286 = vmatpush.msrb.mxu3 %v2051_v14  ;;  %4307 = vmatmul.msk.f32.vlgmr.msra.gmra.mxu2 %vm7462_vm0, %v2062_v43 }
 0xa5b   : > { %2262 = vmatpush.msra.mxu1 %v5736_v44  ;;  %v1874_v44 = vsel %vm755_vm5, %v4633_v26, %v4634_v29  ;;  %v7532_v26 = vld [vmem:[#allocation20_spill] sm:$0xff]  ;;  %v6335_v29 = vpop.f32.mrf.mxu2 }
 0xa5c   : > { %2287 = vmatpush.msrb.mxu3 %v1992_v50  ;;  %7536 = vst [vmem:[#allocation29_spill] sm:$0xff] %v6335_v29 }
 0xa5d   : > { %2263 = vmatpush.msra.mxu1 %v5811_v48  ;;  %v1815_v48 = vsel %vm817_vm4, %v4619_v59, %v4623_v33  ;;  %v2175_v59 = vpop.permute.xlu0 %2174 }
 0xa5e   : > { %2288 = vmatpush.msrb.mxu3 %v1933_v46  ;;  %v2199_v33 = vadd.f32 %v2198_v31, %v2175_v59  ;;  %v2416_v46 = vperm.slane %v2413_v16, 1 }
 0xa5f   : > { %2264 = vmatpush.msra.mxu1 %v5705_v27  ;;  %v1783_v27 = vsel %vm784_vm6, %v4613_v47, %v4614_v52  ;;  %v2361_v47 = vpop.permute.xlu1 %2360 }
 0xa60   : > { %2289 = vmatpush.msrb.mxu3 %v1874_v44  ;;  %v2376_v25 = vmul.f32 0.0, %v2361_v47 }
 0xa61   : > { %2265 = vmatpush.msra.mxu1 %v7523_v36  ;;  %v2318_v39 = vpop.f32.mrf.mxu0 }
 0xa62   : > { %2290 = vmatpush.msrb.mxu3 %v1815_v48  ;;  %v2319_v20 = vadd.f32 %v2318_v39, %v2175_v59 }
 0xa63   : > { %2266 = vmatpush.msra.mxu1 %v7524_v51  ;;  %v2238_v23 = vpop.f32.mrf.mxu2 }
 0xa64   : > { %2291 = vmatpush.msrb.mxu3 %v1783_v27  ;;  %v2239_v60 = vadd.f32 %v2238_v23, %v2175_v59 }
 0xa65   : > { %2267 = vmatpush.msra.mxu1 %v7525_v34  ;;  %v2472_v34 = vld [vmem:[#allocation4 + $0x2] ss:$8 sm:$0xf] }
 0xa66   : > { %2292 = vmatpush.msrb.mxu3 %v1724_v45  ;;  %v2476_v45 = vperm.slane %v2472_v34, 2  ;;  %v2474_v31 = vperm.slane %v2472_v34, 0 }
 0xa67   : > { %2268 = vmatpush.msra.mxu1 %v7526_v4 }
 0xa68   : > { %2293 = vmatpush.msrb.mxu3 %v1665_v3 }
 0xa69   : > { %2269 = vmatpush.msra.mxu1 %v7527_v54 }
 0xa6a   : > { %2294 = vmatpush.msrb.mxu3 %v1606_v12 }
 0xa6b   : > { %2270 = vmatpush.msra.mxu1 %v7528_v42 }
 0xa6c   : > { %2295 = vmatpush.msrb.mxu3 %v1547_v53 }
 0xa6d   : > { %2271 = vmatpush.msra.mxu1 %v7529_v17 }
 0xa6e   : > { %2296 = vmatpush.msrb.mxu3 %v1488_v56 }
 0xa6f   : > { %2272 = vmatpush.msra.mxu1 %v7530_v32  ;;  %4306 = vmatmul.msk.f32.vlgmr.msrb.gmra.mxu3 %vm7462_vm0, %v2062_v43 }
 0xa71   : > { %2273 = vmatpush.msra.mxu1 %v7531_v41 }
 0xa73   : > { %2274 = vmatpush.msra.mxu1 %v7532_v26 }
 0xa75   : > { %2275 = vmatpush.msra.mxu1 %v7533_v28 }
 0xa77   : > { %2276 = vmatpush.msra.mxu1 %v7534_v38  ;;  %v2475_v38 = vperm.slane %v2472_v34, 1 }
 0xa78   : > { %2277 = vmatmul.f32.vlgmr.msra.gmra.mxu1 %v6104_v61 }
 0xaaa   : > { %v2363_v52 = vpop.permute.xlu2 %2362 }
 0xaab   : > { %v2368_v9 = vsel %vm569_vm1, %v2361_v47, %v2363_v52 }
 0xaba   : > { %v2365_v62 = vpop.permute.xlu0 %2364 }
 0xabb   : > { %v2369_v18 = vsel %vm569_vm1, %v2363_v52, %v2365_v62 }
 0xabc   : > { %v2367_v21 = vpop.permute.xlu1 %2366 }
 0xabd   : > { %v2370_v10 = vsel %vm569_vm1, %v2365_v62, %v2367_v21 }
 0xad5   : > { %v2218_v30 = vpop.f32.mrf.mxu1 }
 0xad6   : > { %v2219_v55 = vadd.f32 %v2218_v30, %v2199_v33 }
 0xad8   : > { %v6338_v6 = vmax.f32 %v2219_v55, 0.0 }
 0xada   : > { %v2377_v61 = vmul.f32 %v2368_v9, %v6338_v6 }
 0xadc   : > { %v4665_v57 = vpack.i.bf16 %v2377_v61, %v2376_v25  ;;  %v2258_v2 = vpop.f32.mrf.mxu3 }
 0xadd   : > { %v2338_v11 = vpop.f32.mrf.mxu2  ;;  %v2259_v0 = vadd.f32 %v2258_v2, %v2239_v60 }
 0xade   : > { %v2339_v7 = vadd.f32 %v2338_v11, %v2319_v20  ;;  %4666 = vrot.lane.b32.xlu2 %v4665_v57, %s5085_s23  ;;  %v2531_v57 = vld [vmem:[#allocation4 + $0x3] ss:$8 sm:$0xf] }
 0xadf   : > { %v6353_v19 = vmax.f32 %v2259_v0, 0.0  ;;  %v2536_v2 = vperm.slane %v2531_v57, 3  ;;  %v2534_v60 = vperm.slane %v2531_v57, 1 }
 0xae0   : > { %v6344_v15 = vmax.f32 %v2339_v7, 0.0 }
 0xae1   : > { %v2378_v58 = vmul.f32 %v2369_v18, %v6353_v19 }
 0xae2   : > { %v2380_v5 = vmul.f32 %v2367_v21, %v6344_v15 }
 0xae4   : > { %2394 = vrot.lane.b32.xlu1 %v2380_v5, %s5085_s23 }
 0xae6   : > { %2419 = vrot.lane.b32.xlu2 %v2415_v13, %s5077_s16  ;;  %v2533_v13 = vperm.slane %v2531_v57, 0 }
 0xaec   : > { %2423 = vrot.lane.b32.xlu1 %v2417_v24, %s5077_s16 }
 0xaee   : > { %2425 = vrot.lane.b32.xlu2 %v2418_v1, %s5077_s16  ;;  %v2535_v1 = vperm.slane %v2531_v57, 2 }
 0xaf2   : > { %v2298_v8 = vpop.f32.mrf.mxu3 }
 0xaf5   : > { %v2278_v22 = vpop.f32.mrf.mxu1 }
 0xaf6   : > { %v2279_v37 = vadd.f32 %v2278_v22, %v2175_v59  ;;  %v2477_v59 = vperm.slane %v2472_v34, 3 }
 0xaf8   : > { %v2299_v43 = vadd.f32 %v2298_v8, %v2279_v37 }
 0xafa   : > { %v6357_v63 = vmax.f32 %v2299_v43, 0.0 }
 0xafc   : > { %v2379_v14 = vmul.f32 %v2370_v10, %v6357_v63 }
 0xafe   : > { %v4670_v50 = vpack.i.bf16 %v2379_v14, %v2378_v58 }
 0xb00   : > { %4671 = vrot.lane.b32.xlu0 %v4670_v50, %s5085_s23 }
 0xb08   : > { %2421 = vrot.lane.b32.xlu0 %v2416_v46, %s5077_s16 }
 0xb38   : > { %v6363_v44 = vpop.permute.xlu2 %4666 }
 0xb40   : > { %v2420_v36 = vpop.permute.xlu2 %2419 }
 0xb41   : > { %v2435_v17 = vmul.f32 0.0, %v2420_v36 }
 0xb48   : > { %v2426_v48 = vpop.permute.xlu2 %2425 }
 0xb49   : > { %v2439_v51 = vmul.f32 %v2426_v48, %v6344_v15 }
 0xb4b   : > { %2453 = vrot.lane.b32.xlu2 %v2439_v51, %s7460_s30 }
 0xb53   : > { %2482 = vrot.lane.b32.xlu2 %v2476_v45, %s5078_s14 }
 0xb56   : > { %v6367_v27 = vpop.permute.xlu1 %2394 }
 0xb57   : > { %7539 = vst [vmem:[#allocation26_spill] sm:$0xff] %v6367_v27 }
 0xb5e   : > { %v2424_v3 = vpop.permute.xlu1 %2423 }
 0xb5f   : > { %v2429_v54 = vsel %vm631_vm3, %v2424_v3, %v2426_v48 }
 0xb60   : > { %v2438_v56 = vmul.f32 %v2429_v54, %v6357_v63 }
 0xb72   : > { %v6369_v4 = vpop.permute.xlu0 %4671 }
 0xb7a   : > { %v2422_v12 = vpop.permute.xlu0 %2421 }
 0xb7b   : > { %v2428_v42 = vsel %vm631_vm3, %v2422_v12, %v2424_v3  ;;  %v2427_v53 = vsel %vm631_vm3, %v2420_v36, %v2422_v12  ;;  %v7542_v3 = vmov 0.0   ;;  %v2622_v12 = vld [vmem:[#allocation4 + $0x5] ss:$8 sm:$0xf] }
 0xb7c   : > { %v2437_v32 = vmul.f32 %v2428_v42, %v6353_v19  ;;  %v2436_v41 = vmul.f32 %v2427_v53, %v6338_v6  ;;  %v4705_v54 = vpack.i.bf16 %v6338_v6, %v7542_v3  ;;  %v4715_v42 = vpack.i.bf16 %v6338_v6, %v6344_v15 }
 0xb7d   : > { %v2624_v53 = vperm.slane %v2622_v12, 0 }
 0xb7e   : > { %v4680_v26 = vpack.i.bf16 %v2438_v56, %v2437_v32  ;;  %v4675_v28 = vpack.i.bf16 %v2436_v41, %v2435_v17  ;;  %v6427_v17 = vpack.i.bf16 %v6357_v63, %v6353_v19  ;;  %v2626_v56 = vperm.slane %v2622_v12, 2 }
 0xb7f   : > { %v2625_v32 = vperm.slane %v2622_v12, 1  ;;  %v2627_v41 = vperm.slane %v2622_v12, 3 }
 0xb80   : > { %4681 = vrot.lane.b32.xlu1 %v4680_v26, %s7460_s30  ;;  %4676 = vrot.lane.b32.xlu0 %v4675_v28, %s7460_s30 }
 0xb88   : > { %2480 = vrot.lane.b32.xlu1 %v2475_v38, %s5078_s14  ;;  %2478 = vrot.lane.b32.xlu0 %v2474_v31, %s5078_s14 }
 0xb90   : > { %2484 = vrot.lane.b32.xlu0 %v2477_v59, %s5078_s14 }
 0xba5   : > { %v6387_v52 = vpop.permute.xlu2 %2453 }
 0xba6   : > { %7540 = vst [vmem:[#allocation21_spill] sm:$0xff] %v6387_v52 }
 0xbad   : > { %v2483_v39 = vpop.permute.xlu2 %2482 }
 0xbf2   : > { %v6383_v33 = vpop.permute.xlu1 %4681  ;;  %v6385_v47 = vpop.permute.xlu0 %4676 }
 0xbfa   : > { %v2481_v23 = vpop.permute.xlu1 %2480  ;;  %v2479_v30 = vpop.permute.xlu0 %2478 }
 0xbfb   : > { %v2486_v55 = vsel %vm693_vm2, %v2479_v30, %v2481_v23  ;;  %v2494_v9 = vmul.f32 0.0, %v2479_v30  ;;  %v2487_v20 = vsel %vm693_vm2, %v2481_v23, %v2483_v39 }
 0xbfc   : > { %v2495_v25 = vmul.f32 %v2486_v55, %v6338_v6  ;;  %v2496_v16 = vmul.f32 %v2487_v20, %v6353_v19 }
 0xbfe   : > { %v4685_v61 = vpack.i.bf16 %v2495_v25, %v2494_v9  ;;  %v2681_v9 = vld [vmem:[#allocation4 + $0x6] ss:$8 sm:$0xf] }
 0xbff   : > { %v2685_v25 = vperm.slane %v2681_v9, 2 }
 0xc00   : > { %4686 = vrot.lane.b32.xlu1 %v4685_v61, %s7516_s0 }
 0xc02   : > { %v2485_v11 = vpop.permute.xlu0 %2484 }
 0xc03   : > { %v2488_v7 = vsel %vm693_vm2, %v2483_v39, %v2485_v11  ;;  %v2498_v21 = vmul.f32 %v2485_v11, %v6344_v15 }
 0xc04   : > { %v2497_v5 = vmul.f32 %v2488_v7, %v6357_v63 }
 0xc05   : > { %2512 = vrot.lane.b32.xlu0 %v2498_v21, %s7516_s0 }
 0xc06   : > { %v4690_v24 = vpack.i.bf16 %v2497_v5, %v2496_v16 }
 0xc08   : > { %2537 = vrot.lane.b32.xlu1 %v2533_v13, %s7517_s21  ;;  %4691 = vrot.lane.b32.xlu2 %v4690_v24, %s7516_s0 }
 0xc0d   : > { %2541 = vrot.lane.b32.xlu0 %v2535_v1, %s7517_s21 }
 0xc10   : > { %2543 = vrot.lane.b32.xlu1 %v2536_v2, %s7517_s21  ;;  %2539 = vrot.lane.b32.xlu2 %v2534_v60, %s7517_s21  ;;  %v2683_v2 = vperm.slane %v2681_v9, 0  ;;  %v2684_v60 = vperm.slane %v2681_v9, 1 }
 0xc62   : > { %v6403_v0 = vpop.permute.xlu2 %4691 }
 0xc6a   : > { %v2540_v62 = vpop.permute.xlu2 %2539 }
 0xc72   : > { %v6405_v22 = vpop.permute.xlu1 %4686 }
 0xc77   : > { %v6407_v8 = vpop.permute.xlu0 %2512 }
 0xc78   : > { %7541 = vst [vmem:[#allocation23_spill] sm:$0xff] %v6407_v8 }
 0xc7a   : > { %v2538_v37 = vpop.permute.xlu1 %2537 }
 0xc7b   : > { %v2553_v43 = vmul.f32 0.0, %v2538_v37  ;;  %v2545_v18 = vsel %vm755_vm5, %v2538_v37, %v2540_v62 }
 0xc7c   : > { %v2554_v10 = vmul.f32 %v2545_v18, %v6338_v6 }
 0xc7e   : > { %v4695_v58 = vpack.i.bf16 %v2554_v10, %v2553_v43 }
 0xc7f   : > { %v2542_v14 = vpop.permute.xlu0 %2541 }
 0xc80   : > { %4696 = vrot.lane.b32.xlu2 %v4695_v58, %s7518_s20  ;;  %v2546_v50 = vsel %vm755_vm5, %v2540_v62, %v2542_v14  ;;  %v2686_v62 = vperm.slane %v2681_v9, 3 }
 0xc81   : > { %v2555_v51 = vmul.f32 %v2546_v50, %v6353_v19 }
 0xc82   : > { %v2544_v46 = vpop.permute.xlu1 %2543 }
 0xc83   : > { %v2547_v36 = vsel %vm755_vm5, %v2542_v14, %v2544_v46  ;;  %v2557_v48 = vmul.f32 %v2544_v46, %v6344_v15 }
 0xc84   : > { %v2556_v34 = vmul.f32 %v2547_v36, %v6357_v63 }
 0xc85   : > { %2571 = vrot.lane.b32.xlu1 %v2557_v48, %s7518_s20 }
 0xc86   : > { %v4700_v45 = vpack.i.bf16 %v2556_v34, %v2555_v51 }
 0xc88   : > { %4701 = vrot.lane.b32.xlu0 %v4700_v45, %s7518_s20  ;;  %4706 = vrot.lane.b32.xlu2 %v4705_v54, %s7519_s15 }
 0xc8d   : > { %4716 = vrot.lane.b32.xlu1 %v4715_v42, %s7519_s15 }
 0xc90   : > { %4711 = vrot.lane.b32.xlu0 %v6427_v17, %s7519_s15  ;;  %2628 = vrot.lane.b32.xlu2 %v2624_v53, %s7518_s20  ;;  %v2740_v53 = vld [vmem:[#allocation4 + $0x7] ss:$8 sm:$0xf] }
 0xc95   : > { %2632 = vrot.lane.b32.xlu1 %v2626_v56, %s7518_s20 }
 0xc98   : > { %2630 = vrot.lane.b32.xlu0 %v2625_v32, %s7518_s20  ;;  %2634 = vrot.lane.b32.xlu2 %v2627_v41, %s7518_s20 }
 0xcda   : > { %v6435_v26 = vpop.permute.xlu2 %4696 }
 0xce2   : > { %v6437_v28 = vpop.permute.xlu2 %4706 }
 0xcea   : > { %v2629_v38 = vpop.permute.xlu2 %2628 }
 0xceb   : > { %v2644_v21 = vmul.f32 0.0, %v2629_v38 }
 0xcf2   : > { %v2635_v31 = vpop.permute.xlu2 %2634 }
 0xcf3   : > { %v2648_v59 = vmul.f32 %v2635_v31, %v6344_v15 }
 0xcf5   : > { %2662 = vrot.lane.b32.xlu2 %v2648_v59, %s7517_s21  ;;  %v2742_v59 = vperm.slane %v2740_v53, 0 }
 0xcf7   : > { %v6441_v23 = vpop.permute.xlu1 %2571 }
 0xcf8   : > { %7543 = vst [vmem:[#allocation19_spill] sm:$0xff] %v6441_v23 }
 0xcfa   : > { %v6443_v30 = vpop.permute.xlu0 %4701 }
 0xcfd   : > { %2691 = vrot.lane.b32.xlu2 %v2685_v25, %s7516_s0  ;;  %v2744_v25 = vperm.slane %v2740_v53, 2 }
 0xcff   : > { %v6445_v55 = vpop.permute.xlu1 %4716 }
 0xd02   : > { %v6447_v39 = vpop.permute.xlu0 %4711 }
 0xd07   : > { %v2633_v61 = vpop.permute.xlu1 %2632 }
 0xd08   : > { %v2638_v20 = vsel %vm784_vm6, %v2633_v61, %v2635_v31 }
 0xd09   : > { %v2647_v16 = vmul.f32 %v2638_v20, %v6357_v63  ;;  %v2743_v20 = vperm.slane %v2740_v53, 1 }
 0xd0a   : > { %v2631_v57 = vpop.permute.xlu0 %2630 }
 0xd0b   : > { %v2636_v11 = vsel %vm784_vm6, %v2629_v38, %v2631_v57  ;;  %v2637_v7 = vsel %vm784_vm6, %v2631_v57, %v2633_v61  ;;  %v2745_v61 = vperm.slane %v2740_v53, 3 }
 0xd0c   : > { %v2645_v5 = vmul.f32 %v2636_v11, %v6338_v6  ;;  %v2646_v13 = vmul.f32 %v2637_v7, %v6353_v19 }
 0xd0e   : > { %v4720_v24 = vpack.i.bf16 %v2645_v5, %v2644_v21  ;;  %v4725_v1 = vpack.i.bf16 %v2647_v16, %v2646_v13 }
 0xd10   : > { %4721 = vrot.lane.b32.xlu0 %v4720_v24, %s7517_s21  ;;  %4726 = vrot.lane.b32.xlu1 %v4725_v1, %s7517_s21 }
 0xd18   : > { %2687 = vrot.lane.b32.xlu0 %v2683_v2, %s7516_s0  ;;  %2689 = vrot.lane.b32.xlu1 %v2684_v60, %s7516_s0 }
 0xd20   : > { %2693 = vrot.lane.b32.xlu0 %v2686_v62, %s7516_s0 }
 0xd4f   : > { %v2663_v14 = vpop.permute.xlu2 %2662 }
 0xd57   : > { %v2692_v54 = vpop.permute.xlu2 %2691 }
 0xd82   : > { %v6461_v37 = vpop.permute.xlu0 %4721  ;;  %v4727_v43 = vpop.permute.xlu1 %4726 }
 0xd83   : > { %v7455_v18 = vunpack.i.h.bf16 %v6461_v37  ;;  %v4729_v10 = vunpack.i.h.bf16 %v4727_v43  ;;  %v4728_v58 = vunpack.i.l.bf16 %v4727_v43 }
 0xd85   : > { %v6467_v50 = vsel %vm755_vm5, %v7455_v18, %v4728_v58  ;;  %v6470_v46 = vsel %vm755_vm5, %v4728_v58, %v4729_v10  ;;  %v6473_v36 = vsel %vm755_vm5, %v4729_v10, %v2663_v14 }
 0xd86   : > { %7544 = vst [vmem:[#allocation25_spill] sm:$0xff] %v6470_v46 }
 0xd87   : > { %7545 = vst [vmem:[#allocation20_spill] sm:$0xff] %v6473_v36 }
 0xd8a   : > { %v2688_v48 = vpop.permute.xlu0 %2687  ;;  %v2690_v51 = vpop.permute.xlu1 %2689 }
 0xd8b   : > { %v2703_v34 = vmul.f32 0.0, %v2688_v48  ;;  %v2695_v45 = vsel %vm722_vm7, %v2688_v48, %v2690_v51  ;;  %v2696_v42 = vsel %vm722_vm7, %v2690_v51, %v2692_v54  ;;  %v2799_v51 = vld [vmem:[#allocation4 + $0x20] ss:$8 sm:$0xf] }
 0xd8c   : > { %v2704_v3 = vmul.f32 %v2695_v45, %v6338_v6  ;;  %v2705_v38 = vmul.f32 %v2696_v42, %v6353_v19  ;;  %v2801_v42 = vperm.slane %v2799_v51, 0 }
 0xd8e   : > { %v4730_v12 = vpack.i.bf16 %v2704_v3, %v2703_v34 }
 0xd90   : > { %4731 = vrot.lane.b32.xlu1 %v4730_v12, %s5078_s14 }
 0xd92   : > { %v2694_v56 = vpop.permute.xlu0 %2693 }
 0xd93   : > { %v2697_v32 = vsel %vm722_vm7, %v2692_v54, %v2694_v56  ;;  %v2707_v41 = vmul.f32 %v2694_v56, %v6344_v15  ;;  %v2803_v56 = vperm.slane %v2799_v51, 2 }
 0xd94   : > { %v2706_v31 = vmul.f32 %v2697_v32, %v6357_v63  ;;  %v2804_v32 = vperm.slane %v2799_v51, 3 }
 0xd95   : > { %2721 = vrot.lane.b32.xlu0 %v2707_v41, %s5078_s14  ;;  %v2802_v41 = vperm.slane %v2799_v51, 1 }
 0xd96   : > { %v4735_v9 = vpack.i.bf16 %v2706_v31, %v2705_v38 }
 0xd98   : > { %4736 = vrot.lane.b32.xlu2 %v4735_v9, %s5078_s14  ;;  %2746 = vrot.lane.b32.xlu1 %v2742_v59, %s7460_s30 }
 0xd9d   : > { %2750 = vrot.lane.b32.xlu0 %v2744_v25, %s7460_s30 }
 0xda0   : > { %2752 = vrot.lane.b32.xlu1 %v2745_v61, %s7460_s30  ;;  %2748 = vrot.lane.b32.xlu2 %v2743_v20, %s7460_s30  ;;  %v2858_v61 = vld [vmem:[#allocation4] ss:$8 sm:$0xf] }
 0xda1   : > { %v2862_v20 = vperm.slane %v2858_v61, 2 }
 0xdf2   : > { %v4737_v57 = vpop.permute.xlu2 %4736 }
 0xdf3   : > { %v4739_v11 = vunpack.i.h.bf16 %v4737_v57  ;;  %v4738_v7 = vunpack.i.l.bf16 %v4737_v57 }
 0xdf5   : > { %v6490_v21 = vsel %vm693_vm2, %v4738_v7, %v4739_v11 }
 0xdfa   : > { %v2749_v1 = vpop.permute.xlu2 %2748 }
 0xe02   : > { %v6492_v16 = vpop.permute.xlu1 %4731 }
 0xe03   : > { %v7456_v5 = vunpack.i.h.bf16 %v6492_v16 }
 0xe05   : > { %v6498_v13 = vsel %vm693_vm2, %v7456_v5, %v4738_v7 }
 0xe07   : > { %v2722_v24 = vpop.permute.xlu0 %2721 }
 0xe08   : > { %v6501_v2 = vsel %vm693_vm2, %v4739_v11, %v2722_v24 }
 0xe09   : > { %7546 = vst [vmem:[#allocation22_spill] sm:$0xff] %v6501_v2 }
 0xe0a   : > { %v2747_v60 = vpop.permute.xlu1 %2746 }
 0xe0b   : > { %v2754_v62 = vsel %vm660_vm8, %v2747_v60, %v2749_v1  ;;  %v2762_v43 = vmul.f32 0.0, %v2747_v60 }
 0xe0c   : > { %v2763_v10 = vmul.f32 %v2754_v62, %v6338_v6 }
 0xe0e   : > { %v4740_v58 = vpack.i.bf16 %v2763_v10, %v2762_v43 }
 0xe0f   : > { %v2751_v14 = vpop.permute.xlu0 %2750 }
 0xe10   : > { %4741 = vrot.lane.b32.xlu2 %v4740_v58, %s5077_s16  ;;  %v2755_v48 = vsel %vm660_vm8, %v2749_v1, %v2751_v14 }
 0xe11   : > { %v2764_v54 = vmul.f32 %v2755_v48, %v6353_v19 }
 0xe12   : > { %v2753_v34 = vpop.permute.xlu1 %2752 }
 0xe13   : > { %v2756_v45 = vsel %vm660_vm8, %v2751_v14, %v2753_v34  ;;  %v2766_v3 = vmul.f32 %v2753_v34, %v6344_v15 }
 0xe14   : > { %v2765_v12 = vmul.f32 %v2756_v45, %v6357_v63 }
 0xe15   : > { %2780 = vrot.lane.b32.xlu1 %v2766_v3, %s5077_s16 }
 0xe16   : > { %v4745_v53 = vpack.i.bf16 %v2765_v12, %v2764_v54 }
 0xe18   : > { %2805 = vrot.lane.b32.xlu2 %v2801_v42, %s5085_s23  ;;  %4746 = vrot.lane.b32.xlu0 %v4745_v53, %s5077_s16  ;;  %v2861_v42 = vperm.slane %v2858_v61, 1  ;;  %v2860_v53 = vperm.slane %v2858_v61, 0 }
 0xe1d   : > { %2809 = vrot.lane.b32.xlu1 %v2803_v56, %s5085_s23  ;;  %v2863_v56 = vperm.slane %v2858_v61, 3 }
 0xe20   : > { %2811 = vrot.lane.b32.xlu2 %v2804_v32, %s5085_s23  ;;  %2807 = vrot.lane.b32.xlu0 %v2802_v41, %s5085_s23 }
 0xe6a   : > { %v6517_v38 = vpop.permute.xlu2 %4741 }
 0xe6b   : > { %v7457_v11 = vunpack.i.h.bf16 %v6517_v38 }
 0xe72   : > { %v2806_v31 = vpop.permute.xlu2 %2805 }
 0xe73   : > { %v2821_v51 = vmul.f32 0.0, %v2806_v31 }
 0xe7a   : > { %v2812_v59 = vpop.permute.xlu2 %2811 }
 0xe7b   : > { %v2825_v9 = vmul.f32 %v2812_v59, %v6344_v15 }
 0xe7d   : > { %2839 = vrot.lane.b32.xlu2 %v2825_v9, %s5076_s19 }
 0xe85   : > { %2868 = vrot.lane.b32.xlu2 %v2862_v20, %s7451_s29 }
 0xe87   : > { %v2781_v25 = vpop.permute.xlu1 %2780 }
 0xe8a   : > { %v4747_v57 = vpop.permute.xlu0 %4746 }
 0xe8b   : > { %v4749_v7 = vunpack.i.h.bf16 %v4747_v57  ;;  %v4748_v24 = vunpack.i.l.bf16 %v4747_v57 }
 0xe8d   : > { %v6526_v1 = vsel %vm631_vm3, %v7457_v11, %v4748_v24  ;;  %v6529_v60 = vsel %vm631_vm3, %v4748_v24, %v4749_v7  ;;  %v6532_v62 = vsel %vm631_vm3, %v4749_v7, %v2781_v25 }
 0xe8e   : > { %7547 = vst [vmem:[#allocation24_spill] sm:$0xff] %v6532_v62 }
 0xe8f   : > { %v2810_v43 = vpop.permute.xlu1 %2809 }
 0xe90   : > { %v2815_v10 = vsel %vm598_vm9, %v2810_v43, %v2812_v59 }
 0xe91   : > { %v2824_v34 = vmul.f32 %v2815_v10, %v6357_v63 }
 0xe92   : > { %v2808_v58 = vpop.permute.xlu0 %2807 }
 0xe93   : > { %v2814_v14 = vsel %vm598_vm9, %v2808_v58, %v2810_v43  ;;  %v2813_v48 = vsel %vm598_vm9, %v2806_v31, %v2808_v58 }
 0xe94   : > { %v2823_v45 = vmul.f32 %v2814_v14, %v6353_v19  ;;  %v2822_v3 = vmul.f32 %v2813_v48, %v6338_v6 }
 0xe96   : > { %v4755_v54 = vpack.i.bf16 %v2824_v34, %v2823_v45  ;;  %v4750_v12 = vpack.i.bf16 %v2822_v3, %v2821_v51  ;;  %v2917_v34 = vld [vmem:[#allocation4 + $0x1] ss:$8 sm:$0xf] }
 0xe98   : > { %4756 = vrot.lane.b32.xlu1 %v4755_v54, %s5076_s19  ;;  %4751 = vrot.lane.b32.xlu0 %v4750_v12, %s5076_s19 }
 0xea0   : > { %2866 = vrot.lane.b32.xlu1 %v2861_v42, %s7451_s29  ;;  %2864 = vrot.lane.b32.xlu0 %v2860_v53, %s7451_s29  ;;  %v2919_v53 = vperm.slane %v2917_v34, 0 }
 0xea8   : > { %2870 = vrot.lane.b32.xlu0 %v2863_v56, %s7451_s29  ;;  %s7551_s29 = smov 127  }
 0xed7   : > { %v2840_v25 = vpop.permute.xlu2 %2839 }
 0xedf   : > { %v2869_v14 = vpop.permute.xlu2 %2868 }
 0xf0a   : > { %v4757_v32 = vpop.permute.xlu1 %4756  ;;  %v6545_v41 = vpop.permute.xlu0 %4751 }
 0xf0b   : > { %v4759_v31 = vunpack.i.h.bf16 %v4757_v32  ;;  %v4758_v59 = vunpack.i.l.bf16 %v4757_v32  ;;  %v7458_v9 = vunpack.i.h.bf16 %v6545_v41  ;;  %v2921_v32 = vperm.slane %v2917_v34, 2 }
 0xf0d   : > { %v6551_v20 = vsel %vm569_vm1, %v7458_v9, %v4758_v59  ;;  %v6554_v57 = vsel %vm569_vm1, %v4758_v59, %v4759_v31  ;;  %v6557_v61 = vsel %vm569_vm1, %v4759_v31, %v2840_v25  ;;  %v2922_v31 = vperm.slane %v2917_v34, 3  ;;  %v3161_v25 = vld [vmem:[#allocation4 + $0x6] ss:$8 sm:$0xf] }
 0xf0e   : > { %7548 = vst [vmem:[#allocation31_spill] sm:$0xff] %v6557_v61  ;;  %v2920_v59 = vperm.slane %v2917_v34, 1  ;;  %v6581_v34 = vld [vmem:[#allocation4 + $0x2] ss:$8 sm:$0xf] }
 0xf0f   : > { %v2978_v52 = vperm.slane %v6581_v34, 0 }
 0xf12   : > { %v2867_v7 = vpop.permute.xlu1 %2866  ;;  %v2865_v24 = vpop.permute.xlu0 %2864 }
 0xf13   : > { %v2872_v43 = vsel %vm1089_vm10, %v2865_v24, %v2867_v7  ;;  %v2880_v10 = vmul.f32 0.0, %v2865_v24  ;;  %v2873_v51 = vsel %vm1089_vm10, %v2867_v7, %v2869_v14  ;;  %v3163_v7 = vperm.slane %v3161_v25, 0 }
 0xf14   : > { %v2881_v58 = vmul.f32 %v2872_v43, %v6338_v6  ;;  %v2882_v12 = vmul.f32 %v2873_v51, %v6353_v19  ;;  %v3164_v24 = vperm.slane %v3161_v25, 1  ;;  %v6574_v43 = vld [vmem:[#allocation4 + $0x5] ss:$8 sm:$0xf] }
 0xf15   : > { %v3106_v27 = vperm.slane %v6574_v43, 2 }
 0xf16   : > { %v4760_v48 = vpack.i.bf16 %v2881_v58, %v2880_v10  ;;  %v3105_v10 = vperm.slane %v6574_v43, 1  ;;  %v3165_v58 = vperm.slane %v3161_v25, 2 }
 0xf18   : > { %4761 = vrot.lane.b32.xlu1 %v4760_v48, %s5087_s17 }
 0xf1a   : > { %v2871_v45 = vpop.permute.xlu0 %2870 }
 0xf1b   : > { %v2874_v3 = vsel %vm1089_vm10, %v2869_v14, %v2871_v45  ;;  %v2884_v54 = vmul.f32 %v2871_v45, %v6344_v15  ;;  %v3035_v14 = vld [vmem:[#allocation4 + $0x3] ss:$8 sm:$0xf]  ;;  %v2979_v45 = vperm.slane %v6581_v34, 1 }
 0xf1c   : > { %v2883_v42 = vmul.f32 %v2874_v3, %v6357_v63  ;;  %v3037_v48 = vperm.slane %v3035_v14, 0  ;;  %v3038_v51 = vperm.slane %v3035_v14, 1  ;;  %v3039_v3 = vperm.slane %v3035_v14, 2 }
 0xf1d   : > { %2898 = vrot.lane.b32.xlu0 %v2884_v54, %s5087_s17  ;;  %v3166_v54 = vperm.slane %v3161_v25, 3  ;;  %v6600_v25 = vld [vmem:[#allocation4 + $0x6] ss:$8 sm:$0xf] }
 0xf1e   : > { %v4765_v56 = vpack.i.bf16 %v2883_v42, %v2882_v12  ;;  %v3107_v12 = vperm.slane %v6574_v43, 3  ;;  %v6589_v42 = vld [vmem:[#allocation4 + $0x20] ss:$8 sm:$0xf] }
 0xf20   : > { %2923 = vrot.lane.b32.xlu1 %v2919_v53, %s7453_s25  ;;  %4766 = vrot.lane.b32.xlu2 %v4765_v56, %s5087_s17  ;;  %v3786_v53 = vperm.slane %v6589_v42, 1  ;;  %v6593_v56 = vld [vmem:[#allocation4 + $0x7] ss:$8 sm:$0xf] }
 0xf25   : > { %2927 = vrot.lane.b32.xlu0 %v2921_v32, %s7453_s25  ;;  %v3726_v32 = vperm.slane %v6593_v56, 0 }
 0xf28   : > { %2929 = vrot.lane.b32.xlu1 %v2922_v31, %s7453_s25  ;;  %2925 = vrot.lane.b32.xlu2 %v2920_v59, %s7453_s25  ;;  %s7552_s25 = smov 121   ;;  %v3787_v31 = vperm.slane %v6589_v42, 2  ;;  %v3040_v59 = vperm.slane %v3035_v14, 3 }
 0xf2d   : > { %3167 = vrot.lane.b32.xlu0 %v3163_v7, %s7549_s13  ;;  %v3668_v7 = vperm.slane %v6600_v25, 1 }
 0xf30   : > { %3169 = vrot.lane.b32.xlu1 %v3164_v24, %s7549_s13  ;;  %v3728_v24 = vperm.slane %v6593_v56, 2 }
 0xf35   : > { %3110 = vrot.lane.b32.xlu0 %v3105_v10, %s7550_s18  ;;  %v2981_v10 = vperm.slane %v6581_v34, 3 }
 0xf38   : > { %3171 = vrot.lane.b32.xlu1 %v3165_v58, %s7549_s13  ;;  %v6608_v58 = vld [vmem:[#allocation4 + $0x5] ss:$8 sm:$0xf] }
 0xf39   : > { %v3608_v14 = vperm.slane %v6608_v58, 0 }
 0xf3d   : > { %3041 = vrot.lane.b32.xlu0 %v3037_v48, %s7551_s29  ;;  %v3669_v48 = vperm.slane %v6600_v25, 2 }
 0xf40   : > { %3043 = vrot.lane.b32.xlu1 %v3038_v51, %s7551_s29  ;;  %v3729_v51 = vperm.slane %v6593_v56, 3 }
 0xf45   : > { %2984 = vrot.lane.b32.xlu0 %v2979_v45, %s7552_s25  ;;  %v3670_v45 = vperm.slane %v6600_v25, 3 }
 0xf48   : > { %3045 = vrot.lane.b32.xlu1 %v3039_v3, %s7551_s29  ;;  %v6618_v3 = vld [vmem:[#allocation4 + $0x3] ss:$8 sm:$0xf] }
 0xf49   : > { %v3520_v49 = vperm.slane %v6618_v3, 3 }
 0xf4d   : > { %3173 = vrot.lane.b32.xlu0 %v3166_v54, %s7549_s13 }
 0xf50   : > { %3114 = vrot.lane.b32.xlu1 %v3107_v12, %s7550_s18 }
 0xf55   : > { %3791 = vrot.lane.b32.xlu0 %v3786_v53, %s5085_s23 }
 0xf58   : > { %3730 = vrot.lane.b32.xlu1 %v3726_v32, %s7460_s30  ;;  %v3517_v32 = vperm.slane %v6618_v3, 0 }
 0xf5d   : > { %3793 = vrot.lane.b32.xlu0 %v3787_v31, %s5085_s23 }
 0xf60   : > { %3047 = vrot.lane.b32.xlu1 %v3040_v59, %s7551_s29  ;;  %v3611_v59 = vperm.slane %v6608_v58, 3 }
 0xf65   : > { %3673 = vrot.lane.b32.xlu0 %v3668_v7, %s7516_s0  ;;  %v6627_v7 = vld [vmem:[#allocation4 + $0x2] ss:$8 sm:$0xf] }
 0xf66   : > { %v3460_v18 = vperm.slane %v6627_v7, 2 }
 0xf68   : > { %3734 = vrot.lane.b32.xlu1 %v3728_v24, %s7460_s30  ;;  %v3458_v24 = vperm.slane %v6627_v7, 0 }
 0xf6d   : > { %2988 = vrot.lane.b32.xlu0 %v2981_v10, %s7552_s25  ;;  %v3519_v10 = vperm.slane %v6618_v3, 2 }
 0xf70   : > { %3612 = vrot.lane.b32.xlu1 %v3608_v14, %s7518_s20  ;;  %v6633_v14 = vld [vmem:[#allocation4 + $0x1] ss:$8 sm:$0xf] }
 0xf75   : > { %3675 = vrot.lane.b32.xlu0 %v3669_v48, %s7516_s0 }
 0xf78   : > { %3736 = vrot.lane.b32.xlu1 %v3729_v51, %s7460_s30  ;;  %s7555_s30 = smov 8  }
 0xf7a   : > { %v4767_v54 = vpop.permute.xlu2 %4766 }
 0xf7b   : > { %v4769_v12 = vunpack.i.h.bf16 %v4767_v54  ;;  %v4768_v53 = vunpack.i.l.bf16 %v4767_v54 }
 0xf7d   : > { %3677 = vrot.lane.b32.xlu0 %v3670_v45, %s7516_s0  ;;  %v6623_v31 = vsel %vm1118_vm11, %v4768_v53, %v4769_v12  ;;  %v3399_v45 = vperm.slane %v6633_v14, 0 }
 0xf80   : > { %3521 = vrot.lane.b32.xlu1 %v3517_v32, %s7517_s21 }
 0xf85   : > { %3618 = vrot.lane.b32.xlu0 %v3611_v59, %s7518_s20  ;;  %v2926_v59 = vpop.permute.xlu2 %2925 }
 0xf88   : > { %3462 = vrot.lane.b32.xlu1 %v3458_v24, %s5078_s14 }
 0xf8a   : > { %v6635_v48 = vpop.permute.xlu1 %4761 }
 0xf8b   : > { %v7459_v51 = vunpack.i.h.bf16 %v6635_v48 }
 0xf8d   : > { %3525 = vrot.lane.b32.xlu0 %v3519_v10, %s7517_s21  ;;  %v6643_v54 = vsel %vm1118_vm11, %v7459_v51, %v4768_v53  ;;  %v6654_v51 = vld [vmem:[#allocation4] ss:$8 sm:$0xf] }
 0xf8f   : > { %v2899_v32 = vpop.permute.xlu0 %2898 }
 0xf90   : > { %3403 = vrot.lane.b32.xlu1 %v3399_v45, %s5077_s16  ;;  %v6647_v24 = vsel %vm1118_vm11, %v4769_v12, %v2899_v32  ;;  %v3341_v32 = vperm.slane %v6654_v51, 1 }
 0xf91   : > { %7553 = vst [vmem:[#allocation32_spill] sm:$0xff] %v6647_v24 }
 0xf92   : > { %v2924_v5 = vpop.permute.xlu1 %2923 }
 0xf93   : > { %v2939_v11 = vmul.f32 0.0, %v2924_v5  ;;  %v2931_v9 = vsel %vm7554_vm13, %v2924_v5, %v2926_v59  ;;  %vm7558_vm13 = vcmask 7168  }
 0xf94   : > { %v2940_v10 = vmul.f32 %v2931_v9, %v6338_v6 }
 0xf95   : > { %3466 = vrot.lane.b32.xlu0 %v3460_v18, %s5078_s14 }
 0xf96   : > { %v4770_v53 = vpack.i.bf16 %v2940_v10, %v2939_v11  ;;  %v3401_v11 = vperm.slane %v6633_v14, 2  ;;  %v3279_v10 = vld [vmem:[#allocation4 + $0x20] ss:$8 sm:$0xf] }
 0xf97   : > { %v2928_v45 = vpop.permute.xlu0 %2927  ;;  %v3284_v8 = vperm.slane %v3279_v10, 3 }
 0xf98   : > { %3527 = vrot.lane.b32.xlu1 %v3520_v49, %s7517_s21  ;;  %4771 = vrot.lane.b32.xlu2 %v4770_v53, %s7555_s30  ;;  %v2932_v12 = vsel %vm7556_vm15, %v2926_v59, %v2928_v45  ;;  %v3104_v49 = vperm.slane %v6574_v43, 0  ;;  %vm7559_vm15 = vcmask 1039360  }
 0xf99   : > { %v6665_v9 = vmul.f32 %v2932_v12, %v6353_v19 }
 0xf9a   : > { %v6660_v40 = vpop.permute.xlu1 %2929 }
 0xf9b   : > { %v2933_v5 = vsel %vm7522_vm12, %v2928_v45, %v6660_v40  ;;  %v3281_v45 = vperm.slane %v3279_v10, 0  ;;  %vm7560_vm12 = vcmask 990208  }
 0xf9c   : > { %v6668_v18 = vmul.f32 %v2933_v5, %v6357_v63 }
 0xf9d   : > { %3346 = vrot.lane.b32.xlu0 %v3341_v32, %s5076_s19  ;;  %v3282_v32 = vperm.slane %v3279_v10, 1 }
 0xf9f   : > { %v3168_v53 = vpop.permute.xlu0 %3167 }
 0xfa0   : > { %3407 = vrot.lane.b32.xlu1 %v3401_v11, %s5077_s16  ;;  %3108 = vrot.lane.b32.xlu2 %v3104_v49, %s7550_s18  ;;  %v6679_v29 = vmul.f32 %v3168_v53, %v6338_v6  ;;  %v3402_v49 = vperm.slane %v6633_v14, 3 }
 0xfa2   : > { %v3170_v12 = vpop.permute.xlu1 %3169 }
 0xfa3   : > { %v3175_v5 = vsel %vm1239_vm14, %v3168_v53, %v3170_v12  ;;  %v6693_v53 = vld [vmem:[#allocation4 + $0x7] ss:$8 sm:$0xf] }
 0xfa4   : > { %v6682_v35 = vmul.f32 %v3175_v5, %v6353_v19  ;;  %v3222_v5 = vperm.slane %v6693_v53, 0 }
 0xfa5   : > { %3285 = vrot.lane.b32.xlu0 %v3281_v45, %s5087_s17  ;;  %v3283_v45 = vperm.slane %v3279_v10, 2 }
 0xfa7   : > { %v6688_v59 = vpop.permute.xlu0 %3110 }
 0xfa8   : > { %3287 = vrot.lane.b32.xlu1 %v3282_v32, %s5087_s17  ;;  %3112 = vrot.lane.b32.xlu2 %v3106_v27, %s7550_s18  ;;  %v3343_v32 = vperm.slane %v6654_v51, 3  ;;  %v2980_v27 = vperm.slane %v6581_v34, 2 }
 0xfad   : > { %3409 = vrot.lane.b32.xlu0 %v3402_v49, %s5077_s16  ;;  %v3225_v49 = vperm.slane %v6693_v53, 3 }
 0xfaf   : > { %v3042_v43 = vpop.permute.xlu0 %3041 }
 0xfb0   : > { %3226 = vrot.lane.b32.xlu1 %v3222_v5, %s7555_s30  ;;  %2982 = vrot.lane.b32.xlu2 %v2978_v52, %s7552_s25  ;;  %v3785_v5 = vperm.slane %v6589_v42, 0  ;;  %v3172_v52 = vpop.permute.xlu1 %3171 }
 0xfb5   : > { %3289 = vrot.lane.b32.xlu0 %v3283_v45, %s5087_s17  ;;  %v3176_v45 = vsel %vm1239_vm14, %v3170_v12, %v3172_v52 }
 0xfb7   : > { %v6703_v11 = vpop.permute.xlu0 %2984 }
 0xfb8   : > { %3350 = vrot.lane.b32.xlu1 %v3343_v32, %s5076_s19  ;;  %2986 = vrot.lane.b32.xlu2 %v2980_v27, %s7552_s25  ;;  %v3185_v32 = vmul.f32 %v3176_v45, %v6357_v63  ;;  %v3727_v27 = vperm.slane %v6593_v56, 1  ;;  %v6723_v2 = vpop.permute.xlu1 %3043  ;;  %v3459_v45 = vperm.slane %v6627_v7, 1 }
 0xfbd   : > { %3291 = vrot.lane.b32.xlu0 %v3284_v8, %s5087_s17  ;;  %s7557_s17 = smov 72   ;;  %v3667_v8 = vperm.slane %v6600_v25, 0  ;;  %v3518_v25 = vperm.slane %v6618_v3, 1 }
 0xfbf   : > { %v6710_v23 = vpop.permute.xlu0 %3173 }
 0xfc0   : > { %v3177_v34 = vsel %vm1239_vm14, %v3172_v52, %v6710_v23  ;;  %3232 = vrot.lane.b32.xlu1 %v3225_v49, %s7555_s30  ;;  %3789 = vrot.lane.b32.xlu2 %v3785_v5, %s5085_s23  ;;  %v3788_v49 = vperm.slane %v6589_v42, 3  ;;  %v6728_v12 = vpop.permute.xlu1 %3045  ;;  %v3609_v5 = vperm.slane %v6608_v58, 1 }
 0xfc1   : > { %v3186_v10 = vmul.f32 %v3177_v34, %v6344_v15 }
 0xfc3   : > { %v4785_v36 = vpack.i.bf16 %v3186_v10, %v3185_v32 }
 0xfc7   : > { %v6739_v34 = vpop.permute.xlu0 %3791 }
 0xfc8   : > { %4786 = vrot.lane.b32.xlu1 %v4785_v36, %s7552_s25  ;;  %3732 = vrot.lane.b32.xlu2 %v3727_v27, %s7557_s17  ;;  %v6732_v56 = vpop.permute.xlu1 %3114  ;;  %v3610_v36 = vperm.slane %v6608_v58, 2 }
 0xfcf   : > { %v6748_v32 = vpop.permute.xlu0 %3793 }
 0xfd0   : > { %3671 = vrot.lane.b32.xlu2 %v3667_v8, %s7516_s0  ;;  %v6737_v52 = vpop.permute.xlu1 %3730 }
 0xfd7   : > { %v6762_v24 = vpop.permute.xlu0 %3673 }
 0xfd8   : > { %3795 = vrot.lane.b32.xlu2 %v3788_v49, %s5085_s23  ;;  %v6745_v10 = vpop.permute.xlu1 %3047  ;;  %v3400_v49 = vperm.slane %v6633_v14, 1 }
 0xfe0   : > { %3614 = vrot.lane.b32.xlu2 %v3609_v5, %s7518_s20  ;;  %v6760_v62 = vpop.permute.xlu1 %3734 }
 0xfe8   : > { %3616 = vrot.lane.b32.xlu2 %v3610_v36, %s7518_s20  ;;  %v3049_v36 = vsel %vm7559_vm15, %v3042_v43, %v6723_v2  ;;  %vm7562_vm15 = vmmov %vm7560_vm12 }
 0xff0   : > { %3523 = vrot.lane.b32.xlu2 %v3518_v25, %s7517_s21  ;;  %v3057_v25 = vmul.f32 0.0, %v3042_v43  ;;  %v6769_v43 = vpop.permute.xlu1 %3612 }
 0xff2   : > { %v6742_v42 = vpop.permute.xlu2 %4771 }
 0xff8   : > { %3464 = vrot.lane.b32.xlu2 %v3459_v45, %s5078_s14  ;;  %v3058_v45 = vmul.f32 %v3049_v36, %v6338_v6  ;;  %v6773_v36 = vpop.permute.xlu0 %2988 }
 0xffa   : > { %v3109_v58 = vpop.permute.xlu2 %3108 }
 0xffb   : > { %v3116_v3 = vsel %vm7558_vm13, %v3109_v58, %v6688_v59  ;;  %v3124_v27 = vmul.f32 %v3109_v58, %v6338_v6  ;;  %v3340_v58 = vperm.slane %v6654_v51, 0  ;;  %vm7561_vm13 = vmmov %vm7560_vm12 }
 0xffc   : > { %v3125_v8 = vmul.f32 %v3116_v3, %v6353_v19  ;;  %v4795_v3 = vpack.i.bf16 %v3058_v45, %v3057_v25 }
 0xffe   : > { %v4780_v5 = vpack.i.bf16 %v3125_v8, %v3124_v27 }
0x1000   : > { %3405 = vrot.lane.b32.xlu2 %v3400_v49, %s5077_s16  ;;  %4781 = vrot.lane.b32.xlu0 %v4780_v5, %s7551_s29  ;;  %v3461_v5 = vperm.slane %v6627_v7, 3  ;;  %v3342_v7 = vperm.slane %v6654_v51, 2 }
0x1002   : > { %v3113_v61 = vpop.permute.xlu2 %3112 }
0x1008   : > { %3344 = vrot.lane.b32.xlu2 %v3340_v58, %s5076_s19  ;;  %4796 = vrot.lane.b32.xlu0 %v4795_v3, %s7550_s18 }
0x100a   : > { %v2983_v14 = vpop.permute.xlu2 %2982 }
0x100b   : > { %v2990_v27 = vsel %vm7560_vm12, %v2983_v14, %v6703_v11  ;;  %v2998_v8 = vmul.f32 0.0, %v2983_v14  ;;  %vm7564_vm12 = vcmask 7168  }
0x100c   : > { %v2999_v49 = vmul.f32 %v2990_v27, %v6338_v6  ;;  %v6784_v27 = vpop.permute.xlu1 %3736 }
0x100e   : > { %v4800_v46 = vpack.i.bf16 %v2999_v49, %v2998_v8  ;;  %v6786_v49 = vpop.permute.xlu0 %3675 }
0x1010   : > { %3468 = vrot.lane.b32.xlu2 %v3461_v5, %s5078_s14  ;;  %4801 = vrot.lane.b32.xlu1 %v4800_v46, %s7549_s13  ;;  %v7563_v46 = vpack.i.bf16 %v6668_v18, %v6665_v9 }
0x1012   : > { %v2987_v25 = vpop.permute.xlu2 %2986 }
0x1013   : > { %v2991_v45 = vsel %vm7561_vm13, %v6703_v11, %v2987_v25  ;;  %v2992_v58 = vsel %vm7562_vm15, %v2987_v25, %v6773_v36  ;;  %vm7565_vm13 = vmmov %vm7564_vm12  ;;  %vm7567_vm15 = vcmask 1039360  }
0x1014   : > { %v3000_v3 = vmul.f32 %v2991_v45, %v6353_v19  ;;  %v3001_v14 = vmul.f32 %v2992_v58, %v6357_v63  ;;  %v3223_v45 = vperm.slane %v6693_v53, 1  ;;  %v3128_v58 = vmul.f32 0.0, %v6732_v56 }
0x1016   : > { %v4810_v8 = vpack.i.bf16 %v3001_v14, %v3000_v3  ;;  %v6800_v14 = vpop.permute.xlu1 %3521  ;;  %v6804_v9 = vpop.permute.xlu0 %3677 }
0x1018   : > { %3348 = vrot.lane.b32.xlu2 %v3342_v7, %s5076_s19  ;;  %4816 = vrot.lane.b32.xlu1 %v7563_v46, %s7555_s30  ;;  %v3224_v7 = vperm.slane %v6693_v53, 2  ;;  %v3118_v53 = vsel %vm7565_vm13, %v3113_v61, %v6732_v56  ;;  %vm7570_vm13 = vcmask 990208  }
0x1019   : > { %4811 = vrot.lane.b32.xlu0 %v4810_v8, %s7549_s13 }
0x101a   : > { %v3790_v11 = vpop.permute.xlu2 %3789 }
0x101b   : > { %v3797_v5 = vsel %vm598_vm9, %v3790_v11, %v6739_v34  ;;  %v3805_v51 = vmul.f32 %v3790_v11, %v6338_v6 }
0x101c   : > { %v3806_v25 = vmul.f32 %v3797_v5, %v6353_v19 }
0x101e   : > { %v4820_v3 = vpack.i.bf16 %v3806_v25, %v3805_v51  ;;  %v6811_v8 = vpop.permute.xlu1 %3462  ;;  %v6813_v11 = vpop.permute.xlu0 %3618 }
0x1020   : > { %3228 = vrot.lane.b32.xlu2 %v3223_v45, %s7555_s30  ;;  %3142 = vrot.lane.b32.xlu1 %v3128_v58, %s7551_s29  ;;  %v3117_v58 = vsel %vm7564_vm12, %v6688_v59, %v3113_v61  ;;  %vm7568_vm12 = vmmov %vm7567_vm15 }
0x1021   : > { %4821 = vrot.lane.b32.xlu0 %v4820_v3, %s5076_s19  ;;  %v7566_v3 = vpack.i.bf16 %v6682_v35, %v6679_v29 }
0x1022   : > { %v6807_v18 = vpop.permute.xlu2 %3732 }
0x1026   : > { %v6836_v56 = vpop.permute.xlu1 %3403  ;;  %v6839_v29 = vpop.permute.xlu0 %3525 }
0x1028   : > { %3230 = vrot.lane.b32.xlu2 %v3224_v7, %s7555_s30  ;;  %v3798_v7 = vsel %vm598_vm9, %v6739_v34, %v6748_v32  ;;  %v3051_v34 = vsel %vm7567_vm15, %v6728_v12, %v6745_v10  ;;  %vm7571_vm15 = vmmov %vm7570_vm13 }
0x1029   : > { %v3807_v61 = vmul.f32 %v3798_v7, %v6357_v63 }
0x102a   : > { %v3672_v46 = vpop.permute.xlu2 %3671 }
0x102b   : > { %v3679_v5 = vsel %vm722_vm7, %v3672_v46, %v6762_v24  ;;  %v3687_v51 = vmul.f32 %v3672_v46, %v6338_v6  ;;  %v3126_v46 = vmul.f32 %v3117_v58, %v6357_v63  ;;  %v3060_v58 = vmul.f32 %v3051_v34, %v6357_v63 }
0x102c   : > { %v3688_v25 = vmul.f32 %v3679_v5, %v6353_v19  ;;  %v3127_v5 = vmul.f32 %v3118_v53, %v6344_v15  ;;  %v3002_v34 = vmul.f32 %v6773_v36, %v6344_v15 }
0x102e   : > { %v4835_v45 = vpack.i.bf16 %v3688_v25, %v3687_v51  ;;  %v4790_v25 = vpack.i.bf16 %v3127_v5, %v3126_v46  ;;  %v3628_v46 = vmul.f32 %v6769_v43, %v6338_v6 }
0x1030   : > { %4776 = vrot.lane.b32.xlu2 %v7566_v3, %s7552_s25  ;;  %4836 = vrot.lane.b32.xlu1 %v4835_v45, %s5078_s14 }
0x1032   : > { %v3796_v51 = vpop.permute.xlu2 %3795 }
0x1033   : > { %v3799_v59 = vsel %vm598_vm9, %v6748_v32, %v3796_v51  ;;  %v3050_v32 = vsel %vm7568_vm12, %v6723_v2, %v6728_v12  ;;  %v6860_v12 = vpop.permute.xlu0 %3466  ;;  %vm7572_vm12 = vcmask 64512  }
0x1034   : > { %v3808_v35 = vmul.f32 %v3799_v59, %v6344_v15  ;;  %v3059_v7 = vmul.f32 %v3050_v32, %v6353_v19  ;;  %v3061_v59 = vmul.f32 %v6745_v10, %v6344_v15  ;;  %v3738_v10 = vsel %vm660_vm8, %v6737_v52, %v6807_v18 }
0x1036   : > { %v4830_v45 = vpack.i.bf16 %v3808_v35, %v3807_v61  ;;  %v4805_v61 = vpack.i.bf16 %v3060_v58, %v3059_v7  ;;  %v6858_v35 = vpop.permute.xlu1 %3527 }
0x1038   : > { %4791 = vrot.lane.b32.xlu2 %v4790_v25, %s7551_s29  ;;  %4831 = vrot.lane.b32.xlu0 %v4830_v45, %s5076_s19  ;;  %v3809_v45 = vmul.f32 0.0, %v3796_v51 }
0x103a   : > { %v3615_v53 = vpop.permute.xlu2 %3614 }
0x103b   : > { %v3620_v3 = vsel %vm784_vm6, %v6769_v43, %v3615_v53  ;;  %v3187_v43 = vmul.f32 0.0, %v6710_v23  ;;  %v6876_v7 = vpop.permute.xlu0 %3346  ;;  %v3747_v23 = vmul.f32 %v3738_v10, %v6353_v19 }
0x103c   : > { %v3629_v5 = vmul.f32 %v3620_v3, %v6353_v19 }
0x103e   : > { %v4845_v2 = vpack.i.bf16 %v3629_v5, %v3628_v46  ;;  %v3408_v3 = vpop.permute.xlu1 %3407 }
0x1040   : > { %4806 = vrot.lane.b32.xlu2 %v4805_v61, %s7550_s18  ;;  %3075 = vrot.lane.b32.xlu0 %v3061_v59, %s7550_s18  ;;  %v3750_v61 = vmul.f32 0.0, %v6784_v27 }
0x1041   : > { %4846 = vrot.lane.b32.xlu1 %v4845_v2, %s7517_s21  ;;  %v3739_v2 = vsel %vm660_vm8, %v6807_v18, %v6760_v62 }
0x1042   : > { %v3617_v25 = vpop.permute.xlu2 %3616 }
0x1043   : > { %v3621_v32 = vsel %vm784_vm6, %v3615_v53, %v3617_v25  ;;  %v3622_v58 = vsel %vm784_vm6, %v3617_v25, %v6813_v11  ;;  %v3746_v53 = vmul.f32 %v6737_v52, %v6338_v6  ;;  %v6900_v10 = vpop.permute.xlu0 %3285 }
0x1044   : > { %v3630_v36 = vmul.f32 %v3621_v32, %v6357_v63  ;;  %v3631_v51 = vmul.f32 %v3622_v58, %v6344_v15  ;;  %v3537_v58 = vmul.f32 %v6800_v14, %v6338_v6 }
0x1045   : > { %v4825_v5 = vpack.i.bf16 %v3747_v23, %v3746_v53  ;;  %v3680_v53 = vsel %vm722_vm7, %v6762_v24, %v6786_v49 }
0x1046   : > { %v4860_v59 = vpack.i.bf16 %v3631_v51, %v3630_v36  ;;  %v6896_v52 = vpop.permute.xlu1 %3287 }
0x1048   : > { %3201 = vrot.lane.b32.xlu2 %v3187_v43, %s7552_s25  ;;  %3823 = vrot.lane.b32.xlu0 %v3809_v45, %s5076_s19  ;;  %v3740_v43 = vsel %vm660_vm8, %v6760_v62, %v6784_v27  ;;  %v3748_v45 = vmul.f32 %v3739_v2, %v6357_v63  ;;  %v3681_v62 = vsel %vm722_vm7, %v6786_v49, %v6804_v9  ;;  %v3691_v27 = vmul.f32 0.0, %v6804_v9  ;;  %s7569_s19 = smov 119   ;;  %s4191_s25 = scalar_lea.sflag [#allocation6], %s5255_s27 }
0x1049   : > { %3016 = vrot.lane.b32.xlu1 %v3002_v34, %s7549_s13  ;;  %v3749_v32 = vmul.f32 %v3740_v43, %v6344_v15  ;;  %v4880_v43 = vpack.i.bf16 0.0, %v6344_v15 }
0x104a   : > { %v3524_v46 = vpop.permute.xlu2 %3523 }
0x104b   : > { %v3529_v25 = vsel %vm755_vm5, %v6800_v14, %v3524_v46  ;;  %v4840_v23 = vpack.i.bf16 %v3749_v32, %v3748_v45  ;;  %v3530_v51 = vsel %vm755_vm5, %v3524_v46, %v6839_v29  ;;  %v3531_v14 = vsel %vm755_vm5, %v6839_v29, %v6858_v35 }
0x104c   : > { %v3538_v34 = vmul.f32 %v3529_v25, %v6353_v19  ;;  %v3539_v9 = vmul.f32 %v3530_v51, %v6357_v63  ;;  %v3689_v46 = vmul.f32 %v3680_v53, %v6357_v63  ;;  %v6926_v25 = vpop.permute.xlu0 %3409  ;;  %v3419_v32 = vmul.f32 %v6836_v56, %v6338_v6 }
0x104e   : > { %v4865_v36 = vpack.i.bf16 %v3538_v34, %v3537_v58  ;;  %v6924_v2 = vpop.permute.xlu1 %3226 }
0x1050   : > { %4826 = vrot.lane.b32.xlu2 %v4825_v5, %s5077_s16  ;;  %4861 = vrot.lane.b32.xlu0 %v4860_v59, %s7517_s21  ;;  %v3690_v5 = vmul.f32 %v3681_v62, %v6344_v15 }
0x1051   : > { %3764 = vrot.lane.b32.xlu1 %v3750_v61, %s5077_s16  ;;  %v3540_v61 = vmul.f32 %v3531_v14, %v6344_v15 }
0x1052   : > { %v3465_v18 = vpop.permute.xlu2 %3464  ;;  %v4850_v24 = vpack.i.bf16 %v3690_v5, %v3689_v46 }
0x1053   : > { %v4875_v49 = vpack.i.bf16 %v3540_v61, %v3539_v9  ;;  %v3471_v51 = vsel %vm693_vm2, %v3465_v18, %v6860_v12  ;;  %v3470_v61 = vsel %vm693_vm2, %v6811_v8, %v3465_v18  ;;  %v3478_v18 = vmul.f32 %v6811_v8, %v6338_v6 }
0x1054   : > { %v3480_v9 = vmul.f32 %v3471_v51, %v6357_v63 }
0x1056   : > { %v3351_v58 = vpop.permute.xlu1 %3350 }
0x1058   : > { %4841 = vrot.lane.b32.xlu2 %v4840_v23, %s5077_s16  ;;  %4866 = vrot.lane.b32.xlu0 %v4865_v36, %s7518_s20  ;;  %v3290_v36 = vpop.permute.xlu0 %3289  ;;  %s4319_s16 = sshll.u32 %s5184_s28, 5 }
0x1059   : > { %3705 = vrot.lane.b32.xlu1 %v3691_v27, %s5078_s14  ;;  %v3413_v27 = vsel %vm631_vm3, %v3408_v3, %v6926_v25 }
0x105a   : > { %v3406_v59 = vpop.permute.xlu2 %3405  ;;  %v3422_v5 = vmul.f32 %v3413_v27, %v6344_v15  ;;  %v3541_v27 = vmul.f32 0.0, %v6858_v35 }
0x105b   : > { %v3411_v29 = vsel %vm631_vm3, %v6836_v56, %v3406_v59  ;;  %v3412_v62 = vsel %vm631_vm3, %v3406_v59, %v3408_v3  ;;  %v2943_v59 = vmul.f32 %v6660_v40, %v6344_v15 }
0x105c   : > { %v3420_v45 = vmul.f32 %v3411_v29, %v6353_v19  ;;  %v3421_v53 = vmul.f32 %v3412_v62, %v6357_v63 }
0x105e   : > { %v4885_v23 = vpack.i.bf16 %v3420_v45, %v3419_v32  ;;  %v4900_v46 = vpack.i.bf16 %v3422_v5, %v3421_v53  ;;  %v3294_v53 = vsel %vm1118_vm11, %v6896_v52, %v3290_v36 }
0x105f   : > { %v3303_v35 = vmul.f32 %v3294_v53, %v6357_v63 }
0x1060   : > { %4851 = vrot.lane.b32.xlu2 %v4850_v24, %s5078_s14  ;;  %4876 = vrot.lane.b32.xlu0 %v4875_v49, %s7518_s20  ;;  %v6955_v24 = vpop.permute.xlu1 %3232  ;;  %v3479_v49 = vmul.f32 %v3470_v61, %v6353_v19  ;;  %s7581_s14 = smov 120  }
0x1061   : > { %4881 = vrot.lane.b32.xlu1 %v4880_v43, %s7519_s15 }
0x1062   : > { %v3345_v34 = vpop.permute.xlu2 %3344 }
0x1068   : > { %4856 = vrot.lane.b32.xlu2 %v6427_v17, %s7519_s15  ;;  %4886 = vrot.lane.b32.xlu0 %v4885_v23, %s7557_s17  ;;  %v4870_v23 = vpack.i.bf16 %v3479_v49, %v3478_v18  ;;  %v6981_v5 = vpop.permute.xlu1 %4786  ;;  %s4202_s15 = scalar_lea.hbm %s7391_s12, %s4319_s16 }
0x1069   : > { %s4206_s29 = sshll.u32 %s4202_s15, 4  ;;  %s4207_s29 = int_to_ptr.hbm [resolvable:$true] %s4206_s29 }
0x106a   : > { %v3469_v14 = vpop.permute.xlu2 %3468 }
0x106b   : > { %v3472_v56 = vsel %vm693_vm2, %v6860_v12, %v3469_v14  ;;  %v6959_v12 = vpop.permute.xlu0 %3291 }
0x106c   : > { %v3481_v17 = vmul.f32 %v3472_v56, %v6344_v15  ;;  %v3295_v51 = vsel %vm1118_vm11, %v3290_v36, %v6959_v12  ;;  %v3360_v36 = vmul.f32 %v3345_v34, %v6338_v6 }
0x106d   : > { %v3304_v8 = vmul.f32 %v3295_v51, %v6344_v15 }
0x106e   : > { %v4890_v3 = vpack.i.bf16 %v3481_v17, %v3480_v9  ;;  %v3632_v17 = vmul.f32 0.0, %v6813_v11 }
0x1070   : > { %2957 = vrot.lane.b32.xlu2 %v2943_v59, %s7555_s30  ;;  %4901 = vrot.lane.b32.xlu0 %v4900_v46, %s7557_s17  ;;  %v4920_v59 = vpack.i.bf16 %v3304_v8, %v3303_v35  ;;  %v3352_v46 = vsel %vm569_vm1, %v3345_v34, %v6876_v7  ;;  %v3301_v34 = vmul.f32 %v6900_v10, %v6338_v6 }
0x1071   : > { %4891 = vrot.lane.b32.xlu1 %v4890_v3, %s7516_s0  ;;  %v3482_v3 = vmul.f32 0.0, %v3469_v14  ;;  %v3361_v61 = vmul.f32 %v3352_v46, %v6353_v19  ;;  %v3423_v14 = vmul.f32 0.0, %v6926_v25 }
0x1072   : > { %v3349_v29 = vpop.permute.xlu2 %3348 }
0x1073   : > { %v3353_v40 = vsel %vm569_vm1, %v6876_v7, %v3349_v29  ;;  %v3354_v43 = vsel %vm569_vm1, %v3349_v29, %v3351_v58  ;;  %v6977_v56 = vpop.permute.xlu0 %4781  ;;  %v3293_v7 = vsel %vm1118_vm11, %v6900_v10, %v6896_v52 }
0x1074   : > { %v3362_v45 = vmul.f32 %v3353_v40, %v6357_v63  ;;  %v3363_v32 = vmul.f32 %v3354_v43, %v6344_v15  ;;  %v3364_v40 = vmul.f32 0.0, %v3351_v58  ;;  %v4895_v43 = vpack.i.bf16 %v3361_v61, %v3360_v36 }
0x1075   : > { %v3302_v18 = vmul.f32 %v3293_v7, %v6353_v19  ;;  %v4788_v58 = vunpack.i.l.bf16 %v6981_v5  ;;  %v4784_v51 = vunpack.i.h.bf16 %v6977_v56  ;;  %v4783_v53 = vunpack.i.l.bf16 %v6977_v56 }
0x1076   : > { %v4910_v62 = vpack.i.bf16 %v3363_v32, %v3362_v45  ;;  %v3305_v36 = vmul.f32 0.0, %v6959_v12 }
0x1077   : > { %v4905_v46 = vpack.i.bf16 %v3302_v18, %v3301_v34 }
0x1078   : > { %4871 = vrot.lane.b32.xlu2 %v4870_v23, %s7516_s0  ;;  %4911 = vrot.lane.b32.xlu0 %v4910_v62, %s5085_s23 }
0x1079   : > { %3555 = vrot.lane.b32.xlu1 %v3541_v27, %s7518_s20  ;;  %s7618_s20 = sshll.u32 %s5255_s27, 5 }
0x107a   : > { %v6983_v9 = vpop.permute.xlu2 %3228  ;;  %s448_s30 = scalar_lea.vmem [#allocation9], %s7618_s20 }
0x107b   : > { %v6998_v11 = vpop.permute.xlu0 %4796 }
0x1080   : > { %3646 = vrot.lane.b32.xlu2 %v3632_v17, %s7517_s21  ;;  %4921 = vrot.lane.b32.xlu0 %v4920_v59, %s7569_s19  ;;  %v3947_v59 = vld [vmem:[%s7384_s5] sm:$0xff] }
0x1081   : > { %3496 = vrot.lane.b32.xlu1 %v3482_v3, %s7516_s0  ;;  %s5014_s0 = sshra.s32 %s4207_s29, 4  ;;  %s5015_s0 = int_to_ptr.hbm [resolvable:$true] %s5014_s0 }
0x1082   : > { %v6994_v49 = vpop.permute.xlu1 %4801  ;;  %v6996_v29 = vpop.permute.xlu2 %3230  ;;  %s5016_s13 = scalar_lea.hbm %s5015_s0, 32  ;;  %p5021_p12 = scmp.lt.s32.totalorder %s5015_s0, %s7391_s12 }
0x1083   : > { %v4804_v12 = vunpack.i.h.bf16 %v6994_v49  ;;  %v4803_v34 = vunpack.i.l.bf16 %v6994_v49  ;;  %p5017_p1 = scmp.ne.s32.totalorder %s5015_s0, %s5016_s13 }
0x1085   : > { %p5018_p3 = pnand %p5017_p1, %p5220_p13 }
0x1087   : > { %p5019_p5 = pneg %p5018_p3 }
0x1088   : > { %4896 = vrot.lane.b32.xlu2 %v4895_v43, %s5085_s23  ;;  %3378 = vrot.lane.b32.xlu0 %v3364_v40, %s5085_s23  ;;  %v4799_v40 = vunpack.i.h.bf16 %v6998_v11  ;;  %v4798_v43 = vunpack.i.l.bf16 %v6998_v11  ;;  %s4204_s23 = sshll.u32 %s448_s30, 4  ;;  %s4205_s23 = int_to_ptr.vmem [resolvable:$true] %s4204_s23 }
0x1089   : > { %3437 = vrot.lane.b32.xlu1 %v3423_v14, %s7557_s17 }
0x108a   : > { %v7011_v45 = vpop.permute.xlu1 %4816  ;;  %v4777_v32 = vpop.permute.xlu2 %4776 }
0x108b   : > { %v4819_v52 = vunpack.i.h.bf16 %v7011_v45  ;;  %v4818_v25 = vunpack.i.l.bf16 %v7011_v45  ;;  %v7015_v23 = vpop.permute.xlu0 %4811  ;;  %v4779_v62 = vunpack.i.h.bf16 %v4777_v32  ;;  %v4778_v27 = vunpack.i.l.bf16 %v4777_v32 }
0x108c   : > { %v4814_v10 = vunpack.i.h.bf16 %v7015_v23  ;;  %v4813_v8 = vunpack.i.l.bf16 %v7015_v23  ;;  %v4774_v32 = vunpack.i.h.bf16 %v6742_v42 }
0x108d   : > { %v3203_v35 = vsel %vm7570_vm13, %v4778_v27, %v4779_v62  ;;  %v3204_v17 = vsel %vm7571_vm15, %v4779_v62, %v4788_v58  ;;  %v7033_v56 = vsel %vm7572_vm12, %v4818_v25, %v4819_v52  ;;  %vm7573_vm13 = vmmov %vm7572_vm12  ;;  %vm7574_vm15 = vcmask 1039360  }
0x108e   : > { %3956 = vmatpush.msra.mxu3 %v3203_v35  ;;  %3996 = vmatpush.msrb.mxu2 %v3204_v17  ;;  %v7040_v3 = vsel %vm1239_vm14, %v4813_v8, %v4814_v10  ;;  %v3234_v61 = vsel %vm7573_vm13, %v6924_v2, %v6983_v9  ;;  %v3144_v7 = vsel %vm7574_vm15, %v4783_v53, %v4784_v51  ;;  %v4773_v62 = vunpack.i.l.bf16 %v6742_v42  ;;  %vm7576_vm13 = vmmov %vm7574_vm15 }
0x108f   : > { %v3243_v14 = vmul.f32 %v3234_v61, %v6353_v19  ;;  %v3242_v53 = vmul.f32 %v6924_v2, %v6338_v6  ;;  %vm7575_vm12 = vcmask 7168   ;;  %vm7577_vm15 = vmmov %vm7576_vm13 }
0x1090   : > { %4906 = vrot.lane.b32.xlu2 %v4905_v46, %s7569_s19  ;;  %3950 = vperm.xlu0 %4399, %v3947_v59   ;;  %v3077_v49 = vsel %vm7575_vm12, %v4798_v43, %v4799_v40  ;;  %vm7578_vm0 = vmmov %vm7576_vm13  ;;  %vm7579_vm12 = vcmask 64512  }
0x1091   : > { %3319 = vrot.lane.b32.xlu1 %v3305_v36, %s7569_s19  ;;  %3957 = vmatpush.msra.mxu3 %v3144_v7  ;;  %v4763_v7 = vunpack.i.l.bf16 %v6635_v48  ;;  %s5020_s19 = scalar_lea.hbm %s7391_s12, 64 }
0x1092   : > { %v4792_v18 = vpop.permute.xlu2 %4791  ;;  %v3143_v17 = vpop.permute.xlu1 %3142  ;;  %p5022_p8 = scmp.lt.s32.totalorder %s5020_s19, %s5016_s13 }
0x1093   : > { %v7056_v11 = vpop.permute.xlu0 %4821  ;;  %v4794_v27 = vunpack.i.h.bf16 %v4792_v18  ;;  %v4793_v35 = vunpack.i.l.bf16 %v4792_v18  ;;  %3958 = vmatpush.msra.mxu3 %v6338_v6  ;;  %v4915_v18 = vpack.i.bf16 %v3243_v14, %v3242_v53  ;;  %v3018_v6 = vsel %vm1239_vm14, %v4803_v34, %v4804_v12 }
0x1094   : > { %v4824_v59 = vunpack.i.h.bf16 %v7056_v11  ;;  %v4823_v46 = vunpack.i.l.bf16 %v7056_v11  ;;  %v4743_v34 = vunpack.i.l.bf16 %v6517_v38  ;;  %p5023_p7 = por %p5022_p8, %p5021_p12 }
0x1095   : > { %3959 = vmatpush.msra.mxu3 %v3077_v49  ;;  %v3145_v36 = vsel %vm7576_vm13, %v4784_v51, %v4793_v35  ;;  %v7066_v42 = vsel %vm7577_vm15, %v4793_v35, %v4794_v27  ;;  %v7069_v61 = vsel %vm7578_vm0, %v4794_v27, %v3143_v17  ;;  %v3235_v51 = vsel %vm7579_vm12, %v6983_v9, %v6996_v29  ;;  %vm7580_vm13 = vmmov %vm7579_vm12 }
0x1096   : > { %v3825_v2 = vsel %vm569_vm1, %v4823_v46, %v4824_v59  ;;  %3997 = vmatpush.msrb.mxu2 %v3145_v36  ;;  %v3236_v43 = vsel %vm7580_vm13, %v6996_v29, %v6955_v24  ;;  %v4753_v27 = vunpack.i.l.bf16 %v6545_v41  ;;  %vm7582_vm0 = vmmov %vm7579_vm12  ;;  %v3244_v35 = vmul.f32 %v3235_v51, %v6357_v63  ;;  %p5024_p9 = pnand %p5023_p7, %p5019_p5 }
0x1097   : > { %3960 = vmatpush.msra.mxu3 %v3018_v6  ;;  %3981 = vmatpush.msrb.mxu1 %v3825_v2  ;;  %v2959_v14 = vsel %vm7582_vm0, %v4773_v62, %v4774_v32  ;;  %v3245_v9 = vmul.f32 %v3236_v43, %v6344_v15  ;;  %v7583_v29 = vunpack.i.h.bf16 %v6635_v48  ;;  %v7584_v62 = vunpack.i.h.bf16 %v6545_v41 }
0x1098   : > { %4916 = vrot.lane.b32.xlu2 %v4915_v18, %s7581_s14  ;;  %3998 = vmatpush.msrb.mxu2 %v6353_v19  ;;  %v4733_v19 = vunpack.i.l.bf16 %v6492_v16  ;;  %vm7585_vm15 = vcmask 7168   ;;  %v7587_v2 = vunpack.i.h.bf16 %v6517_v38  ;;  %v3019_v41 = vsel %vm1239_vm14, %v4804_v12, %v4813_v8 }
0x1099   : > { %3961 = vmatpush.msra.mxu3 %v2959_v14  ;;  %v2900_v17 = vsel %vm1118_vm11, %v4763_v7, %v7583_v29  ;;  %v2841_v36 = vsel %vm569_vm1, %v4753_v27, %v7584_v62  ;;  %vm7586_vm12 = vmmov %vm7585_vm15  ;;  %v4723_v7 = vunpack.i.l.bf16 %v6461_v37  ;;  %v4925_v6 = vpack.i.bf16 %v3245_v9, %v3244_v35 }
0x109a   : > { %v7089_v53 = vpop.permute.xlu2 %4806  ;;  %v2782_v51 = vsel %vm631_vm3, %v4743_v34, %v7587_v2  ;;  %v4708_v43 = vunpack.i.l.bf16 %v6437_v28  ;;  %v7588_v27 = vunpack.i.h.bf16 %v6492_v16  ;;  %vm7589_vm11 = vmmov %vm7582_vm0  ;;  %v4699_v34 = vunpack.i.h.bf16 %v6435_v26 }
0x109b   : > { %v4809_v46 = vunpack.i.h.bf16 %v7089_v53  ;;  %v4808_v49 = vunpack.i.l.bf16 %v7089_v53  ;;  %3962 = vmatpush.msra.mxu3 %v2900_v17  ;;  %v2960_v38 = vsel %vm7589_vm11, %v4774_v32, %v4818_v25  ;;  %v4698_v8 = vunpack.i.l.bf16 %v6435_v26  ;;  %vm7591_vm13 = vmmov %vm7586_vm12 }
0x109c   : > { %v2723_v14 = vsel %vm693_vm2, %v4733_v19, %v7588_v27  ;;  %v4689_v16 = vunpack.i.h.bf16 %v6405_v22  ;;  %v4688_v9 = vunpack.i.l.bf16 %v6405_v22  ;;  %v4679_v25 = vunpack.i.h.bf16 %v6385_v47 }
0x109d   : > { %3963 = vmatpush.msra.mxu3 %v2841_v36  ;;  %v3078_v18 = vsel %vm7585_vm15, %v4799_v40, %v4808_v49  ;;  %v7104_v48 = vsel %vm7586_vm12, %v4808_v49, %v4809_v46  ;;  %v4709_v40 = vunpack.i.h.bf16 %v6437_v28  ;;  %v7590_v28 = vunpack.i.h.bf16 %v6461_v37 }
0x109e   : > { %3999 = vmatpush.msrb.mxu2 %v3078_v18  ;;  %v4678_v26 = vunpack.i.l.bf16 %v6385_v47  ;;  %v3246_v32 = vmul.f32 0.0, %v6955_v24  ;;  %v2573_v37 = vsel %vm784_vm6, %v4698_v8, %v4699_v34  ;;  %v4669_v22 = vunpack.i.h.bf16 %v6363_v44 }
0x109f   : > { %3964 = vmatpush.msra.mxu3 %v2782_v51  ;;  %v2664_v35 = vsel %vm755_vm5, %v4723_v7, %v7590_v28  ;;  %v2605_v29 = vsel %vm817_vm4, %v4708_v43, %v4709_v40  ;;  %v4668_v49 = vunpack.i.l.bf16 %v6363_v44  ;;  %v4713_v47 = vunpack.i.l.bf16 %v6447_v39 }
0x10a0   : > { %4926 = vrot.lane.b32.xlu2 %v4925_v6, %s7581_s14  ;;  %4000 = vmatpush.msrb.mxu2 %v3019_v41  ;;  %v2455_v36 = vsel %vm660_vm8, %v4678_v26, %v4679_v25  ;;  %v4703_v2 = vunpack.i.l.bf16 %v6443_v30 }
0x10a1   : > { %3965 = vmatpush.msra.mxu3 %v2723_v14  ;;  %v2396_v51 = vsel %vm598_vm9, %v4668_v49, %v4669_v22  ;;  %v2606_v27 = vsel %vm817_vm4, %v4709_v40, %v4713_v47  ;;  %v4683_v14 = vunpack.i.l.bf16 %v6383_v33 }
0x10a2   : > { %v7124_v12 = vpop.permute.xlu2 %3201  ;;  %4001 = vmatpush.msrb.mxu2 %v2960_v38  ;;  %v7138_v17 = vpop.permute.xlu1 %4836  ;;  %v4693_v38 = vunpack.i.l.bf16 %v6403_v0  ;;  %v2574_v11 = vsel %vm784_vm6, %v4699_v34, %v4703_v2 }
0x10a3   : > { %3966 = vmatpush.msra.mxu3 %v2664_v35  ;;  %v4839_v24 = vunpack.i.h.bf16 %v7138_v17 }
0x10a4   : > { %4002 = vmatpush.msrb.mxu2 %v6643_v54  ;;  %v2514_v54 = vsel %vm722_vm7, %v4688_v9, %v4689_v16  ;;  %v2515_v40 = vsel %vm722_vm7, %v4689_v16, %v4693_v38 }
0x10a5   : > { %3967 = vmatpush.msra.mxu3 %v2605_v29 }
0x10a6   : > { %4003 = vmatpush.msrb.mxu2 %v6551_v20  ;;  %v4838_v20 = vunpack.i.l.bf16 %v7138_v17 }
0x10a7   : > { %3968 = vmatpush.msra.mxu3 %v2573_v37  ;;  %v2456_v37 = vsel %vm660_vm8, %v4679_v25, %v4683_v14 }
0x10a8   : > { %3260 = vrot.lane.b32.xlu2 %v3246_v32, %s7581_s14  ;;  %4004 = vmatpush.msrb.mxu2 %v6526_v1  ;;  %v7153_v1 = vld [vmem:[%s7383_s4] sm:$0xff] }
0x10a9   : > { %3969 = vmatpush.msra.mxu3 %v2514_v54 }
0x10aa   : > { %v4832_v19 = vpop.permute.xlu0 %4831  ;;  %v4827_v62 = vpop.permute.xlu2 %4826  ;;  %4005 = vmatpush.msrb.mxu2 %v6498_v13 }
0x10ab   : > { %v4834_v44 = vunpack.i.h.bf16 %v4832_v19  ;;  %v4833_v18 = vunpack.i.l.bf16 %v4832_v19  ;;  %v4829_v7 = vunpack.i.h.bf16 %v4827_v62  ;;  %v4828_v6 = vunpack.i.l.bf16 %v4827_v62  ;;  %3970 = vmatpush.msra.mxu3 %v2455_v36 }
0x10ac   : > { %4006 = vmatpush.msrb.mxu2 %v6467_v50  ;;  %v3707_v50 = vsel %vm693_vm2, %v4838_v20, %v4839_v24 }
0x10ad   : > { %3971 = vmatpush.msra.mxu3 %v2396_v51  ;;  %v3766_v41 = vsel %vm631_vm3, %v4828_v6, %v4829_v7  ;;  %v3826_v13 = vsel %vm569_vm1, %v4824_v59, %v4833_v18  ;;  %v3827_v43 = vsel %vm569_vm1, %v4833_v18, %v4834_v44  ;;  %v4673_v59 = vunpack.i.l.bf16 %v6369_v4 }
0x10ae   : > { %3972 = vmatmul.f32.vlgmr.msra.gmra.mxu3 %v7153_v1  ;;  %3982 = vmatpush.msrb.mxu1 %v3766_v41 }
0x10af   : > { %4007 = vmatpush.msrb.mxu2 %v2606_v27  ;;  %4021 = vmatpush.msra.mxu0 %v3826_v13  ;;  %v2397_v53 = vsel %vm598_vm9, %v4669_v22, %v4673_v59 }
0x10b0   : > { %4061 = vmatpush.msrb.mxu3 %v3827_v43  ;;  %3983 = vmatpush.msrb.mxu1 %v3707_v50 }
0x10b1   : > { %4008 = vmatpush.msrb.mxu2 %v2574_v11 }
0x10b2   : > { %v3076_v8 = vpop.permute.xlu0 %3075  ;;  %v4842_v28 = vpop.permute.xlu2 %4841 }
0x10b3   : > { %v4847_v35 = vpop.permute.xlu1 %4846  ;;  %v4844_v9 = vunpack.i.h.bf16 %v4842_v28  ;;  %v4843_v29 = vunpack.i.l.bf16 %v4842_v28  ;;  %4009 = vmatpush.msrb.mxu2 %v2515_v40  ;;  %v7180_v26 = vsel %vm7591_vm13, %v4809_v46, %v3076_v8 }
0x10b4   : > { %v4849_v32 = vunpack.i.h.bf16 %v4847_v35  ;;  %v4848_v34 = vunpack.i.l.bf16 %v4847_v35 }
0x10b5   : > { %4010 = vmatpush.msrb.mxu2 %v2456_v37  ;;  %v3767_v17 = vsel %vm631_vm3, %v4829_v7, %v4843_v29  ;;  %v3768_v16 = vsel %vm631_vm3, %v4843_v29, %v4844_v9  ;;  %v4719_v7 = vunpack.i.h.bf16 %v6445_v55 }
0x10b6   : > { %v3648_v49 = vsel %vm755_vm5, %v4848_v34, %v4849_v32  ;;  %4022 = vmatpush.msra.mxu0 %v3767_v17  ;;  %4062 = vmatpush.msrb.mxu3 %v3768_v16 }
0x10b7   : > { %3984 = vmatpush.msrb.mxu1 %v3648_v49  ;;  %4011 = vmatpush.msrb.mxu2 %v2397_v53 }
0x10b8   : > { %4012 = vmatmul.f32.vlgmr.msrb.gmra.mxu2 %v7153_v1 }
0x10ba   : > { %v3824_v46 = vpop.permute.xlu0 %3823  ;;  %v4852_v54 = vpop.permute.xlu2 %4851 }
0x10bb   : > { %v3828_v25 = vsel %vm569_vm1, %v4834_v44, %v3824_v46  ;;  %v3017_v20 = vpop.permute.xlu1 %3016  ;;  %v4854_v19 = vunpack.i.h.bf16 %v4852_v54  ;;  %v4853_v62 = vunpack.i.l.bf16 %v4852_v54  ;;  %vm7592_vm1 = vcmask 982016  }
0x10bc   : > { %4101 = vmatpush.msra.mxu2 %v3828_v25  ;;  %v7196_v36 = vsel %vm1239_vm14, %v4814_v10, %v3017_v20  ;;  %vm7596_vm14 = vmmov %vm7592_vm1 }
0x10bd   : > { %v3708_v22 = vsel %vm693_vm2, %v4839_v24, %v4853_v62  ;;  %v3709_v18 = vsel %vm693_vm2, %v4853_v62, %v4854_v19  ;;  %vm7600_vm11 = vmmov %vm7592_vm1 }
0x10be   : > { %4023 = vmatpush.msra.mxu0 %v3708_v22  ;;  %4063 = vmatpush.msrb.mxu3 %v3709_v18 }
0x10c2   : > { %v4862_v6 = vpop.permute.xlu0 %4861  ;;  %v4857_v51 = vpop.permute.xlu2 %4856 }
0x10c3   : > { %v3765_v44 = vpop.permute.xlu1 %3764  ;;  %v4864_v41 = vunpack.i.h.bf16 %v4862_v6  ;;  %v4863_v13 = vunpack.i.l.bf16 %v4862_v6  ;;  %v4859_v43 = vunpack.i.h.bf16 %v4857_v51  ;;  %v4858_v27 = vunpack.i.l.bf16 %v4857_v51 }
0x10c4   : > { %v3769_v23 = vsel %vm631_vm3, %v4844_v9, %v3765_v44  ;;  %vm7594_vm3 = vcmask 990208  }
0x10c5   : > { %4102 = vmatpush.msra.mxu2 %v3769_v23  ;;  %v3589_v10 = vsel %vm817_vm4, %v4719_v7, %v4858_v27  ;;  %v3649_v24 = vsel %vm755_vm5, %v4849_v32, %v4863_v13  ;;  %v3650_v50 = vsel %vm755_vm5, %v4863_v13, %v4864_v41  ;;  %v3590_v11 = vsel %vm817_vm4, %v4858_v27, %v4859_v43  ;;  %vm7597_vm0 = vmmov %vm7594_vm3 }
0x10c6   : > { %3985 = vmatpush.msrb.mxu1 %v3589_v10  ;;  %4024 = vmatpush.msra.mxu0 %v3649_v24 }
0x10c7   : > { %4064 = vmatpush.msrb.mxu3 %v3650_v50 }
0x10c8   : > { %4025 = vmatpush.msra.mxu0 %v3590_v11 }
0x10ca   : > { %v4867_v8 = vpop.permute.xlu0 %4866  ;;  %v7206_v28 = vpop.permute.xlu2 %2957 }
0x10cb   : > { %v3706_v40 = vpop.permute.xlu1 %3705  ;;  %v4869_v35 = vunpack.i.h.bf16 %v4867_v8  ;;  %v4868_v29 = vunpack.i.l.bf16 %v4867_v8 }
0x10cc   : > { %v3710_v9 = vsel %vm693_vm2, %v4854_v19, %v3706_v40  ;;  %vm7593_vm2 = vcmask 719872  }
0x10cd   : > { %4103 = vmatpush.msra.mxu2 %v3710_v9  ;;  %v3557_v34 = vsel %vm784_vm6, %v4868_v29, %v4869_v35  ;;  %vm7598_vm15 = vmmov %vm7593_vm2 }
0x10ce   : > { %3986 = vmatpush.msrb.mxu1 %v3557_v34  ;;  %vm7599_vm12 = vmmov %vm7593_vm2 }
0x10cf   : > { %vm7601_vm13 = vmmov %vm7593_vm2 }
0x10d2   : > { %v4877_v32 = vpop.permute.xlu0 %4876  ;;  %v4872_v37 = vpop.permute.xlu2 %4871 }
0x10d3   : > { %v4882_v17 = vpop.permute.xlu1 %4881  ;;  %v4878_v16 = vunpack.i.l.bf16 %v4877_v32  ;;  %v4874_v49 = vunpack.i.h.bf16 %v4872_v37  ;;  %v4873_v53 = vunpack.i.l.bf16 %v4872_v37  ;;  %v4879_v54 = vunpack.i.h.bf16 %v4877_v32 }
0x10d4   : > { %v4883_v46 = vunpack.i.l.bf16 %v4882_v17  ;;  %v4884_v22 = vunpack.i.h.bf16 %v4882_v17 }
0x10d5   : > { %v3498_v25 = vsel %vm722_vm7, %v4873_v53, %v4874_v49  ;;  %v3558_v20 = vsel %vm784_vm6, %v4869_v35, %v4878_v16  ;;  %v3559_v62 = vsel %vm784_vm6, %v4878_v16, %v4879_v54 }
0x10d6   : > { %3987 = vmatpush.msrb.mxu1 %v3498_v25  ;;  %4026 = vmatpush.msra.mxu0 %v3558_v20  ;;  %v3591_v19 = vsel %vm817_vm4, %v4859_v43, %v4883_v46  ;;  %v3592_v27 = vsel %vm817_vm4, %v4883_v46, %v4884_v22 }
0x10d7   : > { %4065 = vmatpush.msrb.mxu3 %v3591_v19 }
0x10d9   : > { %4066 = vmatpush.msrb.mxu3 %v3559_v62 }
0x10da   : > { %v4887_v18 = vpop.permute.xlu0 %4886  ;;  %v3647_v7 = vpop.permute.xlu2 %3646 }
0x10db   : > { %v4889_v6 = vunpack.i.h.bf16 %v4887_v18  ;;  %v4888_v51 = vunpack.i.l.bf16 %v4887_v18  ;;  %v3651_v44 = vsel %vm755_vm5, %v4864_v41, %v3647_v7  ;;  %v4789_v18 = vunpack.i.h.bf16 %v6981_v5  ;;  %vm7595_vm5 = vmmov %vm7592_vm1 }
0x10dc   : > { %4104 = vmatpush.msra.mxu2 %v3651_v44 }
0x10dd   : > { %v3439_v13 = vsel %vm660_vm8, %v4888_v51, %v4889_v6 }
0x10de   : > { %3988 = vmatpush.msrb.mxu1 %v3439_v13  ;;  %4105 = vmatpush.msra.mxu2 %v3592_v27 }
0x10e2   : > { %v7217_v23 = vpop.permute.xlu0 %4901  ;;  %v4897_v43 = vpop.permute.xlu2 %4896 }
0x10e3   : > { %v4892_v10 = vpop.permute.xlu1 %4891  ;;  %v4899_v24 = vunpack.i.h.bf16 %v4897_v43  ;;  %v4898_v50 = vunpack.i.l.bf16 %v4897_v43  ;;  %v4904_v11 = vunpack.i.h.bf16 %v7217_v23  ;;  %v4903_v8 = vunpack.i.l.bf16 %v7217_v23  ;;  %v3838_v43 = vld [vmem:[%s7383_s4 + $0x8] sm:$0xff] }
0x10e4   : > { %v4894_v40 = vunpack.i.h.bf16 %v4892_v10  ;;  %v4893_v35 = vunpack.i.l.bf16 %v4892_v10 }
0x10e5   : > { %v3380_v41 = vsel %vm598_vm9, %v4898_v50, %v4899_v24  ;;  %v3440_v34 = vsel %vm660_vm8, %v4889_v6, %v4903_v8  ;;  %v3441_v32 = vsel %vm660_vm8, %v4903_v8, %v4904_v11  ;;  %v3205_v8 = vsel %vm7594_vm3, %v4788_v58, %v4789_v18 }
0x10e6   : > { %3989 = vmatpush.msrb.mxu1 %v3380_v41  ;;  %v3499_v29 = vsel %vm722_vm7, %v4874_v49, %v4893_v35  ;;  %v3500_v9 = vsel %vm722_vm7, %v4893_v35, %v4894_v40  ;;  %v3206_v58 = vsel %vm7597_vm0, %v4789_v18, %v7124_v12 }
0x10e7   : > { %4027 = vmatpush.msra.mxu0 %v3499_v29  ;;  %4067 = vmatpush.msrb.mxu3 %v3500_v9 }
0x10e9   : > { %4028 = vmatpush.msra.mxu0 %v3440_v34  ;;  %4068 = vmatpush.msrb.mxu3 %v3441_v32 }
0x10ea   : > { %v4912_v37 = vpop.permute.xlu0 %4911  ;;  %v4907_v17 = vpop.permute.xlu2 %4906 }
0x10eb   : > { %v3556_v16 = vpop.permute.xlu1 %3555  ;;  %v4914_v53 = vunpack.i.h.bf16 %v4912_v37  ;;  %v4913_v46 = vunpack.i.l.bf16 %v4912_v37  ;;  %v4909_v25 = vunpack.i.h.bf16 %v4907_v17  ;;  %v4908_v20 = vunpack.i.l.bf16 %v4907_v17  ;;  %v7611_v17 = vld [vmem:[#allocation21_spill] sm:$0xff] }
0x10ec   : > { %v3560_v19 = vsel %vm784_vm6, %v4879_v54, %v3556_v16 }
0x10ed   : > { %4106 = vmatpush.msra.mxu2 %v3560_v19  ;;  %v3321_v49 = vsel %vm1089_vm10, %v4908_v20, %v4909_v25  ;;  %v3381_v62 = vsel %vm598_vm9, %v4899_v24, %v4913_v46  ;;  %v3382_v22 = vsel %vm598_vm9, %v4913_v46, %v4914_v53 }
0x10ee   : > { %3990 = vmatpush.msrb.mxu1 %v3321_v49  ;;  %4029 = vmatpush.msra.mxu0 %v3381_v62 }
0x10ef   : > { %4069 = vmatpush.msrb.mxu3 %v3382_v22 }
0x10f2   : > { %v4922_v7 = vpop.permute.xlu0 %4921  ;;  %v4917_v6 = vpop.permute.xlu2 %4916 }
0x10f3   : > { %v3497_v51 = vpop.permute.xlu1 %3496  ;;  %v4924_v44 = vunpack.i.h.bf16 %v4922_v7  ;;  %v4923_v13 = vunpack.i.l.bf16 %v4922_v7  ;;  %v4919_v27 = vunpack.i.h.bf16 %v4917_v6  ;;  %v4918_v23 = vunpack.i.l.bf16 %v4917_v6 }
0x10f4   : > { %v3501_v54 = vsel %vm722_vm7, %v4894_v40, %v3497_v51 }
0x10f5   : > { %4107 = vmatpush.msra.mxu2 %v3501_v54  ;;  %v3262_v10 = vsel %vm7592_vm1, %v4918_v23, %v4919_v27  ;;  %v3322_v24 = vsel %vm1089_vm10, %v4909_v25, %v4923_v13  ;;  %v3323_v50 = vsel %vm1089_vm10, %v4923_v13, %v4924_v44 }
0x10f6   : > { %3991 = vmatpush.msrb.mxu1 %v3262_v10  ;;  %4030 = vmatpush.msra.mxu0 %v3322_v24  ;;  %v5094_v24 = vmov 512.0  }
0x10f7   : > { %4070 = vmatpush.msrb.mxu3 %v3323_v50  ;;  %4308 = vmatmul.msk.f32.vlgmr.msrb.gmra.mxu1 %vm7593_vm2, %v3838_v43  ;;  %4930 = vrcp.f32 %v5094_v24 }
0x10f8   : > { %4036 = vmatpush.msra.mxu1 %v3205_v8 }
0x10fa   : > { %4037 = vmatpush.msra.mxu1 %v7066_v42  ;;  %v4927_v40 = vpop.permute.xlu2 %4926  ;;  %v3379_v41 = vpop.permute.xlu0 %3378 }
0x10fb   : > { %v3438_v35 = vpop.permute.xlu1 %3437  ;;  %v4929_v29 = vunpack.i.h.bf16 %v4927_v40  ;;  %v4928_v9 = vunpack.i.l.bf16 %v4927_v40  ;;  %v3383_v5 = vsel %vm598_vm9, %v4914_v53, %v3379_v41 }
0x10fc   : > { %4038 = vmatpush.msra.mxu1 %v6357_v63  ;;  %v3442_v34 = vsel %vm660_vm8, %v4904_v11, %v3438_v35 }
0x10fd   : > { %4108 = vmatpush.msra.mxu2 %v3442_v34  ;;  %v3263_v32 = vsel %vm7595_vm5, %v4919_v27, %v4928_v9  ;;  %v3264_v37 = vsel %vm7596_vm14, %v4928_v9, %v4929_v29  ;;  %v4931_v50 = vpop.eup %4930  ;;  %v4129_v9 = vld [vmem:[%s7387_s8] sm:$0xff] }
0x10fe   : > { %4039 = vmatpush.msra.mxu1 %v7104_v48  ;;  %4031 = vmatpush.msra.mxu0 %v3263_v32  ;;  %v4122_v8 = vmul.f32 512.0, %v4931_v50 }
0x10ff   : > { %4071 = vmatpush.msrb.mxu3 %v3264_v37  ;;  %4109 = vmatpush.msra.mxu2 %v3383_v5 }
0x1100   : > { %4309 = vmatmul.msk.f32.vlgmr.msra.gmra.mxu0 %vm7598_vm15, %v3838_v43  ;;  %4040 = vmatpush.msra.mxu1 %v7040_v3  ;;  %v4123_v40 = vsub.f32 1.0, %v4122_v8 }
0x1101   : > { %4076 = vmatpush.msrb.mxu0 %v3206_v58  ;;  %4310 = vmatmul.msk.f32.vlgmr.msrb.gmra.mxu3 %vm7599_vm12, %v3838_v43 }
0x1102   : > { %4041 = vmatpush.msra.mxu1 %v7033_v56  ;;  %v3261_v42 = vpop.permute.xlu2 %3260  ;;  %v4714_v56 = vunpack.i.h.bf16 %v6447_v39  ;;  %v3951_v49 = vpop.permute.xlu0 %3950  ;;  %v4124_v35 = vmul.f32 %v4931_v50, %v4123_v40 }
0x1103   : > { %4077 = vmatpush.msrb.mxu0 %v7069_v61  ;;  %v3320_v63 = vpop.permute.xlu1 %3319  ;;  %v3265_v3 = vsel %vm7600_vm11, %v4929_v29, %v3261_v42  ;;  %v7604_v61 = vld [vmem:[#allocation32_spill] sm:$0xff] }
0x1104   : > { %4042 = vmatpush.msra.mxu1 %v6623_v31  ;;  %v3324_v48 = vsel %vm1089_vm10, %v4924_v44, %v3320_v63  ;;  %vm7602_vm10 = vcmask 64512   ;;  %v7603_v31 = vld [vmem:[#allocation25_spill] sm:$0xff]  ;;  %v2607_v12 = vsel %vm817_vm4, %v4713_v47, %v4714_v56  ;;  %v7607_v47 = vld [vmem:[#allocation22_spill] sm:$0xff]  ;;  %v4125_v41 = vadd.f32 %v4931_v50, %v4124_v35 }
0x1105   : > { %4078 = vmatpush.msrb.mxu0 %v6344_v15  ;;  %4110 = vmatpush.msra.mxu2 %v3324_v48  ;;  %v2962_v15 = vsel %vm7602_vm10, %v4819_v52, %v7206_v28  ;;  %v4674_v52 = vunpack.i.h.bf16 %v6369_v4  ;;  %v7612_v4 = vld [vmem:[#allocation26_spill] sm:$0xff] }
0x1106   : > { %4043 = vmatpush.msra.mxu1 %v6554_v57  ;;  %v4704_v57 = vunpack.i.h.bf16 %v6443_v30  ;;  %v4718_v30 = vunpack.i.l.bf16 %v6445_v55 }
0x1107   : > { %4079 = vmatpush.msrb.mxu0 %v7180_v26  ;;  %4111 = vmatpush.msra.mxu2 %v3265_v3  ;;  %v7605_v26 = vld [vmem:[#allocation31_spill] sm:$0xff]  ;;  %v2398_v11 = vsel %vm598_vm9, %v4673_v59, %v4674_v52  ;;  %v2399_v59 = vsel %vm598_vm9, %v4674_v52, %v7612_v4  ;;  %v7614_v4 = vld [vmem:[#allocation30_spill] sm:$0xff] }
0x1108   : > { %4044 = vmatpush.msra.mxu1 %v6529_v60  ;;  %4311 = vmatmul.msk.f32.vlgmr.msra.gmra.mxu2 %vm7601_vm13, %v3838_v43  ;;  %v4694_v60 = vunpack.i.h.bf16 %v6403_v0  ;;  %v2575_v45 = vsel %vm784_vm6, %v4703_v2, %v4704_v57  ;;  %v7608_v2 = vld [vmem:[#allocation20_spill] sm:$0xff]  ;;  %v2608_v0 = vsel %vm817_vm4, %v4714_v56, %v4718_v30  ;;  %vm4126_vm4 = vweird.f32 %v4931_v50  ;;  %v4139_v56 = vld [vmem:[%s7388_s9] sm:$0x1] }
0x1109   : > { %4080 = vmatpush.msrb.mxu0 %v7196_v36  ;;  %v7606_v36 = vld [vmem:[#allocation24_spill] sm:$0xff]  ;;  %v4127_v29 = vsel %vm4126_vm4, %v4931_v50, %v4125_v41 }
0x110a   : > { %4045 = vmatpush.msra.mxu1 %v6490_v21  ;;  %v4684_v21 = vunpack.i.h.bf16 %v6383_v33  ;;  %v2516_v39 = vsel %vm722_vm7, %v4693_v38, %v4694_v60  ;;  %v7609_v38 = vld [vmem:[#allocation19_spill] sm:$0xff] }
0x110b   : > { %4081 = vmatpush.msrb.mxu0 %v2962_v15  ;;  %v2576_v33 = vsel %vm784_vm6, %v4704_v57, %v7609_v38  ;;  %vm4131_vm6 = vcmask 15360  }
0x110c   : > { %4046 = vmatpush.msra.mxu1 %v7603_v31  ;;  %v2457_v28 = vsel %vm660_vm8, %v4683_v14, %v4684_v21  ;;  %v7610_v14 = vld [vmem:[#allocation23_spill] sm:$0xff]  ;;  %v2458_v16 = vsel %vm660_vm8, %v4684_v21, %v7611_v17 }
0x110d   : > { %4082 = vmatpush.msrb.mxu0 %v7604_v61  ;;  %v2517_v55 = vsel %vm722_vm7, %v4694_v60, %v7610_v14  ;;  %v4142_v60 = vld [vmem:[%s7389_s10] sm:$0xff] }
0x110e   : > { %4047 = vmatpush.msra.mxu1 %v2607_v12 }
0x110f   : > { %4083 = vmatpush.msrb.mxu0 %v7605_v26  ;;  %v4148_v26 = vld [vmem:[%s7390_s11] sm:$0xff] }
0x1110   : > { %4048 = vmatpush.msra.mxu1 %v2575_v45 }
0x1111   : > { %4084 = vmatpush.msrb.mxu0 %v7606_v36 }
0x1112   : > { %4049 = vmatpush.msra.mxu1 %v2516_v39 }
0x1113   : > { %4085 = vmatpush.msrb.mxu0 %v7607_v47 }
0x1114   : > { %4050 = vmatpush.msra.mxu1 %v2457_v28 }
0x1115   : > { %4086 = vmatpush.msrb.mxu0 %v7608_v2 }
0x1116   : > { %4051 = vmatpush.msra.mxu1 %v2398_v11 }
0x1117   : > { %4087 = vmatpush.msrb.mxu0 %v2608_v0  ;;  %4052 = vmatmul.f32.vlgmr.msra.gmra.mxu1 %v7153_v1 }
0x1119   : > { %4088 = vmatpush.msrb.mxu0 %v2576_v33 }
0x111b   : > { %4089 = vmatpush.msrb.mxu0 %v2517_v55 }
0x111d   : > { %4090 = vmatpush.msrb.mxu0 %v2458_v16  ;;  %v7613_v16 = vld [vmem:[#allocation18_spill] sm:$0xff] }
0x111f   : > { %4091 = vmatpush.msrb.mxu0 %v2399_v59  ;;  %v502_v59 = vadd.f32 %v7614_v4, %v7613_v16 }
0x1120   : > { %4092 = vmatmul.f32.vlgmr.msrb.gmra.mxu0 %v7153_v1 }
0x1131   : > { %v3973_v46 = vpop.f32.mrf.mxu3 }
0x1132   : > { %v3974_v7 = vadd.f32 %v3973_v46, %v3951_v49 }
0x113b   : > { %v4013_v25 = vpop.f32.mrf.mxu2 }
0x113c   : > { %v4014_v62 = vadd.f32 %v4013_v25, %v3951_v49  ;;  %v7616_v25 = vld [vmem:[#allocation28_spill] sm:$0xff] }
0x1174   : > { %v3993_v53 = vpop.f32.mrf.mxu1 }
0x1175   : > { %v7310_v51 = vadd.f32 %v3993_v53, %v3974_v7  ;;  %v7615_v53 = vld [vmem:[#allocation29_spill] sm:$0xff] }
0x1176   : > { %v522_v46 = vadd.f32 %v7615_v53, %v7613_v16 }
0x117d   : > { %v4033_v20 = vpop.f32.mrf.mxu0 }
0x117e   : > { %v7308_v6 = vadd.f32 %v4033_v20, %v4014_v62  ;;  %v482_v20 = vadd.f32 %v7616_v25, %v7613_v16 }
0x1180   : > { %v4116_v1 = vadd.f32 %v7308_v6, %v7310_v51 }
0x1184   : > { %v4073_v18 = vpop.f32.mrf.mxu3 }
0x118b   : > { %v4113_v27 = vpop.f32.mrf.mxu2 }
0x1194   : > { %v4053_v19 = vpop.f32.mrf.mxu1 }
0x1195   : > { %v4054_v22 = vadd.f32 %v4053_v19, %v3951_v49  ;;  %v7617_v19 = vld [vmem:[#allocation27_spill] sm:$0xff] }
0x1197   : > { %v7312_v44 = vadd.f32 %v4073_v18, %v4054_v22 }
0x1199   : > { %v4117_v54 = vadd.f32 %v4116_v1, %v7312_v44 }
0x119d   : > { %v4093_v13 = vpop.f32.mrf.mxu0 }
0x119e   : > { %v4094_v23 = vadd.f32 %v4093_v13, %v3951_v49  ;;  %v542_v49 = vadd.f32 %v7617_v19, %v7613_v16 }
0x11a0   : > { %v7317_v43 = vadd.f32 %v4113_v27, %v4094_v23 }
0x11a2   : > { %v4118_v10 = vadd.f32 %v4117_v54, %v7317_v43 }
0x11a4   : > { %4119 = vadd.xlane.f32.xlu1 %v4118_v10 }
0x1217   : > { %v4120_v34 = vpop.xlane.xlu1 %4119 }
0x1218   : > { %v4128_v32 = vmul.f32 %v4127_v29, %v4120_v34 }
0x121a   : > { %v4130_v37 = vmul.f32 %v4129_v9, %v4128_v32 }
0x121c   : > { %v4132_v5 = vsel %vm4131_vm6, %v4130_v37, 0.0 }
0x121d   : > { %v4133_v58 = vrot.slane %v4132_v5, 4 }
0x121f   : > { %v4134_v63 = vadd.f32 %v4133_v58, %v4132_v5 }
0x1221   : > { %v4135_v42 = vrot.slane %v4134_v63, 2 }
0x1223   : > { %v4136_v48 = vadd.f32 %v4135_v42, %v4134_v63 }
0x1225   : > { %v4137_v3 = vrot.slane %v4136_v48, 1 }
0x1227   : > { %v4138_v15 = vadd.f32 %v4137_v3, %v4136_v48 }
0x1229   : > { %v4140_v57 = vadd.f32 %v4139_v56, %v4138_v15 }
0x122b   : > { %v4141_v31 = vmax.f32 %v4140_v57, 0.0 }
0x122d   : > { %v4143_v61 = vperm.slane %v4141_v31, 0 }
0x122f   : > { %v4144_v12 = vmul.f32 %v4143_v61, %v4142_v60 }
0x1231   : > { %v4145_v21 = vsel %vm4131_vm6, %v4144_v12, 0.0 }
0x1232   : > { %4146 = vadd.xlane.f32.xlu2 %v4145_v21 }
0x12a5   : > { %v4147_v45 = vpop.xlane.xlu2 %4146 }
0x12a6   : > { %v4149_v52 = vadd.f32 %v4148_v26, %v4147_v45 }
0x12a8   : > { %v4312_v36 = vmul.f32 -1.442695, %v4149_v52 }
0x12aa   : > { %4932 = vpow2.f32 %v4312_v36 }
0x12b0   : > { %v4933_v39 = vpop.eup %4932 }
0x12b1   : > { %v4153_v47 = vadd.f32 1.0, %v4933_v39 }
0x12b3   : > { %4934 = vrcp.f32 %v4153_v47  ;;  %v4165_v11 = vand.u32 2147483648, %v4153_v47  ;;  %v4163_v38 = vand.u32 2147483647, %v4153_v47  ;;  %vm4159_vm8 = vweird.f32 %v4153_v47 }
0x12b5   : > { %v4166_v14 = vor.u32 1.1754944e-38, %v4165_v11  ;;  %vm4164_vm1 = vcmp.eq.f32.partialorder %v4163_v38, 8.507059e+37 }
0x12b9   : > { %v4935_v28 = vpop.eup %4934 }
0x12ba   : > { %v4155_v30 = vmul.f32 %v4935_v28, %v4153_v47  ;;  %vm4160_vm7 = vweird.f32 %v4935_v28 }
0x12bb   : > { %vm4161_vm9 = vmor %vm4159_vm8, %vm4160_vm7 }
0x12bc   : > { %v4156_v2 = vsub.f32 1.0, %v4155_v30 }
0x12be   : > { %v4157_v0 = vmul.f32 %v4935_v28, %v4156_v2 }
0x12c0   : > { %v4158_v33 = vadd.f32 %v4935_v28, %v4157_v0 }
0x12c2   : > { %v4162_v55 = vsel %vm4161_vm9, %v4935_v28, %v4158_v33 }
0x12c3   : > { %v4167_v17 = vsel %vm4164_vm1, %v4166_v14, %v4162_v55 }
0x12c4   : > { %4171 = vperm.xlu0 %4399, %v4167_v17  }
0x1336   : > { %v4172_v62 = vpop.permute.xlu0 %4171 }
0x1337   : > { %v4174_v22 = vmul.f32 %v4172_v62, %v7310_v51  ;;  %v4175_v18 = vmul.f32 %v4172_v62, %v7308_v6  ;;  %v4176_v7 = vmul.f32 %v4172_v62, %v7312_v44  ;;  %v4177_v13 = vmul.f32 %v4172_v62, %v7317_v43 }
0x1339   : > { %v4178_v27 = vadd.f32 %v4174_v22, %v482_v20  ;;  %v4179_v1 = vadd.f32 %v4175_v18, %v502_v59  ;;  %v4180_v23 = vadd.f32 %v4176_v7, %v522_v46  ;;  %v4181_v54 = vadd.f32 %v4177_v13, %v542_v49 }
0x133b   : > { %v4182_v10 = vmax.f32 %v4178_v27, 0.0  ;;  %v4183_v24 = vmax.f32 %v4179_v1, 0.0  ;;  %v4184_v50 = vmax.f32 %v4180_v23, 0.0  ;;  %v4185_v6 = vmax.f32 %v4181_v54, 0.0 }
0x133d   : > { %4186 = vst [vmem:[%s448_s30] sm:$0xff] %v4182_v10 }
0x133e   : > { %4187 = vst [vmem:[%s448_s30 + $0x8] sm:$0xff] %v4183_v24 }
0x133f   : > { %4188 = vst [vmem:[%s448_s30 + $0x10] sm:$0xff] %v4184_v50 }
0x1340   : > { %4189 = vst [vmem:[%s448_s30 + $0x18] sm:$0xff] %v4185_v6 }
0x1341   : > { %5027 = shalt.err (!%p5024_p9)
}
0x1342   : > { %4326 = dma.vmem_to_hbm [thread:$0]  (%p5220_p13), %s4205_s23, 512, %s4207_s29, %s4191_s25  }
0x1343 PF: > { %s7619_s27 = sld [smem:[#allocation13_spill]]  ;;  %p7621_p10 = scmp.ge.s32.totalorder %s5070_s24, 2 }
0x1345   : > { %p4337_p11 = pnand %p7621_p10, %p5225_p4 }
0x1347   : > { %p4338_p0 = pneg %p4337_p11 }
0x1349   : > { %s4218_s14 = sand.u32 1, %s7619_s27  }
0x134a   : > { %s4219_s15 = scalar_lea.sflag [#allocation6], %s4218_s14 }
0x134b   : > { %5053 = dma.done.wait (%p4338_p0), %s4219_s15, 512  }
0x134c   : > { %5055 = vsyncadd (%p4338_p0), %s4219_s15, 4294966784  ;;  %s7622_s24 = sld [smem:[#allocation15_spill]]  ;;  %s7625_s21 = smov %s5062_s22 }
0x134d   : > { %s7623_s20 = sld [smem:[#allocation14_spill]] }
0x134e   : > { %s7624_s23 = sld [smem:[#allocation16_spill]] }
0x1352   : > { %p26_p2 = scmp.ge.s32.totalorder %s7622_s24, 4  }
0x1353   : > { %s7626_s22 = smov %s7623_s20 }
0x1354   :  { %28 = sbr.rel (!%p26_p2) target bundleno = 8 (0x8), region = 125 }
0x1359   :  { %4225 = vsyncpa [#allocation5], 1 }
0x135a   :  { %4227 = vsyncpa [#allocation5 + $0x1], 1 }
0x135b   :  { %4228 = vsyncpa [#allocation8], 1 }
0x135c   :  { %4230 = vsyncpa [#allocation8 + $0x1], 1 }
0x135d   :  { %4231 = vsyncpa [#allocation6], 1 }
0x135e   :  { %4233 = vsyncpa [#allocation6 + $0x1], 1 }

</bundles_post_ra>
